<compile_context>
chip_gen: v7x
topology: tpu7x:2x2x1
jax: 0.10.0
libtpu: 0.0.40
codegen_flags: <defaults>
</compile_context>

<pallas_src>
import functools

import jax
import jax.numpy as jnp
from jax.experimental import pallas as pl
from jax.experimental.pallas import tpu as pltpu


def _round_up(x, m):
    return (x + m - 1) // m * m


def _phys_vmem_bytes(shape, dtype):
    """VMEM footprint after Mosaic's physical padding: last dim -> multiple of
    128 lanes, second-to-last -> sublane multiple (8 for 4B, 16 for 2B,
    32 for 1B dtypes)."""
    itemsize = jnp.dtype(dtype).itemsize
    dims = list(shape) if shape else [1]
    dims[-1] = _round_up(dims[-1], 128)
    if len(dims) >= 2:
        dims[-2] = _round_up(dims[-2], 8 * max(1, 4 // itemsize))
    total = 1
    for d in dims:
        total *= d
    return total * itemsize


# ---------------------------------------------------------------------------
# Fused conv + bias + ReLU kernel: one batch element, one tile of output rows.
# In-kernel im2col -> single MXU matmul -> bias + ReLU epilogue -> one store.
# ---------------------------------------------------------------------------
def _make_conv_kernel(*, KH, KW, TOH, OW, Cp, OCp, stride):
    Kc = KH * KW * Cp  # fused GEMM contraction dim (patch lane dim)

    def kernel(x_ref, w_ref, b_ref, o_ref, patch_ref):
        # x_ref    : (HPP, WP, Cp)   zero-padded NHWC image (C = lane dim,
        #                            W = sublane dim), one batch element
        # w_ref    : (Kc, OCp)       weights, (kh, kw, c)-major fused rows
        # b_ref    : (1, OCp)        bias (f32)
        # o_ref    : (TOH, OW, OCp)  output row tile (lane-dense OCp)
        # patch_ref: (TOH*OW, Kc)    bf16 im2col patch scratch
        t = pl.program_id(1)
        row0 = t * (TOH * stride)
        if (TOH * stride) % 8 == 0:
            row0 = pl.multiple_of(row0, 8)

        # Build the im2col patch once per tile: each tap's shifted window is
        # copied into its Cp-wide lane slot.  All Kc columns are written, so
        # no uninitialized scratch lanes ever feed the matmul.
        for kh in range(KH):
            for kw in range(KW):
                if stride == 1:
                    win = x_ref[pl.ds(row0 + kh, TOH), pl.ds(kw, OW), :]
                else:
                    # TODO(synk): strided sublane slicing is untested on some
                    # TPU generations; the demo path uses stride == 1.
                    win = x_ref[pl.ds(row0 + kh, TOH, stride),
                                pl.ds(kw, OW, stride), :]
                tap = kh * KW + kw
                patch_ref[:, pl.ds(tap * Cp, Cp)] = win.reshape(TOH * OW, Cp)

        # Single fused matmul: (TOH*OW, Kc) @ (Kc, OCp), f32 accumulation.
        acc = jnp.dot(patch_ref[...], w_ref[...],
                      preferred_element_type=jnp.float32)
        out = jnp.maximum(acc + b_ref[...], 0.0)
        o_ref[...] = out.reshape(TOH, OW, OCp).astype(o_ref.dtype)

    return kernel


# ---------------------------------------------------------------------------
# Conv2dBlock forward: conv2d(stride, padding, bias=True) followed by ReLU.
# ---------------------------------------------------------------------------
def conv2d_block_forward(x, weight, bias, *, stride=1, padding=0,
                         compute_dtype=jnp.bfloat16):
    """x: (N, C, H, W) NCHW.  weight: (OC, C, KH, KW) OIHW.  bias: (OC,)."""
    N, C, H, W = x.shape
    OC, _, KH, KW = weight.shape
    OH = (H + 2 * padding - KH) // stride + 1
    OW = (W + 2 * padding - KW) // stride + 1

    Cp = _round_up(C, 8)          # per-tap channel slot width (lane dim of x)
    OCp = _round_up(OC, 128)      # output lane dim -> full 128-lane stores
    Kc = KH * KW * Cp             # fused GEMM contraction dim

    # Row tile: ~256 GEMM rows per grid step (v5e-friendly); snap to a divisor
    # of OH when one is close so no padded output rows are written.
    TOH = max(1, min(OH, 256 // max(OW, 1)))
    if OH % TOH:
        for d in range(TOH, 0, -1):
            if OH % d == 0:
                if 2 * d >= TOH:
                    TOH = d
                break
    n_row_tiles = -(-OH // TOH)
    OH_pad = n_row_tiles * TOH

    # NCHW -> NHWC, zero-pad spatially (+ extra bottom rows so padded output
    # rows stay in-bounds), pad channels to Cp, cast to the MXU compute dtype.
    WP = W + 2 * padding
    HPP = max(H + 2 * padding, stride * (OH_pad - 1) + KH)
    extra_h = HPP - (H + 2 * padding)
    x_nhwc = jnp.transpose(x, (0, 2, 3, 1))
    xp = jnp.pad(x_nhwc, ((0, 0),
                          (padding, padding + extra_h),
                          (padding, padding),
                          (0, Cp - C))).astype(compute_dtype)
    # TODO(synk): in a multi-layer network keep activations NHWC/channel-padded
    # between layers to avoid this per-call transpose/pad and the final
    # slice/transpose (each is an extra HBM pass).

    # (OC, C, KH, KW) -> (KH, KW, Cp, OCp) -> (Kc, OCp), zero-padded so weight
    # row (kh*KW + kw)*Cp + c matches the patch lane layout exactly.
    w = jnp.transpose(weight, (2, 3, 1, 0))
    w = jnp.pad(w, ((0, 0), (0, 0), (0, Cp - C), (0, OCp - OC)))
    w = w.reshape(Kc, OCp).astype(compute_dtype)
    b = jnp.pad(bias, (0, OCp - OC)).reshape(1, OCp).astype(jnp.float32)

    kernel = _make_conv_kernel(KH=KH, KW=KW, TOH=TOH, OW=OW, Cp=Cp, OCp=OCp,
                               stride=stride)

    # VMEM footprint from PHYSICAL tile sizes (lane/sublane padded); x2 for the
    # double-buffered pipelined operands, x1 for the patch scratch.
    out_dtype = x.dtype
    vmem_est = (2 * _phys_vmem_bytes((HPP, WP, Cp), compute_dtype)
                + 2 * _phys_vmem_bytes((Kc, OCp), compute_dtype)
                + 2 * _phys_vmem_bytes((1, OCp), jnp.float32)
                + 2 * _phys_vmem_bytes((TOH, OW, OCp), out_dtype)
                + _phys_vmem_bytes((TOH * OW, Kc), compute_dtype))
    try:  # generation-aware cap: ~7/8 of physical VMEM (64 MiB v7x, 128 v5e/v6e)
        phys_vmem = int(pltpu.get_tpu_info().vmem_capacity_bytes)
    except Exception:
        phys_vmem = 64 * 2**20
    vmem_cap = phys_vmem * 7 // 8
    vmem_limit = int(min(max(32 * 2**20, 2 * vmem_est), vmem_cap))

    itemsize = jnp.dtype(compute_dtype).itemsize
    cost = pl.CostEstimate(
        flops=int(2 * N * OH * OW * KH * KW * C * OC),
        transcendentals=0,
        bytes_accessed=int(xp.size * itemsize + w.size * itemsize + b.size * 4
                           + N * OH_pad * OW * OCp
                           * jnp.dtype(out_dtype).itemsize))

    out = pl.pallas_call(
        kernel,
        out_shape=jax.ShapeDtypeStruct((N, OH_pad, OW, OCp), out_dtype),
        grid_spec=pltpu.PrefetchScalarGridSpec(
            num_scalar_prefetch=0,
            grid=(N, n_row_tiles),
            in_specs=[
                # Whole padded image per batch element; block index is constant
                # across the row-tile axis, so it is DMA'd once per batch
                # element and stays resident.
                # TODO(synk): for large images on v7x (64 MiB VMEM), switch to
                # row-band blocking with halo via memory_space=pl.ANY + manual
                # double-buffered pltpu.make_async_copy.
                pl.BlockSpec((None, HPP, WP, Cp), lambda n, t: (n, 0, 0, 0)),
                # Weights / bias are grid-constant (DMA'd once; small).
                pl.BlockSpec((Kc, OCp), lambda n, t: (0, 0)),
                pl.BlockSpec((1, OCp), lambda n, t: (0, 0)),
            ],
            out_specs=pl.BlockSpec((None, TOH, OW, OCp),
                                   lambda n, t: (n, t, 0, 0)),
            scratch_shapes=[pltpu.VMEM((TOH * OW, Kc), compute_dtype)],
        ),
        compiler_params=pltpu.CompilerParams(
            dimension_semantics=("parallel", "parallel"),
            vmem_limit_bytes=vmem_limit),
        cost_estimate=cost,
    )(xp, w, b)

    # Strip row/channel padding, NHWC -> NCHW.
    return jnp.transpose(out[:, :OH, :, :OC], (0, 3, 1, 2))


# ---------------------------------------------------------------------------
# Deterministic parameter init (mirrors kaiming_uniform_(nonlinearity='relu'),
# zeros for bias).
# ---------------------------------------------------------------------------
def init_conv2d_block_params(key, in_channels, out_channels, kernel_size):
    fan_in = in_channels * kernel_size * kernel_size
    gain = jnp.sqrt(2.0)                       # relu gain
    bound = gain * jnp.sqrt(3.0 / fan_in)      # kaiming uniform bound
    weight = jax.random.uniform(
        key, (out_channels, in_channels, kernel_size, kernel_size),
        minval=-bound, maxval=bound, dtype=jnp.float32)
    bias = jnp.zeros((out_channels,), dtype=jnp.float32)
    return weight, bias


if __name__ == "__main__":
    key = jax.random.PRNGKey(0)
    k_x, k_w = jax.random.split(key)

    # Small shapes consistent with the module: N=2, C=4, H=W=16,
    # out_channels=8, kernel_size=3, stride=1, padding=1.
    N, C, H, W = 2, 4, 16, 16
    OC, KS, STRIDE, PAD = 8, 3, 1, 1

    x = jax.random.normal(k_x, (N, C, H, W), dtype=jnp.float32)
    weight, bias = init_conv2d_block_params(k_w, C, OC, KS)

    fwd = jax.jit(functools.partial(conv2d_block_forward,
                                    stride=STRIDE, padding=PAD))
    out = fwd(x, weight, bias)
    jax.block_until_ready(out)

    # Reference: XLA conv + bias + relu with the same bf16 input/weight
    # quantization and f32 accumulation as the kernel's MXU path.
    ref = jax.lax.conv_general_dilated(
        x.astype(jnp.bfloat16), weight.astype(jnp.bfloat16),
        window_strides=(STRIDE, STRIDE),
        padding=[(PAD, PAD), (PAD, PAD)],
        dimension_numbers=("NCHW", "OIHW", "NCHW"),
        preferred_element_type=jnp.float32)
    ref = jnp.maximum(ref + bias[None, :, None, None], 0.0)

    assert out.shape == ref.shape, (out.shape, ref.shape)
    assert jnp.allclose(out, ref, atol=1e-3, rtol=1e-3), \
        float(jnp.max(jnp.abs(out - ref)))

    print("KERNEL_OK")
</pallas_src>

<mosaic_0001>
module attributes {stable_mosaic.version = 11 : i64} {
  func.func @kernel(%arg0: i32, %arg1: i32, %arg2: memref<1x18x18x8xbf16, #tpu.memory_space<vmem>>, %arg3: memref<72x128xbf16, #tpu.memory_space<vmem>>, %arg4: memref<1x128xf32, #tpu.memory_space<vmem>>, %arg5: memref<1x16x16x128xf32, #tpu.memory_space<vmem>>, %arg6: memref<256x72xbf16, #tpu.memory_space<vmem>>) attributes {dimension_semantics = [#tpu.dimension_semantics<parallel>, #tpu.dimension_semantics<parallel>], iteration_bounds = array<i64: 2, 1>, scalar_prefetch = 0 : i64, scratch_operands = 1 : i64, tpu.core_type = #tpu.core_type<tc>, window_params = [{transform_indices = @transform_0, window_bounds = array<i64: 1, 18, 18, 8>}, {pipeline_mode = #tpu.pipeline_mode<synchronous>, transform_indices = @transform_1, window_bounds = array<i64: 72, 128>}, {pipeline_mode = #tpu.pipeline_mode<synchronous>, transform_indices = @transform_2, window_bounds = array<i64: 1, 128>}, {transform_indices = @transform_3, window_bounds = array<i64: 1, 16, 16, 128>}]} {
    %c16_i32 = arith.constant 16 : i32
    %0 = arith.muli %arg1, %c16_i32 : i32
    %1 = tpu.assume_multiple %0, 8 : i32
    %c0_i32 = arith.constant 0 : i32
    %2 = arith.addi %1, %c0_i32 : i32
    %c0 = arith.constant 0 : index
    %3 = arith.index_cast %2 : i32 to index
    %c0_0 = arith.constant 0 : index
    %c0_1 = arith.constant 0 : index
    %4 = vector.load %arg2[%c0, %3, %c0_0, %c0_1] : memref<1x18x18x8xbf16, #tpu.memory_space<vmem>>, vector<1x16x16x8xbf16>
    %5 = vector.shape_cast %4 : vector<1x16x16x8xbf16> to vector<16x16x8xbf16>
    %6 = vector.shape_cast %5 : vector<16x16x8xbf16> to vector<256x8xbf16>
    %c0_2 = arith.constant 0 : index
    %c0_3 = arith.constant 0 : index
    %7 = vector.load %arg6[%c0_2, %c0_3] : memref<256x72xbf16, #tpu.memory_space<vmem>>, vector<256x8xbf16>
    tpu.vector_store %arg6[%c0_2, %c0_3], %6 {strides = array<i32>} : memref<256x72xbf16, #tpu.memory_space<vmem>>, vector<256x8xbf16>,
    %c0_i32_4 = arith.constant 0 : i32
    %8 = arith.addi %1, %c0_i32_4 : i32
    %c0_5 = arith.constant 0 : index
    %9 = arith.index_cast %8 : i32 to index
    %c1 = arith.constant 1 : index
    %c0_6 = arith.constant 0 : index
    %10 = vector.load %arg2[%c0_5, %9, %c1, %c0_6] : memref<1x18x18x8xbf16, #tpu.memory_space<vmem>>, vector<1x16x16x8xbf16>
    %11 = vector.shape_cast %10 : vector<1x16x16x8xbf16> to vector<16x16x8xbf16>
    %12 = vector.shape_cast %11 : vector<16x16x8xbf16> to vector<256x8xbf16>
    %c0_7 = arith.constant 0 : index
    %c8 = arith.constant 8 : index
    %13 = vector.load %arg6[%c0_7, %c8] : memref<256x72xbf16, #tpu.memory_space<vmem>>, vector<256x8xbf16>
    tpu.vector_store %arg6[%c0_7, %c8], %12 {strides = array<i32>} : memref<256x72xbf16, #tpu.memory_space<vmem>>, vector<256x8xbf16>,
    %c0_i32_8 = arith.constant 0 : i32
    %14 = arith.addi %1, %c0_i32_8 : i32
    %c0_9 = arith.constant 0 : index
    %15 = arith.index_cast %14 : i32 to index
    %c2 = arith.constant 2 : index
    %c0_10 = arith.constant 0 : index
    %16 = vector.load %arg2[%c0_9, %15, %c2, %c0_10] : memref<1x18x18x8xbf16, #tpu.memory_space<vmem>>, vector<1x16x16x8xbf16>
    %17 = vector.shape_cast %16 : vector<1x16x16x8xbf16> to vector<16x16x8xbf16>
    %18 = vector.shape_cast %17 : vector<16x16x8xbf16> to vector<256x8xbf16>
    %c0_11 = arith.constant 0 : index
    %c16 = arith.constant 16 : index
    %19 = vector.load %arg6[%c0_11, %c16] : memref<256x72xbf16, #tpu.memory_space<vmem>>, vector<256x8xbf16>
    tpu.vector_store %arg6[%c0_11, %c16], %18 {strides = array<i32>} : memref<256x72xbf16, #tpu.memory_space<vmem>>, vector<256x8xbf16>,
    %c1_i32 = arith.constant 1 : i32
    %20 = arith.addi %1, %c1_i32 : i32
    %c0_12 = arith.constant 0 : index
    %21 = arith.index_cast %20 : i32 to index
    %c0_13 = arith.constant 0 : index
    %c0_14 = arith.constant 0 : index
    %22 = vector.load %arg2[%c0_12, %21, %c0_13, %c0_14] : memref<1x18x18x8xbf16, #tpu.memory_space<vmem>>, vector<1x16x16x8xbf16>
    %23 = vector.shape_cast %22 : vector<1x16x16x8xbf16> to vector<16x16x8xbf16>
    %24 = vector.shape_cast %23 : vector<16x16x8xbf16> to vector<256x8xbf16>
    %c0_15 = arith.constant 0 : index
    %c24 = arith.constant 24 : index
    %25 = vector.load %arg6[%c0_15, %c24] : memref<256x72xbf16, #tpu.memory_space<vmem>>, vector<256x8xbf16>
    tpu.vector_store %arg6[%c0_15, %c24], %24 {strides = array<i32>} : memref<256x72xbf16, #tpu.memory_space<vmem>>, vector<256x8xbf16>,
    %c1_i32_16 = arith.constant 1 : i32
    %26 = arith.addi %1, %c1_i32_16 : i32
    %c0_17 = arith.constant 0 : index
    %27 = arith.index_cast %26 : i32 to index
    %c1_18 = arith.constant 1 : index
    %c0_19 = arith.constant 0 : index
    %28 = vector.load %arg2[%c0_17, %27, %c1_18, %c0_19] : memref<1x18x18x8xbf16, #tpu.memory_space<vmem>>, vector<1x16x16x8xbf16>
    %29 = vector.shape_cast %28 : vector<1x16x16x8xbf16> to vector<16x16x8xbf16>
    %30 = vector.shape_cast %29 : vector<16x16x8xbf16> to vector<256x8xbf16>
    %c0_20 = arith.constant 0 : index
    %c32 = arith.constant 32 : index
    %31 = vector.load %arg6[%c0_20, %c32] : memref<256x72xbf16, #tpu.memory_space<vmem>>, vector<256x8xbf16>
    tpu.vector_store %arg6[%c0_20, %c32], %30 {strides = array<i32>} : memref<256x72xbf16, #tpu.memory_space<vmem>>, vector<256x8xbf16>,
    %c1_i32_21 = arith.constant 1 : i32
    %32 = arith.addi %1, %c1_i32_21 : i32
    %c0_22 = arith.constant 0 : index
    %33 = arith.index_cast %32 : i32 to index
    %c2_23 = arith.constant 2 : index
    %c0_24 = arith.constant 0 : index
    %34 = vector.load %arg2[%c0_22, %33, %c2_23, %c0_24] : memref<1x18x18x8xbf16, #tpu.memory_space<vmem>>, vector<1x16x16x8xbf16>
    %35 = vector.shape_cast %34 : vector<1x16x16x8xbf16> to vector<16x16x8xbf16>
    %36 = vector.shape_cast %35 : vector<16x16x8xbf16> to vector<256x8xbf16>
    %c0_25 = arith.constant 0 : index
    %c40 = arith.constant 40 : index
    %37 = vector.load %arg6[%c0_25, %c40] : memref<256x72xbf16, #tpu.memory_space<vmem>>, vector<256x8xbf16>
    tpu.vector_store %arg6[%c0_25, %c40], %36 {strides = array<i32>} : memref<256x72xbf16, #tpu.memory_space<vmem>>, vector<256x8xbf16>,
    %c2_i32 = arith.constant 2 : i32
    %38 = arith.addi %1, %c2_i32 : i32
    %c0_26 = arith.constant 0 : index
    %39 = arith.index_cast %38 : i32 to index
    %c0_27 = arith.constant 0 : index
    %c0_28 = arith.constant 0 : index
    %40 = vector.load %arg2[%c0_26, %39, %c0_27, %c0_28] : memref<1x18x18x8xbf16, #tpu.memory_space<vmem>>, vector<1x16x16x8xbf16>
    %41 = vector.shape_cast %40 : vector<1x16x16x8xbf16> to vector<16x16x8xbf16>
    %42 = vector.shape_cast %41 : vector<16x16x8xbf16> to vector<256x8xbf16>
    %c0_29 = arith.constant 0 : index
    %c48 = arith.constant 48 : index
    %43 = vector.load %arg6[%c0_29, %c48] : memref<256x72xbf16, #tpu.memory_space<vmem>>, vector<256x8xbf16>
    tpu.vector_store %arg6[%c0_29, %c48], %42 {strides = array<i32>} : memref<256x72xbf16, #tpu.memory_space<vmem>>, vector<256x8xbf16>,
    %c2_i32_30 = arith.constant 2 : i32
    %44 = arith.addi %1, %c2_i32_30 : i32
    %c0_31 = arith.constant 0 : index
    %45 = arith.index_cast %44 : i32 to index
    %c1_32 = arith.constant 1 : index
    %c0_33 = arith.constant 0 : index
    %46 = vector.load %arg2[%c0_31, %45, %c1_32, %c0_33] : memref<1x18x18x8xbf16, #tpu.memory_space<vmem>>, vector<1x16x16x8xbf16>
    %47 = vector.shape_cast %46 : vector<1x16x16x8xbf16> to vector<16x16x8xbf16>
    %48 = vector.shape_cast %47 : vector<16x16x8xbf16> to vector<256x8xbf16>
    %c0_34 = arith.constant 0 : index
    %c56 = arith.constant 56 : index
    %49 = vector.load %arg6[%c0_34, %c56] : memref<256x72xbf16, #tpu.memory_space<vmem>>, vector<256x8xbf16>
    tpu.vector_store %arg6[%c0_34, %c56], %48 {strides = array<i32>} : memref<256x72xbf16, #tpu.memory_space<vmem>>, vector<256x8xbf16>,
    %c2_i32_35 = arith.constant 2 : i32
    %50 = arith.addi %1, %c2_i32_35 : i32
    %c0_36 = arith.constant 0 : index
    %51 = arith.index_cast %50 : i32 to index
    %c2_37 = arith.constant 2 : index
    %c0_38 = arith.constant 0 : index
    %52 = vector.load %arg2[%c0_36, %51, %c2_37, %c0_38] : memref<1x18x18x8xbf16, #tpu.memory_space<vmem>>, vector<1x16x16x8xbf16>
    %53 = vector.shape_cast %52 : vector<1x16x16x8xbf16> to vector<16x16x8xbf16>
    %54 = vector.shape_cast %53 : vector<16x16x8xbf16> to vector<256x8xbf16>
    %c0_39 = arith.constant 0 : index
    %c64 = arith.constant 64 : index
    %55 = vector.load %arg6[%c0_39, %c64] : memref<256x72xbf16, #tpu.memory_space<vmem>>, vector<256x8xbf16>
    tpu.vector_store %arg6[%c0_39, %c64], %54 {strides = array<i32>} : memref<256x72xbf16, #tpu.memory_space<vmem>>, vector<256x8xbf16>,
    %c0_40 = arith.constant 0 : index
    %c0_41 = arith.constant 0 : index
    %56 = vector.load %arg6[%c0_40, %c0_41] : memref<256x72xbf16, #tpu.memory_space<vmem>>, vector<256x72xbf16>
    %c0_42 = arith.constant 0 : index
    %c0_43 = arith.constant 0 : index
    %57 = vector.load %arg3[%c0_42, %c0_43] : memref<72x128xbf16, #tpu.memory_space<vmem>>, vector<72x128xbf16>
    %cst = arith.constant dense<0.000000e+00> : vector<256x128xf32>
    %58 = tpu.matmul %56, %57, %cst {dimension_numbers = #tpu.dot_dimension_numbers<[1], [0], [0], [1], [0, 0, 1, 1], [], []>} : vector<256x72xbf16>, vector<72x128xbf16>, vector<256x128xf32> -> vector<256x128xf32>
    %c0_44 = arith.constant 0 : index
    %c0_45 = arith.constant 0 : index
    %59 = vector.load %arg4[%c0_44, %c0_45] : memref<1x128xf32, #tpu.memory_space<vmem>>, vector<1x128xf32>
    %60 = vector.broadcast %59 : vector<1x128xf32> to vector<256x128xf32>
    %61 = arith.addf %58, %60 : vector<256x128xf32>
    %cst_46 = arith.constant 0.000000e+00 : f32
    %62 = vector.broadcast %cst_46 : f32 to vector<256x128xf32>
    %63 = arith.maximumf %61, %62 : vector<256x128xf32>
    %64 = vector.shape_cast %63 : vector<256x128xf32> to vector<16x16x128xf32>
    %c0_47 = arith.constant 0 : index
    %c0_48 = arith.constant 0 : index
    %c0_49 = arith.constant 0 : index
    %c0_50 = arith.constant 0 : index
    %65 = vector.load %arg5[%c0_47, %c0_48, %c0_49, %c0_50] : memref<1x16x16x128xf32, #tpu.memory_space<vmem>>, vector<1x16x16x128xf32>
    %66 = vector.shape_cast %65 : vector<1x16x16x128xf32> to vector<16x16x128xf32>
    %67 = vector.shape_cast %64 : vector<16x16x128xf32> to vector<1x16x16x128xf32>
    tpu.vector_store %arg5[%c0_47, %c0_48, %c0_49, %c0_50], %67 {strides = array<i32>} : memref<1x16x16x128xf32, #tpu.memory_space<vmem>>, vector<1x16x16x128xf32>,
    return
  }
  func.func @transform_0(%arg0: i32, %arg1: i32) -> (i32, i32, i32, i32) {
    %c0_i32 = arith.constant 0 : i32
    %c0_i32_0 = arith.constant 0 : i32
    %c0_i32_1 = arith.constant 0 : i32
    %c0_i32_2 = arith.constant 0 : i32
    return %arg0, %c0_i32, %c0_i32_0, %c0_i32_1 : i32, i32, i32, i32
  }
  func.func @transform_1(%arg0: i32, %arg1: i32) -> (i32, i32) {
    %c0_i32 = arith.constant 0 : i32
    %c0_i32_0 = arith.constant 0 : i32
    %c0_i32_1 = arith.constant 0 : i32
    return %c0_i32, %c0_i32_0 : i32, i32
  }
  func.func @transform_2(%arg0: i32, %arg1: i32) -> (i32, i32) {
    %c0_i32 = arith.constant 0 : i32
    %c0_i32_0 = arith.constant 0 : i32
    %c0_i32_1 = arith.constant 0 : i32
    return %c0_i32, %c0_i32_0 : i32, i32
  }
  func.func @transform_3(%arg0: i32, %arg1: i32) -> (i32, i32, i32, i32) {
    %c0_i32 = arith.constant 0 : i32
    %c0_i32_0 = arith.constant 0 : i32
    %c0_i32_1 = arith.constant 0 : i32
    return %arg0, %arg1, %c0_i32, %c0_i32_0 : i32, i32, i32, i32
  }
}

</mosaic_0001>

<bundles_post_ra>
// kernel: conv2d_block_forward.1
= control target key start
LH: loop header
LB: loop body
LE: loop exit
PB: predicated region body
PF: predicated region fallthrough
CT: control target
= control target key end

     0   :  { %s4440_s12 = smov 0   ;;  %s4442_s13 = smov 0   ;;  %s5653_s0 = inlined_call_operand.vmem [shape: bf16[2,18,18,8], index: 0, kind: input, shape index: {}]   ;;  %s5654_s1 = inlined_call_operand.vmem [shape: bf16[72,128], index: 1, kind: input, shape index: {}]   ;;  %s5655_s2 = inlined_call_operand.vmem [shape: f32[1,128], index: 2, kind: input, shape index: {}]   ;;  %s5656_s3 = inlined_call_operand.vmem [shape: f32[2,16,16,128], index: 3, kind: output, shape index: {}]  }
   0x1   :  { %s4444_s14 = smov 0  }
   0x2 LB: > { %s25_s15 = sadd.s32 1, %s4406_s13  ;;  %p3750_p0 = scmp.ge.s32.totalorder %s4410_s14, 1  ;;  %s4410_s14 = sphi %s4444_s14, %s13_s14   ;;  %s4406_s13 = sphi %s4442_s13, %s5662_s13   ;;  %s4402_s12 = sphi %s4440_s12, %s5661_s12  }
   0x3   : > { %p27_p1 = scmp.ge.s32.totalorder %s25_s15, 2  ;;  %p151_p2 = scmp.lt.s32.totalorder %s4410_s14, 3 }
   0x5   : > { %s5664_s15 = smov (%p27_p1, %s25_s15), 0  ;;  %p152_p3 = pnand %p3750_p0, %p151_p2 }
   0x6   : > { %p180_p4 = scmp.lt.s32.totalorder (!%p152_p3), %s4402_s12, 1  ;;  %vm990_vm0 = vcmask (!%p152_p3), 1042432   ;;  %vm991_vm1 = vcmask (!%p152_p3), 1046532   ;;  %s4412_s20 = smov (!%p152_p3), 24   ;;  %vm394_vm3 = vsmask.f32 (!%p152_p3), 3328 }
   0x7   : > { %155 = sbr.rel (%p152_p3) target bundleno = 661 (0x295), region = 32  ;;  %vm4466_vm2 = vmor (!%p152_p3), %vm990_vm0, %vm991_vm1  ;;  %vm395_vm4 = vsmask.f32 (!%p152_p3), 7440  ;;  %s4413_s21 = smov (!%p152_p3), 16   ;;  %vm329_vm6 = vcmask (!%p152_p3), 64512   ;;  %vm877_vm7 = vcmask (!%p152_p3), 130112  }
   0x8   : > { %vm4516_vm5 = vmor (!%p152_p3), %vm394_vm3, %vm395_vm4  ;;  %s4414_s22 = smov (!%p152_p3), 8   ;;  %s4415_s23 = smov (!%p152_p3), 32   ;;  %vm1201_vm8 = vcmask (!%p152_p3), 195712   ;;  %vm1382_vm9 = vcmask (!%p152_p3), 261312   ;;  %vm1927_vm10 = vcmask (!%p152_p3), 326912   ;;  %vm2248_vm11 = vcmask (!%p152_p3), 392512  }
   0x9   : > { %s4416_s24 = smov (!%p152_p3), 40   ;;  %s4417_s25 = smov (!%p152_p3), 48   ;;  %vm2429_vm12 = vcmask (!%p152_p3), 458112   ;;  %vm2974_vm13 = vcmask (!%p152_p3), 523712   ;;  %vm3295_vm14 = vcmask (!%p152_p3), 589312   ;;  %vm3371_vm15 = vcmask (!%p152_p3), 588800  }
   0xa   : > { %s4418_s26 = smov (!%p152_p3), 56   ;;  %s4419_s27 = smov (!%p152_p3), 64   ;;  %vm3420_vm0 = vcmask (!%p152_p3), 1043456  }
   0xe   : > { %s5666_s12 = smov (!%p180_p4, %s4402_s12), 1 }
   0xf   : > { %s4302_s16 = smul.u32 216, %s5666_s12  ;;  %s4226_s17 = sshll.u32 %s5666_s12, 8 }
  0x11   : > { %s4464_s19 = scalar_lea.vmem %s5653_s0, %s4302_s16 }
  0x12   : > { %v4335_v1 = vld [vmem:[%s4464_s19 + $0x6c] sm:$0xff]   ;;  %v918_v3 = vld [vmem:[%s4464_s19 + $0x60] sm:$0xe]  ;;  %v919_v4 = vld [vmem:[%s4464_s19 + $0x64] sm:$0xf] }
  0x13   : > { %v4336_v2 = vld [vmem:[%s4464_s19 + $0xc] sm:$0xff]   ;;  %1350 = vrot.lane.b32.xlu1 %v4335_v1, %s4412_s20  ;;  %v920_v5 = vld [vmem:[%s4464_s19 + $0x68] sm:$0x1]  ;;  %v3794_v6 = vrot.slane %v918_v3, 9  ;;  %v1051_v7 = vrot.slane %v919_v4, 5 }
  0x14   : > { %1334 = vrot.lane.b32.xlu0 %v4336_v2, %s4412_s20  ;;  %v1054_v8 = vrot.slane %v920_v5, 5  ;;  %v894_v9 = vld [vmem:[%s4464_s19] sm:$0xe]  ;;  %v895_v10 = vld [vmem:[%s4464_s19 + $0x4] sm:$0xf] }
  0x15   : > { %v896_v11 = vld [vmem:[%s4464_s19 + $0x8] sm:$0x1]  ;;  %v3786_v12 = vrot.slane %v894_v9, 9  ;;  %v1052_v13 = vsel %vm4466_vm2, %v3794_v6, %v1051_v7  ;;  %v1053_v14 = vrot.slane %v1051_v7, 4  ;;  %v995_v15 = vrot.slane %v895_v10, 5 }
  0x16   : > { %v998_v16 = vrot.slane %v896_v11, 5  ;;  %v921_v17 = vld [vmem:[%s4464_s19 + $0x6c] sm:$0xe]  ;;  %v922_v18 = vld [vmem:[%s4464_s19 + $0x70] sm:$0xf] }
  0x17   : > { %v923_v19 = vld [vmem:[%s4464_s19 + $0x74] sm:$0x1]  ;;  %v3795_v20 = vrot.slane %v921_v17, 9  ;;  %v1055_v21 = vsel %vm4466_vm2, %v1053_v14, %v1054_v8  ;;  %v996_v22 = vsel %vm4466_vm2, %v3786_v12, %v995_v15  ;;  %v997_v23 = vrot.slane %v995_v15, 4  ;;  %v897_v25 = vld [vmem:[%s4464_s19 + $0xc] sm:$0xe] }
  0x18   : > { %v1058_v24 = vrot.slane %v922_v18, 5  ;;  %v898_v26 = vld [vmem:[%s4464_s19 + $0x10] sm:$0xf]  ;;  %v3810_v27 = vcombine.low %v1052_v13, %v1055_v21  ;;  %v1061_v28 = vrot.slane %v923_v19, 5  ;;  %v899_v29 = vld [vmem:[%s4464_s19 + $0x14] sm:$0x1] }
  0x19   : > { %v3787_v30 = vrot.slane %v897_v25, 9  ;;  %v1002_v31 = vrot.slane %v898_v26, 5  ;;  %v999_v32 = vsel %vm4466_vm2, %v997_v23, %v998_v16  ;;  %v1005_v35 = vrot.slane %v899_v29, 5  ;;  %v349_v36 = vld [vmem:[%s4464_s19 + $0xc] sm:$0xf] }
  0x1a   : > { %v1059_v33 = vsel %vm4466_vm2, %v3795_v20, %v1058_v24  ;;  %v1060_v34 = vrot.slane %v1058_v24, 4  ;;  %v350_v37 = vld [vmem:[%s4464_s19 + $0x10] sm:$0xf]  ;;  %1169 = vrot.lane.b32.xlu1 %v3810_v27, %s4413_s21  ;;  %v3802_v38 = vcombine.low %v996_v22, %v999_v32  ;;  %v351_v41 = vld [vmem:[%s4464_s19 + $0x14] sm:$0x1]  ;;  %v422_v42 = vshrl.u32 %v349_v36, 16 }
  0x1b   : > { %v1003_v39 = vsel %vm4466_vm2, %v3787_v30, %v1002_v31  ;;  %v1004_v40 = vrot.slane %v1002_v31, 4  ;;  %v346_v43 = vld [vmem:[%s4464_s19] sm:$0xf]  ;;  %v425_v45 = vshll.u32 %v349_v36, 16  ;;  %v431_v46 = vshll.u32 %v350_v37, 16 }
  0x1c   : > { %v1062_v44 = vsel %vm4466_vm2, %v1060_v34, %v1061_v28  ;;  %v435_v47 = vshrl.u32 %v350_v37, 16  ;;  %v347_v48 = vld [vmem:[%s4464_s19 + $0x4] sm:$0xf]  ;;  %1153 = vrot.lane.b32.xlu0 %v3802_v38, %s4413_s21  ;;  %v424_v51 = vrot.slane %v422_v42, 4  ;;  %v441_v52 = vshll.u32 %v351_v41, 16 }
  0x1d   : > { %v3811_v49 = vcombine.low %v1059_v33, %v1062_v44  ;;  %v1006_v50 = vsel %vm4466_vm2, %v1004_v40, %v1005_v35  ;;  %v348_v53 = vld [vmem:[%s4464_s19 + $0x8] sm:$0x1]  ;;  %v427_v55 = vrot.slane %v425_v45, 5  ;;  %v433_v56 = vrot.slane %v431_v46, 5  ;;  %v373_v58 = vld [vmem:[%s4464_s19 + $0x6c] sm:$0xf] }
  0x1e   : > { %v3803_v54 = vcombine.low %v1003_v39, %v1006_v50  ;;  %v437_v57 = vrot.slane %v435_v47, 4  ;;  %v443_v59 = vrot.slane %v441_v52, 5  ;;  %v398_v60 = vshrl.u32 %v346_v43, 16  ;;  %v374_v4 = vld [vmem:[%s4464_s19 + $0x70] sm:$0xf] }
  0x1f   : > { %1171 = vrot.lane.b32.xlu1 %v3811_v49, %s4413_s21  ;;  %v401_v61 = vshll.u32 %v346_v43, 16  ;;  %v407_v62 = vshll.u32 %v347_v48, 16  ;;  %v428_v63 = vor.u32 %v427_v55, %v424_v51  ;;  %v411_v2 = vshrl.u32 %v347_v48, 16  ;;  %v375_v9 = vld [vmem:[%s4464_s19 + $0x74] sm:$0x1] }
  0x20   : > { %v438_v1 = vor.u32 %v437_v57, %v433_v56  ;;  %v417_v3 = vshll.u32 %v348_v53, 16  ;;  %1155 = vrot.lane.b32.xlu0 %v3803_v54, %s4413_s21  ;;  %v400_v6 = vrot.slane %v398_v60, 4  ;;  %v614_v10 = vshrl.u32 %v373_v58, 16  ;;  %v370_v11 = vld [vmem:[%s4464_s19 + $0x60] sm:$0xf] }
  0x21   : > { %v403_v7 = vrot.slane %v401_v61, 5  ;;  %v409_v8 = vrot.slane %v407_v62, 5  ;;  %v429_v12 = vrot.slane %v428_v63, 4  ;;  %v413_v14 = vrot.slane %v411_v2, 4  ;;  %v371_v16 = vld [vmem:[%s4464_s19 + $0x64] sm:$0xf] }
  0x22   : > { %v439_v13 = vrot.slane %v438_v1, 4  ;;  %v419_v15 = vrot.slane %v417_v3, 5  ;;  %v616_v18 = vrot.slane %v614_v10, 4  ;;  %v617_v19 = vshll.u32 %v373_v58, 16  ;;  %v372_v35 = vld [vmem:[%s4464_s19 + $0x68] sm:$0x1] }
  0x23   : > { %v404_v17 = vor.u32 %v403_v7, %v400_v6  ;;  %v623_v20 = vshll.u32 %v374_v4, 16  ;;  %v434_v21 = vsel %vm4516_vm5, %v429_v12, %v433_v56  ;;  %v414_v23 = vor.u32 %v413_v14, %v409_v8  ;;  %v3890_v38 = vld [vmem:[%s4464_s19 + $0x6c] sm:$0xf]  ;;  %v3891_v43 = vld [vmem:[%s4464_s19 + $0x70] sm:$0xf]  ;;  %v4337_v6 = vld [vmem:[%s4464_s19 + $0x78] sm:$0xff]  }
  0x24   : > { %v444_v22 = vsel %vm4516_vm5, %v439_v13, %v443_v59  ;;  %v627_v24 = vshrl.u32 %v374_v4, 16  ;;  %v619_v27 = vrot.slane %v617_v19, 5  ;;  %v633_v31 = vshll.u32 %v375_v9, 16  ;;  %v3892_v54 = vld [vmem:[%s4464_s19 + $0x74] sm:$0x1] }
  0x25   : > { %v3771_v25 = vcombine.low %v434_v21, %v444_v22  ;;  %v405_v26 = vrot.slane %v404_v17, 4  ;;  %v625_v28 = vrot.slane %v623_v20, 5  ;;  %v415_v29 = vrot.slane %v414_v23, 4  ;;  %v3866_v57 = vld [vmem:[%s4464_s19 + $0xc] sm:$0xf] }
  0x26   : > { %v629_v30 = vrot.slane %v627_v24, 4  ;;  %v590_v32 = vshrl.u32 %v370_v11, 16  ;;  %v620_v34 = vor.u32 %v619_v27, %v616_v18  ;;  %v593_v36 = vshll.u32 %v370_v11, 16  ;;  %v3867_v62 = vld [vmem:[%s4464_s19 + $0x10] sm:$0xf] }
  0x27   : > { %831 = vrot.lane.b32.xlu1 %v3771_v25, %s4414_s22  ;;  %v410_v33 = vsel %vm4516_vm5, %v405_v26, %v409_v8  ;;  %v599_v37 = vshll.u32 %v371_v16, 16  ;;  %v420_v39 = vsel %vm4516_vm5, %v415_v29, %v419_v15  ;;  %v635_v41 = vrot.slane %v633_v31, 5  ;;  %v3868_v12 = vld [vmem:[%s4464_s19 + $0x14] sm:$0x1]  ;;  %v3893_v15 = vld [vmem:[%s4464_s19 + $0x78] sm:$0xf] }
  0x28   : > { %v630_v40 = vor.u32 %v629_v30, %v625_v28  ;;  %v592_v42 = vrot.slane %v590_v32, 4  ;;  %v3770_v44 = vcombine.low %v410_v33, %v420_v39  ;;  %v621_v45 = vrot.slane %v620_v34, 4  ;;  %v3894_v27 = vld [vmem:[%s4464_s19 + $0x7c] sm:$0xf]  ;;  %v3895_v33 = vld [vmem:[%s4464_s19 + $0x80] sm:$0x1] }
  0x29   : > { %v595_v46 = vrot.slane %v593_v36, 5  ;;  %v601_v47 = vrot.slane %v599_v37, 5  ;;  %v603_v49 = vshrl.u32 %v371_v16, 16  ;;  %v609_v50 = vshll.u32 %v372_v35, 16  ;;  %v3869_v34 = vld [vmem:[%s4464_s19 + $0x18] sm:$0xf] }
  0x2a   : > { %v631_v48 = vrot.slane %v630_v40, 4  ;;  %v1640_v51 = vshrl.u32 %v3890_v38, 16  ;;  %829 = vrot.lane.b32.xlu0 %v3770_v44, %s4414_s22  ;;  %v626_v52 = vsel %vm4516_vm5, %v621_v45, %v625_v28  ;;  %v1643_v55 = vshll.u32 %v3890_v38, 16  ;;  %v3870_v39 = vld [vmem:[%s4464_s19 + $0x1c] sm:$0xf] }
  0x2b   : > { %v596_v53 = vor.u32 %v595_v46, %v592_v42  ;;  %v1649_v56 = vshll.u32 %v3891_v43, 16  ;;  %v605_v59 = vrot.slane %v603_v49, 4  ;;  %v611_v60 = vrot.slane %v609_v50, 5  ;;  %v4338_v40 = vld [vmem:[%s4464_s19 + $0x18] sm:$0xff]   ;;  %v3871_v45 = vld [vmem:[%s4464_s19 + $0x20] sm:$0x1] }
  0x2c   : > { %v636_v58 = vsel %vm4516_vm5, %v631_v48, %v635_v41  ;;  %v1642_v61 = vrot.slane %v1640_v51, 4  ;;  %v1645_v2 = vrot.slane %v1643_v55, 5  ;;  %v1653_v7 = vshrl.u32 %v3891_v43, 16  ;;  %v3954_v50 = vld [vmem:[%s4464_s19 + $0x6c] sm:$0xe] }
  0x2d   : > { %v3779_v63 = vcombine.low %v626_v52, %v636_v58  ;;  %v597_v1 = vrot.slane %v596_v53, 4  ;;  %v1651_v3 = vrot.slane %v1649_v56, 5  ;;  %v606_v4 = vor.u32 %v605_v59, %v601_v47  ;;  %v3955_v55 = vld [vmem:[%s4464_s19 + $0x70] sm:$0xf] }
  0x2e   : > { %v1659_v8 = vshll.u32 %v3892_v54, 16  ;;  %v1448_v9 = vshrl.u32 %v3866_v57, 16  ;;  %v1646_v11 = vor.u32 %v1645_v2, %v1642_v61  ;;  %v1451_v13 = vshll.u32 %v3866_v57, 16  ;;  %v3930_v61 = vld [vmem:[%s4464_s19 + $0xc] sm:$0xe] }
  0x2f   : > { %847 = vrot.lane.b32.xlu1 %v3779_v63, %s4414_s22  ;;  %v602_v10 = vsel %vm4516_vm5, %v597_v1, %v601_v47  ;;  %v1457_v14 = vshll.u32 %v3867_v62, 16  ;;  %v607_v16 = vrot.slane %v606_v4, 4  ;;  %v1655_v17 = vrot.slane %v1653_v7, 4 }
  0x30   : > { %v1661_v18 = vrot.slane %v1659_v8, 5  ;;  %v1450_v19 = vrot.slane %v1448_v9, 4  ;;  %v1647_v20 = vrot.slane %v1646_v11, 4  ;;  %v1453_v21 = vrot.slane %v1451_v13, 5  ;;  %v3932_v9 = vld [vmem:[%s4464_s19 + $0x14] sm:$0x1] }
  0x31   : > { %v1459_v22 = vrot.slane %v1457_v14, 5  ;;  %v1461_v23 = vshrl.u32 %v3867_v62, 16  ;;  %v612_v24 = vsel %vm4516_vm5, %v607_v16, %v611_v60  ;;  %v1656_v25 = vor.u32 %v1655_v17, %v1651_v3  ;;  %v3956_v60 = vld [vmem:[%s4464_s19 + $0x74] sm:$0x1] }
  0x32   : > { %v1467_v26 = vshll.u32 %v3868_v12, 16  ;;  %v1664_v28 = vshrl.u32 %v3893_v15, 16  ;;  %v3778_v29 = vcombine.low %v602_v10, %v612_v24  ;;  %v1652_v30 = vsel %vm4516_vm5, %v1647_v20, %v1651_v3  ;;  %v3931_v3 = vld [vmem:[%s4464_s19 + $0x10] sm:$0xf] }
  0x33   : > { %1352 = vrot.lane.b32.xlu1 %v4337_v6, %s4412_s20  ;;  %v1454_v31 = vor.u32 %v1453_v21, %v1450_v19  ;;  %v1463_v32 = vrot.slane %v1461_v23, 4  ;;  %v1657_v35 = vrot.slane %v1656_v25, 4  ;;  %v1667_v38 = vshll.u32 %v3893_v15, 16 }
  0x34   : > { %v1469_v36 = vrot.slane %v1467_v26, 5  ;;  %v1666_v37 = vrot.slane %v1664_v28, 4  ;;  %845 = vrot.lane.b32.xlu0 %v3778_v29, %s4414_s22  ;;  %v1673_v43 = vshll.u32 %v3894_v27, 16  ;;  %v1677_v44 = vshrl.u32 %v3894_v27, 16  ;;  %v3958_v27 = vld [vmem:[%s4464_s19 + $0x7c] sm:$0xf] }
  0x35   : > { %v1455_v41 = vrot.slane %v1454_v31, 4  ;;  %v1464_v42 = vor.u32 %v1463_v32, %v1459_v22  ;;  %v1662_v46 = vsel %vm4516_vm5, %v1657_v35, %v1661_v18  ;;  %v1669_v47 = vrot.slane %v1667_v38, 5  ;;  %v3959_v28 = vld [vmem:[%s4464_s19 + $0x80] sm:$0x1]  ;;  %v3934_v38 = vld [vmem:[%s4464_s19 + $0x1c] sm:$0xf] }
  0x36   : > { %v1683_v48 = vshll.u32 %v3895_v33, 16  ;;  %v1472_v49 = vshrl.u32 %v3869_v34, 16  ;;  %v3922_v51 = vcombine.low %v1652_v30, %v1662_v46  ;;  %v1675_v54 = vrot.slane %v1673_v43, 5  ;;  %v3933_v33 = vld [vmem:[%s4464_s19 + $0x18] sm:$0xe] }
  0x37   : > { %v1460_v52 = vsel %vm4516_vm5, %v1455_v41, %v1459_v22  ;;  %v1465_v53 = vrot.slane %v1464_v42, 4  ;;  %v1670_v56 = vor.u32 %v1669_v47, %v1666_v37  ;;  %v1679_v57 = vrot.slane %v1677_v44, 4  ;;  %v3957_v22 = vld [vmem:[%s4464_s19 + $0x78] sm:$0xe] }
  0x38   : > { %v1685_v58 = vrot.slane %v1683_v48, 5  ;;  %v1474_v59 = vrot.slane %v1472_v49, 4  ;;  %1336 = vrot.lane.b32.xlu0 %v4338_v40, %s4412_s20  ;;  %1895 = vrot.lane.b32.xlu1 %v3922_v51, %s4415_s23  ;;  %v1475_v63 = vshll.u32 %v3869_v34, 16  ;;  %v1481_v1 = vshll.u32 %v3870_v39, 16  ;;  %v4082_v44 = vld [vmem:[%s4464_s19 + $0x78] sm:$0xf] }
  0x39   : > { %v1470_v62 = vsel %vm4516_vm5, %v1465_v53, %v1469_v36  ;;  %v1485_v2 = vshrl.u32 %v3870_v39, 16  ;;  %v1671_v6 = vrot.slane %v1670_v56, 4  ;;  %v1680_v7 = vor.u32 %v1679_v57, %v1675_v54  ;;  %v3935_v39 = vld [vmem:[%s4464_s19 + $0x20] sm:$0x1] }
  0x3a   : > { %v3914_v4 = vcombine.low %v1460_v52, %v1470_v62  ;;  %v1491_v8 = vshll.u32 %v3871_v45, 16  ;;  %v1477_v10 = vrot.slane %v1475_v63, 5  ;;  %v1483_v11 = vrot.slane %v1481_v1, 5  ;;  %v4083_v45 = vld [vmem:[%s4464_s19 + $0x7c] sm:$0xf] }
  0x3b   : > { %v1487_v12 = vrot.slane %v1485_v2, 4  ;;  %v3986_v13 = vrot.slane %v3954_v50, 9  ;;  %v1676_v14 = vsel %vm4516_vm5, %v1671_v6, %v1675_v54  ;;  %v1681_v15 = vrot.slane %v1680_v7, 4  ;;  %v4084_v54 = vld [vmem:[%s4464_s19 + $0x80] sm:$0x1] }
  0x3c   : > { %v1493_v16 = vrot.slane %v1491_v8, 5  ;;  %v2098_v17 = vrot.slane %v3955_v55, 5  ;;  %1879 = vrot.lane.b32.xlu0 %v3914_v4, %s4415_s23  ;;  %v1478_v18 = vor.u32 %v1477_v10, %v1474_v59  ;;  %v2101_v20 = vrot.slane %v3956_v60, 5  ;;  %v4058_v59 = vld [vmem:[%s4464_s19 + $0x18] sm:$0xf] }
  0x3d   : > { %v1488_v19 = vor.u32 %v1487_v12, %v1483_v11  ;;  %v3978_v21 = vrot.slane %v3930_v61, 9  ;;  %v1686_v23 = vsel %vm4516_vm5, %v1681_v15, %v1685_v58  ;;  %v2042_v26 = vrot.slane %v3931_v3, 5  ;;  %v4059_v1 = vld [vmem:[%s4464_s19 + $0x1c] sm:$0xf]  ;;  %v4060_v10 = vld [vmem:[%s4464_s19 + $0x20] sm:$0x1] }
  0x3e   : > { %v2099_v24 = vsel %vm4466_vm2, %v3986_v13, %v2098_v17  ;;  %v2100_v25 = vrot.slane %v2098_v17, 4  ;;  %v3923_v29 = vcombine.low %v1676_v14, %v1686_v23  ;;  %v1479_v30 = vrot.slane %v1478_v18, 4  ;;  %v4339_v17 = vld [vmem:[%s4464_s19 + $0x78] sm:$0xff]  }
  0x3f   : > { %v1489_v31 = vrot.slane %v1488_v19, 4  ;;  %v2045_v32 = vrot.slane %v3932_v9, 5  ;;  %v2043_v35 = vsel %vm4466_vm2, %v3978_v21, %v2042_v26  ;;  %v2044_v36 = vrot.slane %v2042_v26, 4 }
  0x40   : > { %v2102_v34 = vsel %vm4466_vm2, %v2100_v25, %v2101_v20  ;;  %v3987_v37 = vrot.slane %v3957_v22, 9  ;;  %1897 = vrot.lane.b32.xlu1 %v3923_v29, %s4415_s23  ;;  %v1484_v40 = vsel %vm4516_vm5, %v1479_v30, %v1483_v11  ;;  %v2105_v43 = vrot.slane %v3958_v27, 5  ;;  %v4086_v22 = vld [vmem:[%s4464_s19 + $0x88] sm:$0xf]  ;;  %v4340_v27 = vld [vmem:[%s4464_s19 + $0x18] sm:$0xff]  }
  0x41   : > { %v1494_v41 = vsel %vm4516_vm5, %v1489_v31, %v1493_v16  ;;  %v4002_v42 = vcombine.low %v2099_v24, %v2102_v34  ;;  %v2046_v47 = vsel %vm4466_vm2, %v2044_v36, %v2045_v32  ;;  %v2108_v48 = vrot.slane %v3959_v28, 5  ;;  %v4085_v16 = vld [vmem:[%s4464_s19 + $0x84] sm:$0xf] }
  0x42   : > { %v3915_v46 = vcombine.low %v1484_v40, %v1494_v41  ;;  %v3979_v49 = vrot.slane %v3933_v33, 9  ;;  %v3994_v50 = vcombine.low %v2043_v35, %v2046_v47  ;;  %v2106_v51 = vsel %vm4466_vm2, %v3987_v37, %v2105_v43  ;;  %v4087_v35 = vld [vmem:[%s4464_s19 + $0x8c] sm:$0x1]  ;;  %v4061_v37 = vld [vmem:[%s4464_s19 + $0x24] sm:$0xf] }
  0x43   : > { %v2107_v52 = vrot.slane %v2105_v43, 4  ;;  %v2049_v53 = vrot.slane %v3934_v38, 5  ;;  %v2052_v55 = vrot.slane %v3935_v39, 5  ;;  %v2687_v56 = vshrl.u32 %v4082_v44, 16  ;;  %v4341_v38 = vld [vmem:[%s4464_s19 + $0x84] sm:$0xff]  }
  0x44   : > { %1881 = vrot.lane.b32.xlu0 %v3915_v46, %s4415_s23  ;;  %v2690_v57 = vshll.u32 %v4082_v44, 16  ;;  %v2696_v58 = vshll.u32 %v4083_v45, 16  ;;  %2216 = vrot.lane.b32.xlu1 %v4002_v42, %s4416_s24  ;;  %v2700_v63 = vshrl.u32 %v4083_v45, 16  ;;  %v2706_v9 = vshll.u32 %v4084_v54, 16  ;;  %v4062_v43 = vld [vmem:[%s4464_s19 + $0x28] sm:$0xf] }
  0x45   : > { %v2109_v60 = vsel %vm4466_vm2, %v2107_v52, %v2108_v48  ;;  %v2050_v61 = vsel %vm4466_vm2, %v3979_v49, %v2049_v53  ;;  %v2051_v62 = vrot.slane %v2049_v53, 4  ;;  %v2689_v3 = vrot.slane %v2687_v56, 4  ;;  %v4063_v48 = vld [vmem:[%s4464_s19 + $0x2c] sm:$0x1]  ;;  %v4146_v53 = vld [vmem:[%s4464_s19 + $0x78] sm:$0xe] }
  0x46   : > { %v4003_v2 = vcombine.low %v2106_v51, %v2109_v60  ;;  %v2692_v4 = vrot.slane %v2690_v57, 5  ;;  %v2698_v6 = vrot.slane %v2696_v58, 5  ;;  %v2702_v8 = vrot.slane %v2700_v63, 4  ;;  %v4342_v54 = vld [vmem:[%s4464_s19 + $0x24] sm:$0xff]  }
  0x47   : > { %v2053_v7 = vsel %vm4466_vm2, %v2051_v62, %v2052_v55  ;;  %v2495_v11 = vshrl.u32 %v4058_v59, 16  ;;  %v2498_v14 = vshll.u32 %v4058_v59, 16  ;;  %v2504_v15 = vshll.u32 %v4059_v1, 16  ;;  %v4147_v59 = vld [vmem:[%s4464_s19 + $0x7c] sm:$0xf] }
  0x48   : > { %2200 = vrot.lane.b32.xlu0 %v3994_v50, %s4416_s24  ;;  %v3995_v12 = vcombine.low %v2050_v61, %v2053_v7  ;;  %v2693_v13 = vor.u32 %v2692_v4, %v2689_v3  ;;  %2218 = vrot.lane.b32.xlu1 %v4003_v2, %s4416_s24  ;;  %v2703_v18 = vor.u32 %v2702_v8, %v2698_v6  ;;  %v2708_v19 = vrot.slane %v2706_v9, 5  ;;  %v4122_v7 = vld [vmem:[%s4464_s19 + $0x18] sm:$0xe]  ;;  %v4123_v8 = vld [vmem:[%s4464_s19 + $0x1c] sm:$0xf] }
  0x49   : > { %v2497_v20 = vrot.slane %v2495_v11, 4  ;;  %v2508_v21 = vshrl.u32 %v4059_v1, 16  ;;  %v2500_v24 = vrot.slane %v2498_v14, 5  ;;  %v2506_v25 = vrot.slane %v2504_v15, 5  ;;  %v4148_v1 = vld [vmem:[%s4464_s19 + $0x80] sm:$0x1] }
  0x4a   : > { %v2694_v23 = vrot.slane %v2693_v13, 4  ;;  %v2514_v26 = vshll.u32 %v4060_v10, 16  ;;  %v2704_v28 = vrot.slane %v2703_v18, 4  ;;  %v2711_v30 = vshrl.u32 %v4085_v16, 16 }
  0x4b   : > { %v2510_v29 = vrot.slane %v2508_v21, 4  ;;  %v2714_v31 = vshll.u32 %v4085_v16, 16  ;;  %v2501_v33 = vor.u32 %v2500_v24, %v2497_v20  ;;  %v2720_v36 = vshll.u32 %v4086_v22, 16 }
  0x4c   : > { %2202 = vrot.lane.b32.xlu0 %v3995_v12, %s4416_s24  ;;  %v2699_v32 = vsel %vm4516_vm5, %v2694_v23, %v2698_v6  ;;  %v2516_v34 = vrot.slane %v2514_v26, 5  ;;  %2397 = vrot.lane.b32.xlu1 %v4339_v17, %s4417_s25  ;;  %v2709_v39 = vsel %vm4516_vm5, %v2704_v28, %v2708_v19  ;;  %v2713_v41 = vrot.slane %v2711_v30, 4  ;;  %v4124_v17 = vld [vmem:[%s4464_s19 + $0x20] sm:$0x1] }
  0x4d   : > { %v2511_v40 = vor.u32 %v2510_v29, %v2506_v25  ;;  %v2716_v42 = vrot.slane %v2714_v31, 5  ;;  %v4114_v44 = vcombine.low %v2699_v32, %v2709_v39  ;;  %v2502_v45 = vrot.slane %v2501_v33, 4  ;;  %v378_v32 = vld [vmem:[%s4464_s19 + $0x80] sm:$0x1] }
  0x4e   : > { %v2722_v46 = vrot.slane %v2720_v36, 5  ;;  %v2724_v47 = vshrl.u32 %v4086_v22, 16  ;;  %v2730_v51 = vshll.u32 %v4087_v35, 16  ;;  %v2519_v52 = vshrl.u32 %v4061_v37, 16  ;;  %v376_v22 = vld [vmem:[%s4464_s19 + $0x78] sm:$0xf] }
  0x4f   : > { %v2512_v49 = vrot.slane %v2511_v40, 4  ;;  %v2717_v50 = vor.u32 %v2716_v42, %v2713_v41  ;;  %v2507_v55 = vsel %vm4516_vm5, %v2502_v45, %v2506_v25  ;;  %v2522_v57 = vshll.u32 %v4061_v37, 16  ;;  %v352_v37 = vld [vmem:[%s4464_s19 + $0x18] sm:$0xf] }
  0x50   : > { %2381 = vrot.lane.b32.xlu0 %v4340_v27, %s4417_s25  ;;  %v2726_v56 = vrot.slane %v2724_v47, 4  ;;  %v2528_v58 = vshll.u32 %v4062_v43, 16  ;;  %2399 = vrot.lane.b32.xlu1 %v4341_v38, %s4417_s25  ;;  %v2732_v62 = vrot.slane %v2730_v51, 5  ;;  %v2521_v63 = vrot.slane %v2519_v52, 4  ;;  %v377_v27 = vld [vmem:[%s4464_s19 + $0x7c] sm:$0xf] }
  0x51   : > { %v2517_v60 = vsel %vm4516_vm5, %v2512_v49, %v2516_v34  ;;  %v2718_v61 = vrot.slane %v2717_v50, 4  ;;  %v2524_v4 = vrot.slane %v2522_v57, 5  ;;  %v2532_v10 = vshrl.u32 %v4062_v43, 16  ;;  %v353_v38 = vld [vmem:[%s4464_s19 + $0x1c] sm:$0xf] }
  0x52   : > { %v4106_v2 = vcombine.low %v2507_v55, %v2517_v60  ;;  %v2727_v3 = vor.u32 %v2726_v56, %v2722_v46  ;;  %v2530_v6 = vrot.slane %v2528_v58, 5  ;;  %v2538_v11 = vshll.u32 %v4063_v48, 16  ;;  %v354_v43 = vld [vmem:[%s4464_s19 + $0x20] sm:$0x1]  ;;  %v4149_v48 = vld [vmem:[%s4464_s19 + $0x84] sm:$0xe] }
  0x53   : > { %v2723_v9 = vsel %vm4516_vm5, %v2718_v61, %v2722_v46  ;;  %v4178_v12 = vrot.slane %v4146_v53, 9  ;;  %v2525_v14 = vor.u32 %v2524_v4, %v2521_v63  ;;  %v3145_v15 = vrot.slane %v4147_v59, 5  ;;  %v4150_v53 = vld [vmem:[%s4464_s19 + $0x88] sm:$0xf]  ;;  %v4125_v59 = vld [vmem:[%s4464_s19 + $0x24] sm:$0xe] }
  0x54   : > { %2383 = vrot.lane.b32.xlu0 %v4342_v54, %s4417_s25  ;;  %v2728_v13 = vrot.slane %v2727_v3, 4  ;;  %v3148_v16 = vrot.slane %v4148_v1, 5  ;;  %2942 = vrot.lane.b32.xlu1 %v4114_v44, %s4418_s26  ;;  %v2534_v18 = vrot.slane %v2532_v10, 4  ;;  %v2540_v19 = vrot.slane %v2538_v11, 5  ;;  %v4151_v54 = vld [vmem:[%s4464_s19 + $0x8c] sm:$0x1] }
  0x55   : > { %v4170_v20 = vrot.slane %v4122_v7, 9  ;;  %v3089_v21 = vrot.slane %v4123_v8, 5  ;;  %v2526_v24 = vrot.slane %v2525_v14, 4  ;;  %v3146_v25 = vsel %vm4466_vm2, %v4178_v12, %v3145_v15  ;;  %v4126_v1 = vld [vmem:[%s4464_s19 + $0x28] sm:$0xf] }
  0x56   : > { %v2733_v23 = vsel %vm4516_vm5, %v2728_v13, %v2732_v62  ;;  %v3147_v26 = vrot.slane %v3145_v15, 4  ;;  %v2535_v29 = vor.u32 %v2534_v18, %v2530_v6  ;;  %v3092_v35 = vrot.slane %v4124_v17, 5  ;;  %v4127_v7 = vld [vmem:[%s4464_s19 + $0x2c] sm:$0x1]  ;;  %v379_v12 = vld [vmem:[%s4464_s19 + $0x84] sm:$0xf] }
  0x57   : > { %v4115_v28 = vcombine.low %v2723_v9, %v2733_v23  ;;  %v3090_v30 = vsel %vm4466_vm2, %v4170_v20, %v3089_v21  ;;  %v3091_v31 = vrot.slane %v3089_v21, 4  ;;  %v2531_v33 = vsel %vm4516_vm5, %v2526_v24, %v2530_v6  ;;  %v380_v21 = vld [vmem:[%s4464_s19 + $0x88] sm:$0xf] }
  0x58   : > { %2926 = vrot.lane.b32.xlu0 %v4106_v2, %s4418_s26  ;;  %v3149_v34 = vsel %vm4466_vm2, %v3147_v26, %v3148_v16  ;;  %v638_v36 = vshrl.u32 %v376_v22, 16  ;;  %v2536_v39 = vrot.slane %v2535_v29, 4  ;;  %v641_v41 = vshll.u32 %v376_v22, 16  ;;  %v4359_v22 = vld [vmem:[%s5654_s1] sm:$0xff]  }
  0x59   : > { %2944 = vrot.lane.b32.xlu1 %v4115_v28, %s4418_s26  ;;  %v4194_v40 = vcombine.low %v3146_v25, %v3149_v34  ;;  %v647_v42 = vshll.u32 %v377_v27, 16  ;;  %v3093_v44 = vsel %vm4466_vm2, %v3091_v31, %v3092_v35  ;;  %v651_v46 = vshrl.u32 %v377_v27, 16  ;;  %4248 = vmatprep.subr.bf16.mxu0 %v4359_v22  ;;  %v381_v34 = vld [vmem:[%s4464_s19 + $0x8c] sm:$0x1] }
  0x5a   : > { %v640_v45 = vrot.slane %v638_v36, 4  ;;  %v657_v47 = vshll.u32 %v378_v32, 16  ;;  %v2541_v49 = vsel %vm4516_vm5, %v2536_v39, %v2540_v19  ;;  %v4186_v50 = vcombine.low %v3090_v30, %v3093_v44  ;;  %4290 = vmatprep.subr.bf16.mxu1 %v4359_v22  ;;  %4249 = vmatpush3.bf16.msra.mxu0 %v4359_v22 }
  0x5b   : > { %v643_v51 = vrot.slane %v641_v41, 5  ;;  %v649_v52 = vrot.slane %v647_v42, 5  ;;  %v4107_v55 = vcombine.low %v2531_v33, %v2541_v49  ;;  %v653_v56 = vrot.slane %v651_v46, 4  ;;  %4295 = vmatpush3.bf16.msra.mxu1 %v4359_v22  ;;  %v356_v41 = vld [vmem:[%s4464_s19 + $0x28] sm:$0xf] }
  0x5c   : > { %v659_v57 = vrot.slane %v657_v47, 5  ;;  %v446_v58 = vshrl.u32 %v352_v37, 16  ;;  %v449_v61 = vshll.u32 %v352_v37, 16  ;;  %v455_v62 = vshll.u32 %v353_v38, 16  ;;  %v357_v46 = vld [vmem:[%s4464_s19 + $0x2c] sm:$0x1] }
  0x5d   : > { %3263 = vrot.lane.b32.xlu1 %v4194_v40, %s4419_s27  ;;  %v644_v60 = vor.u32 %v643_v51, %v640_v45  ;;  %v459_v63 = vshrl.u32 %v353_v38, 16  ;;  %2928 = vrot.lane.b32.xlu0 %v4107_v55, %s4418_s26  ;;  %v654_v2 = vor.u32 %v653_v56, %v649_v52  ;;  %v465_v4 = vshll.u32 %v354_v43, 16  ;;  %v355_v40 = vld [vmem:[%s4464_s19 + $0x24] sm:$0xf]  ;;  %v924_v47 = vld [vmem:[%s4464_s19 + $0x78] sm:$0xe] }
  0x5e   : > { %v448_v3 = vrot.slane %v446_v58, 4  ;;  %v4179_v6 = vrot.slane %v4149_v48, 9  ;;  %v451_v9 = vrot.slane %v449_v61, 5  ;;  %v457_v10 = vrot.slane %v455_v62, 5  ;;  %v926_v58 = vld [vmem:[%s4464_s19 + $0x80] sm:$0x1] }
  0x5f   : > { %v645_v8 = vrot.slane %v644_v60, 4  ;;  %v461_v11 = vrot.slane %v459_v63, 4  ;;  %v655_v13 = vrot.slane %v654_v2, 4  ;;  %v467_v14 = vrot.slane %v465_v4, 5  ;;  %v900_v63 = vld [vmem:[%s4464_s19 + $0x18] sm:$0xe] }
  0x60   : > { %v3152_v15 = vrot.slane %v4150_v53, 5  ;;  %v3155_v16 = vrot.slane %v4151_v54, 5  ;;  %v452_v18 = vor.u32 %v451_v9, %v448_v3  ;;  %v4171_v20 = vrot.slane %v4125_v59, 9  ;;  %v4362_v53 = vld [vmem:[%s5654_s1 + $0x8] sm:$0xff]  }
  0x61   : > { %v650_v17 = vsel %vm4516_vm5, %v645_v8, %v649_v52  ;;  %v462_v19 = vor.u32 %v461_v11, %v457_v10  ;;  %3247 = vrot.lane.b32.xlu0 %v4186_v50, %s4419_s27  ;;  %v660_v23 = vsel %vm4516_vm5, %v655_v13, %v659_v57  ;;  %v3096_v26 = vrot.slane %v4126_v1, 5  ;;  %v925_v52 = vld [vmem:[%s4464_s19 + $0x7c] sm:$0xf]  ;;  %4250 = vmatprep.subr.bf16.mxu0 %v4362_v53  ;;  %v902_v11 = vld [vmem:[%s4464_s19 + $0x20] sm:$0x1] }
  0x62   : > { %v3153_v24 = vsel %vm4466_vm2, %v4179_v6, %v3152_v15  ;;  %v3154_v25 = vrot.slane %v3152_v15, 4  ;;  %v3780_v27 = vcombine.low %v650_v17, %v660_v23  ;;  %v453_v28 = vrot.slane %v452_v18, 4  ;;  %v901_v6 = vld [vmem:[%s4464_s19 + $0x1c] sm:$0xf]  ;;  %4291 = vmatprep.subr.bf16.mxu1 %v4362_v53  ;;  %4251 = vmatpush3.bf16.msra.mxu0 %v4362_v53  ;;  %v929_v22 = vld [vmem:[%s4464_s19 + $0x8c] sm:$0x1] }
  0x63   : > { %v463_v29 = vrot.slane %v462_v19, 4  ;;  %v3099_v30 = vrot.slane %v4127_v7, 5  ;;  %v3097_v32 = vsel %vm4466_vm2, %v4171_v20, %v3096_v26  ;;  %v3098_v33 = vrot.slane %v3096_v26, 4  ;;  %4296 = vmatpush3.bf16.msra.mxu1 %v4362_v53 }
  0x64   : > { %v3156_v31 = vsel %vm4466_vm2, %v3154_v25, %v3155_v16  ;;  %v662_v35 = vshrl.u32 %v379_v12, 16  ;;  %849 = vrot.lane.b32.xlu1 %v3780_v27, %s4414_s22  ;;  %v458_v36 = vsel %vm4516_vm5, %v453_v28, %v457_v10  ;;  %v665_v39 = vshll.u32 %v379_v12, 16  ;;  %v927_v16 = vld [vmem:[%s4464_s19 + $0x84] sm:$0xe] }
  0x65   : > { %v468_v37 = vsel %vm4516_vm5, %v463_v29, %v467_v14  ;;  %v4195_v38 = vcombine.low %v3153_v24, %v3156_v31  ;;  %v3100_v43 = vsel %vm4466_vm2, %v3098_v33, %v3099_v30  ;;  %v671_v45 = vshll.u32 %v380_v21, 16  ;;  %v903_v27 = vld [vmem:[%s4464_s19 + $0x24] sm:$0xe]  ;;  %v4367_v33 = vld [vmem:[%s5654_s1 + $0x10] sm:$0xff]  }
  0x66   : > { %v3772_v42 = vcombine.low %v458_v36, %v468_v37  ;;  %v664_v44 = vrot.slane %v662_v35, 4  ;;  %v4187_v48 = vcombine.low %v3097_v32, %v3100_v43  ;;  %v667_v49 = vrot.slane %v665_v39, 5  ;;  %v904_v32 = vld [vmem:[%s4464_s19 + $0x28] sm:$0xf]  ;;  %v3896_v43 = vld [vmem:[%s4464_s19 + $0x84] sm:$0xf]  ;;  %4252 = vmatprep.subr.bf16.mxu0 %v4367_v33  ;;  %4292 = vmatprep.subr.bf16.mxu1 %v4367_v33 }
  0x67   : > { %v675_v50 = vshrl.u32 %v380_v21, 16  ;;  %v681_v51 = vshll.u32 %v381_v34, 16  ;;  %v673_v54 = vrot.slane %v671_v45, 5  ;;  %v470_v55 = vshrl.u32 %v355_v40, 16  ;;  %v928_v21 = vld [vmem:[%s4464_s19 + $0x88] sm:$0xf]  ;;  %4253 = vmatpush3.bf16.msra.mxu0 %v4367_v33  ;;  %4297 = vmatpush3.bf16.msra.mxu1 %v4367_v33 }
  0x68   : > { %833 = vrot.lane.b32.xlu0 %v3772_v42, %s4414_s22  ;;  %v473_v56 = vshll.u32 %v355_v40, 16  ;;  %v479_v57 = vshll.u32 %v356_v41, 16  ;;  %3265 = vrot.lane.b32.xlu1 %v4195_v38, %s4419_s27  ;;  %v668_v59 = vor.u32 %v667_v49, %v664_v44  ;;  %v483_v62 = vshrl.u32 %v356_v41, 16  ;;  %v905_v38 = vld [vmem:[%s4464_s19 + $0x2c] sm:$0x1] }
  0x69   : > { %v677_v60 = vrot.slane %v675_v50, 4  ;;  %v683_v61 = vrot.slane %v681_v51, 5  ;;  %v472_v1 = vrot.slane %v470_v55, 4  ;;  %v489_v4 = vshll.u32 %v357_v46, 16  ;;  %v3897_v44 = vld [vmem:[%s4464_s19 + $0x88] sm:$0xf] }
  0x6a   : > { %v475_v2 = vrot.slane %v473_v56, 5  ;;  %v481_v3 = vrot.slane %v479_v57, 5  ;;  %v669_v7 = vrot.slane %v668_v59, 4  ;;  %v485_v9 = vrot.slane %v483_v62, 4  ;;  %v3898_v49 = vld [vmem:[%s4464_s19 + $0x8c] sm:$0x1] }
  0x6b   : > { %v678_v8 = vor.u32 %v677_v60, %v673_v54  ;;  %v3796_v10 = vrot.slane %v924_v47, 9  ;;  %v491_v13 = vrot.slane %v489_v4, 5  ;;  %v1065_v14 = vrot.slane %v925_v52, 5  ;;  %v4368_v50 = vld [vmem:[%s5654_s1 + $0x18] sm:$0xff]   ;;  %v3872_v55 = vld [vmem:[%s4464_s19 + $0x24] sm:$0xf] }
  0x6c   : > { %3249 = vrot.lane.b32.xlu0 %v4187_v48, %s4419_s27  ;;  %v476_v12 = vor.u32 %v475_v2, %v472_v1  ;;  %v1068_v15 = vrot.slane %v926_v58, 5  ;;  %v674_v17 = vsel %vm4516_vm5, %v669_v7, %v673_v54  ;;  %v486_v19 = vor.u32 %v485_v9, %v481_v3  ;;  %v3873_v56 = vld [vmem:[%s4464_s19 + $0x28] sm:$0xf]  ;;  %4254 = vmatprep.subr.bf16.mxu0 %v4368_v50 }
  0x6d   : > { %v679_v18 = vrot.slane %v678_v8, 4  ;;  %v3788_v20 = vrot.slane %v900_v63, 9  ;;  %v1066_v24 = vsel %vm4466_vm2, %v3796_v10, %v1065_v14  ;;  %v1067_v25 = vrot.slane %v1065_v14, 4  ;;  %4293 = vmatprep.subr.bf16.mxu1 %v4368_v50  ;;  %4255 = vmatpush3.bf16.msra.mxu0 %v4368_v50 }
  0x6e   : > { %v477_v23 = vrot.slane %v476_v12, 4  ;;  %v1009_v26 = vrot.slane %v901_v6, 5  ;;  %v487_v29 = vrot.slane %v486_v19, 4  ;;  %v1012_v30 = vrot.slane %v902_v11, 5  ;;  %4298 = vmatpush3.bf16.msra.mxu1 %v4368_v50 }
  0x6f   : > { %v684_v28 = vsel %vm4516_vm5, %v679_v18, %v683_v61  ;;  %v3797_v31 = vrot.slane %v927_v16, 9  ;;  %v1069_v36 = vsel %vm4466_vm2, %v1067_v25, %v1068_v15  ;;  %v1072_v42 = vrot.slane %v928_v21, 5  ;;  %v3874_v61 = vld [vmem:[%s4464_s19 + $0x2c] sm:$0x1]  ;;  %v3900_v21 = vld [vmem:[%s4464_s19 + $0x94] sm:$0xf] }
  0x70   : > { %v3781_v34 = vcombine.low %v674_v17, %v684_v28  ;;  %v482_v35 = vsel %vm4516_vm5, %v477_v23, %v481_v3  ;;  %v1010_v37 = vsel %vm4466_vm2, %v3788_v20, %v1009_v26  ;;  %v492_v39 = vsel %vm4516_vm5, %v487_v29, %v491_v13  ;;  %v3899_v3 = vld [vmem:[%s4464_s19 + $0x90] sm:$0xf] }
  0x71   : > { %v3812_v40 = vcombine.low %v1066_v24, %v1069_v36  ;;  %v1011_v41 = vrot.slane %v1009_v26, 4  ;;  %v3773_v45 = vcombine.low %v482_v35, %v492_v39  ;;  %v1075_v46 = vrot.slane %v929_v22, 5  ;;  %v4343_v22 = vld [vmem:[%s4464_s19 + $0x84] sm:$0xff]  }
  0x72   : > { %851 = vrot.lane.b32.xlu1 %v3781_v34, %s4414_s22  ;;  %v3789_v47 = vrot.slane %v903_v27, 9  ;;  %v1016_v48 = vrot.slane %v904_v32, 5  ;;  %v1073_v52 = vsel %vm4466_vm2, %v3797_v31, %v1072_v42  ;;  %v1074_v53 = vrot.slane %v1072_v42, 4  ;;  %v3901_v31 = vld [vmem:[%s4464_s19 + $0x98] sm:$0x1]  ;;  %v4344_v32 = vld [vmem:[%s4464_s19 + $0x24] sm:$0xff]  }
  0x73   : > { %v1013_v51 = vsel %vm4466_vm2, %v1011_v41, %v1012_v30  ;;  %v1019_v54 = vrot.slane %v905_v38, 5  ;;  %835 = vrot.lane.b32.xlu0 %v3773_v45, %s4414_s22  ;;  %v1688_v60 = vshrl.u32 %v3896_v43, 16  ;;  %v1691_v63 = vshll.u32 %v3896_v43, 16  ;;  %v3876_v42 = vld [vmem:[%s4464_s19 + $0x34] sm:$0xf] }
  0x74   : > { %v3804_v57 = vcombine.low %v1010_v37, %v1013_v51  ;;  %v1017_v58 = vsel %vm4466_vm2, %v3789_v47, %v1016_v48  ;;  %v1018_v59 = vrot.slane %v1016_v48, 4  ;;  %v1076_v62 = vsel %vm4466_vm2, %v1074_v53, %v1075_v46  ;;  %v3875_v37 = vld [vmem:[%s4464_s19 + $0x30] sm:$0xf] }
  0x75   : > { %v1697_v1 = vshll.u32 %v3897_v44, 16  ;;  %v1701_v2 = vshrl.u32 %v3897_v44, 16  ;;  %v3813_v4 = vcombine.low %v1073_v52, %v1076_v62  ;;  %v1690_v7 = vrot.slane %v1688_v60, 4  ;;  %v4345_v43 = vld [vmem:[%s4464_s19 + $0x90] sm:$0xff]   ;;  %v3877_v52 = vld [vmem:[%s4464_s19 + $0x38] sm:$0x1] }
  0x76   : > { %1173 = vrot.lane.b32.xlu1 %v3812_v40, %s4413_s21  ;;  %v1020_v6 = vsel %vm4466_vm2, %v1018_v59, %v1019_v54  ;;  %v1707_v8 = vshll.u32 %v3898_v49, 16  ;;  %v1693_v10 = vrot.slane %v1691_v63, 5  ;;  %v1496_v14 = vshrl.u32 %v3872_v55, 16  ;;  %v4346_v44 = vld [vmem:[%s4464_s19 + $0x30] sm:$0xff]   ;;  %v3961_v59 = vld [vmem:[%s4464_s19 + $0x88] sm:$0xf] }
  0x77   : > { %v3805_v9 = vcombine.low %v1017_v58, %v1020_v6  ;;  %v1699_v11 = vrot.slane %v1697_v1, 5  ;;  %v1703_v12 = vrot.slane %v1701_v2, 4  ;;  %1157 = vrot.lane.b32.xlu0 %v3804_v57, %s4413_s21  ;;  %v1499_v15 = vshll.u32 %v3872_v55, 16  ;;  %v3960_v58 = vld [vmem:[%s4464_s19 + $0x84] sm:$0xe] }
  0x78   : > { %v1709_v13 = vrot.slane %v1707_v8, 5  ;;  %v1505_v16 = vshll.u32 %v3873_v56, 16  ;;  %v1694_v17 = vor.u32 %v1693_v10, %v1690_v7  ;;  %v1509_v19 = vshrl.u32 %v3873_v56, 16  ;;  %v3962_v1 = vld [vmem:[%s4464_s19 + $0x8c] sm:$0x1] }
  0x79   : > { %v1704_v18 = vor.u32 %v1703_v12, %v1699_v11  ;;  %v1515_v20 = vshll.u32 %v3874_v61, 16  ;;  %v1498_v23 = vrot.slane %v1496_v14, 4  ;;  %v1501_v24 = vrot.slane %v1499_v15, 5  ;;  %v3936_v2 = vld [vmem:[%s4464_s19 + $0x24] sm:$0xe] }
  0x7a   : > { %1175 = vrot.lane.b32.xlu1 %v3813_v4, %s4413_s21  ;;  %v1507_v25 = vrot.slane %v1505_v16, 5  ;;  %v1712_v26 = vshrl.u32 %v3899_v3, 16  ;;  %v1695_v27 = vrot.slane %v1694_v17, 4  ;;  %v1511_v29 = vrot.slane %v1509_v19, 4  ;;  %v3937_v8 = vld [vmem:[%s4464_s19 + $0x28] sm:$0xf] }
  0x7b   : > { %v1705_v28 = vrot.slane %v1704_v18, 4  ;;  %v1517_v30 = vrot.slane %v1515_v20, 5  ;;  %1159 = vrot.lane.b32.xlu0 %v3805_v9, %s4413_s21  ;;  %v1502_v33 = vor.u32 %v1501_v24, %v1498_v23  ;;  %v1715_v35 = vshll.u32 %v3899_v3, 16  ;;  %v3963_v18 = vld [vmem:[%s4464_s19 + $0x90] sm:$0xe] }
  0x7c   : > { %v1714_v34 = vrot.slane %v1712_v26, 4  ;;  %v1721_v36 = vshll.u32 %v3900_v21, 16  ;;  %v1700_v38 = vsel %vm4516_vm5, %v1695_v27, %v1699_v11  ;;  %v1512_v40 = vor.u32 %v1511_v29, %v1507_v25  ;;  %v3964_v19 = vld [vmem:[%s4464_s19 + $0x94] sm:$0xf]  ;;  %v3965_v24 = vld [vmem:[%s4464_s19 + $0x98] sm:$0x1] }
  0x7d   : > { %v1710_v39 = vsel %vm4516_vm5, %v1705_v28, %v1709_v13  ;;  %v1725_v41 = vshrl.u32 %v3900_v21, 16  ;;  %v1503_v46 = vrot.slane %v1502_v33, 4  ;;  %v1717_v47 = vrot.slane %v1715_v35, 5  ;;  %v3938_v13 = vld [vmem:[%s4464_s19 + $0x2c] sm:$0x1] }
  0x7e   : > { %1354 = vrot.lane.b32.xlu1 %v4343_v22, %s4412_s20  ;;  %v3924_v45 = vcombine.low %v1700_v38, %v1710_v39  ;;  %v1723_v48 = vrot.slane %v1721_v36, 5  ;;  %v1513_v49 = vrot.slane %v1512_v40, 4  ;;  %v1731_v51 = vshll.u32 %v3901_v31, 16  ;;  %v3939_v29 = vld [vmem:[%s4464_s19 + $0x30] sm:$0xe] }
  0x7f   : > { %v1727_v50 = vrot.slane %v1725_v41, 4  ;;  %v1520_v53 = vshrl.u32 %v3875_v37, 16  ;;  %1338 = vrot.lane.b32.xlu0 %v4344_v32, %s4412_s20  ;;  %v1508_v54 = vsel %vm4516_vm5, %v1503_v46, %v1507_v25  ;;  %v1718_v55 = vor.u32 %v1717_v47, %v1714_v34  ;;  %v3940_v34 = vld [vmem:[%s4464_s19 + $0x34] sm:$0xf]  ;;  %v3941_v39 = vld [vmem:[%s4464_s19 + $0x38] sm:$0x1] }
  0x80   : > { %v1523_v56 = vshll.u32 %v3875_v37, 16  ;;  %v1529_v57 = vshll.u32 %v3876_v42, 16  ;;  %v1518_v60 = vsel %vm4516_vm5, %v1513_v49, %v1517_v30  ;;  %v1733_v62 = vrot.slane %v1731_v51, 5  ;;  %v4088_v40 = vld [vmem:[%s4464_s19 + $0x90] sm:$0xf] }
  0x81   : > { %v1728_v61 = vor.u32 %v1727_v50, %v1723_v48  ;;  %v1522_v63 = vrot.slane %v1520_v53, 4  ;;  %v3916_v3 = vcombine.low %v1508_v54, %v1518_v60  ;;  %v1719_v4 = vrot.slane %v1718_v55, 4  ;;  %v4090_v46 = vld [vmem:[%s4464_s19 + $0x98] sm:$0x1]  ;;  %v4064_v47 = vld [vmem:[%s4464_s19 + $0x30] sm:$0xf] }
  0x82   : > { %1356 = vrot.lane.b32.xlu1 %v4345_v43, %s4412_s20  ;;  %v1525_v6 = vrot.slane %v1523_v56, 5  ;;  %v1531_v7 = vrot.slane %v1529_v57, 5  ;;  %v1533_v10 = vshrl.u32 %v3876_v42, 16  ;;  %v1539_v11 = vshll.u32 %v3877_v52, 16 }
  0x83   : > { %v1729_v9 = vrot.slane %v1728_v61, 4  ;;  %v3988_v12 = vrot.slane %v3960_v58, 9  ;;  %1340 = vrot.lane.b32.xlu0 %v4346_v44, %s4412_s20  ;;  %v1724_v14 = vsel %vm4516_vm5, %v1719_v4, %v1723_v48  ;;  %v2112_v16 = vrot.slane %v3961_v59, 5  ;;  %v4065_v61 = vld [vmem:[%s4464_s19 + $0x34] sm:$0xf] }
  0x84   : > { %v1526_v15 = vor.u32 %v1525_v6, %v1522_v63  ;;  %v2115_v17 = vrot.slane %v3962_v1, 5  ;;  %v1535_v21 = vrot.slane %v1533_v10, 4  ;;  %v1541_v22 = vrot.slane %v1539_v11, 5 }
  0x85   : > { %v1734_v20 = vsel %vm4516_vm5, %v1729_v9, %v1733_v62  ;;  %v3980_v23 = vrot.slane %v3936_v2, 9  ;;  %v2113_v27 = vsel %vm4466_vm2, %v3988_v12, %v2112_v16  ;;  %v2114_v28 = vrot.slane %v2112_v16, 4  ;;  %v4818_v48 = vpop.permute.xlu1 %1350 }
  0x86   : > { %1899 = vrot.lane.b32.xlu1 %v3924_v45, %s4415_s23  ;;  %v3925_v25 = vcombine.low %v1724_v14, %v1734_v20  ;;  %v1527_v26 = vrot.slane %v1526_v15, 4  ;;  %v1536_v30 = vor.u32 %v1535_v21, %v1531_v7  ;;  %v2056_v31 = vrot.slane %v3937_v8, 5  ;;  %v4089_v45 = vld [vmem:[%s4464_s19 + $0x94] sm:$0xf]  ;;  %v4091_v14 = vld [vmem:[%s4464_s19 + $0x9c] sm:$0xf] }
  0x87   : > { %v2059_v32 = vrot.slane %v3938_v13, 5  ;;  %v3989_v33 = vrot.slane %v3963_v18, 9  ;;  %1883 = vrot.lane.b32.xlu0 %v3916_v3, %s4415_s23  ;;  %v2116_v36 = vsel %vm4466_vm2, %v2114_v28, %v2115_v17  ;;  %v2119_v37 = vrot.slane %v3964_v19, 5  ;;  %v4837_v13 = vpop.permute.xlu0 %1334  ;;  %v4092_v20 = vld [vmem:[%s4464_s19 + $0xa0] sm:$0xf] }
  0x88   : > { %v1532_v35 = vsel %vm4516_vm5, %v1527_v26, %v1531_v7  ;;  %v2122_v38 = vrot.slane %v3965_v24, 5  ;;  %v1537_v41 = vrot.slane %v1536_v30, 4  ;;  %v4004_v42 = vcombine.low %v2113_v27, %v2116_v36  ;;  %v4066_v7 = vld [vmem:[%s4464_s19 + $0x38] sm:$0x1]  ;;  %v4347_v26 = vld [vmem:[%s4464_s19 + $0x90] sm:$0xff]  }
  0x89   : > { %v2057_v43 = vsel %vm4466_vm2, %v3980_v23, %v2056_v31  ;;  %v2058_v44 = vrot.slane %v2056_v31, 4  ;;  %v2120_v49 = vsel %vm4466_vm2, %v3989_v33, %v2119_v37  ;;  %v2121_v50 = vrot.slane %v2119_v37, 4  ;;  %v4067_v31 = vld [vmem:[%s4464_s19 + $0x3c] sm:$0xf] }
  0x8a   : > { %1901 = vrot.lane.b32.xlu1 %v3925_v25, %s4415_s23  ;;  %v3981_v51 = vrot.slane %v3939_v29, 9  ;;  %v2063_v52 = vrot.slane %v3940_v34, 5  ;;  %v1542_v53 = vsel %vm4516_vm5, %v1537_v41, %v1541_v22  ;;  %v2066_v55 = vrot.slane %v3941_v39, 5  ;;  %v4093_v25 = vld [vmem:[%s4464_s19 + $0xa4] sm:$0x1] }
  0x8b   : > { %v2060_v54 = vsel %vm4466_vm2, %v2058_v44, %v2059_v32  ;;  %v2735_v56 = vshrl.u32 %v4088_v40, 16  ;;  %v3917_v57 = vcombine.low %v1532_v35, %v1542_v53  ;;  %v2123_v59 = vsel %vm4466_vm2, %v2121_v50, %v2122_v38  ;;  %v4068_v53 = vld [vmem:[%s4464_s19 + $0x40] sm:$0xf] }
  0x8c   : > { %v3996_v58 = vcombine.low %v2057_v43, %v2060_v54  ;;  %v2064_v60 = vsel %vm4466_vm2, %v3981_v51, %v2063_v52  ;;  %v4005_v62 = vcombine.low %v2120_v49, %v2123_v59  ;;  %v2065_v63 = vrot.slane %v2063_v52, 4  ;;  %v4840_v15 = vpop.permute.xlu1 %1169  ;;  %v4350_v59 = vld [vmem:[%s4464_s19 + $0x3c] sm:$0xff]  }
  0x8d   : > { %v2737_v1 = vrot.slane %v2735_v56, 4  ;;  %v2738_v2 = vshll.u32 %v4088_v40, 16  ;;  %1885 = vrot.lane.b32.xlu0 %v3917_v57, %s4415_s23  ;;  %v2744_v3 = vshll.u32 %v4089_v45, 16  ;;  %v2748_v4 = vshrl.u32 %v4089_v45, 16  ;;  %v4348_v40 = vld [vmem:[%s4464_s19 + $0x30] sm:$0xff]  }
  0x8e   : > { %2220 = vrot.lane.b32.xlu1 %v4004_v42, %s4416_s24  ;;  %v2754_v6 = vshll.u32 %v4090_v46, 16  ;;  %v2543_v8 = vshrl.u32 %v4064_v47, 16  ;;  %v2067_v9 = vsel %vm4466_vm2, %v2065_v63, %v2066_v55  ;;  %v2546_v11 = vshll.u32 %v4064_v47, 16  ;;  %v4851_v45 = vpop.permute.xlu0 %1153  ;;  %v4349_v47 = vld [vmem:[%s4464_s19 + $0x9c] sm:$0xff]   ;;  %v4069_v57 = vld [vmem:[%s4464_s19 + $0x44] sm:$0x1] }
  0x8f   : > { %v2740_v10 = vrot.slane %v2738_v2, 5  ;;  %v2552_v12 = vshll.u32 %v4065_v61, 16  ;;  %v3997_v16 = vcombine.low %v2064_v60, %v2067_v9  ;;  %v2746_v17 = vrot.slane %v2744_v3, 5 }
  0x90   : > { %v2750_v18 = vrot.slane %v2748_v4, 4  ;;  %v2756_v19 = vrot.slane %v2754_v6, 5  ;;  %v2545_v22 = vrot.slane %v2543_v8, 4  ;;  %v2548_v23 = vrot.slane %v2546_v11, 5 }
  0x91   : > { %v2741_v21 = vor.u32 %v2740_v10, %v2737_v1  ;;  %v2554_v24 = vrot.slane %v2552_v12, 5  ;;  %2204 = vrot.lane.b32.xlu0 %v3996_v58, %s4416_s24  ;;  %v2556_v28 = vshrl.u32 %v4065_v61, 16  ;;  %v2562_v29 = vshll.u32 %v4066_v7, 16  ;;  %v4853_v46 = vpop.permute.xlu1 %1171  ;;  %v4152_v1 = vld [vmem:[%s4464_s19 + $0x90] sm:$0xe] }
  0x92   : > { %2222 = vrot.lane.b32.xlu1 %v4005_v62, %s4416_s24  ;;  %v2751_v27 = vor.u32 %v2750_v18, %v2746_v17  ;;  %v2759_v30 = vshrl.u32 %v4091_v14, 16  ;;  %v2549_v33 = vor.u32 %v2548_v23, %v2545_v22  ;;  %v2762_v34 = vshll.u32 %v4091_v14, 16  ;;  %v4153_v7 = vld [vmem:[%s4464_s19 + $0x94] sm:$0xf]  ;;  %v4154_v12 = vld [vmem:[%s4464_s19 + $0x98] sm:$0x1]  ;;  %v4877_v22 = vpop.permute.xlu0 %1155 }
  0x93   : > { %v2742_v32 = vrot.slane %v2741_v21, 4  ;;  %v2768_v35 = vshll.u32 %v4092_v20, 16  ;;  %v2558_v37 = vrot.slane %v2556_v28, 4  ;;  %v2564_v38 = vrot.slane %v2562_v29, 5  ;;  %v4128_v14 = vld [vmem:[%s4464_s19 + $0x30] sm:$0xe] }
  0x94   : > { %v2752_v36 = vrot.slane %v2751_v27, 4  ;;  %v2761_v39 = vrot.slane %v2759_v30, 4  ;;  %v2550_v42 = vrot.slane %v2549_v33, 4  ;;  %v2764_v43 = vrot.slane %v2762_v34, 5  ;;  %v4130_v21 = vld [vmem:[%s4464_s19 + $0x38] sm:$0x1] }
  0x95   : > { %v2747_v41 = vsel %vm4516_vm5, %v2742_v32, %v2746_v17  ;;  %v2770_v44 = vrot.slane %v2768_v35, 5  ;;  %2206 = vrot.lane.b32.xlu0 %v3997_v16, %s4416_s24  ;;  %v2559_v50 = vor.u32 %v2558_v37, %v2554_v24  ;;  %v2772_v51 = vshrl.u32 %v4092_v20, 16  ;;  %v4129_v20 = vld [vmem:[%s4464_s19 + $0x34] sm:$0xf]  ;;  %v382_v32 = vld [vmem:[%s4464_s19 + $0x90] sm:$0xf] }
  0x96   : > { %2401 = vrot.lane.b32.xlu1 %v4347_v26, %s4417_s25  ;;  %v2757_v49 = vsel %vm4516_vm5, %v2752_v36, %v2756_v19  ;;  %v2778_v52 = vshll.u32 %v4093_v25, 16  ;;  %v2555_v55 = vsel %vm4516_vm5, %v2550_v42, %v2554_v24  ;;  %v2765_v56 = vor.u32 %v2764_v43, %v2761_v39  ;;  %v383_v37 = vld [vmem:[%s4464_s19 + $0x94] sm:$0xf]  ;;  %v384_v42 = vld [vmem:[%s4464_s19 + $0x98] sm:$0x1] }
  0x97   : > { %v4116_v54 = vcombine.low %v2747_v41, %v2757_v49  ;;  %v2567_v58 = vshrl.u32 %v4067_v31, 16  ;;  %v2560_v60 = vrot.slane %v2559_v50, 4  ;;  %v2774_v61 = vrot.slane %v2772_v51, 4  ;;  %v358_v43 = vld [vmem:[%s4464_s19 + $0x30] sm:$0xf] }
  0x98   : > { %v2780_v62 = vrot.slane %v2778_v52, 5  ;;  %v2570_v63 = vshll.u32 %v4067_v31, 16  ;;  %v2766_v2 = vrot.slane %v2765_v56, 4  ;;  %v2576_v4 = vshll.u32 %v4068_v53, 16  ;;  %v359_v51 = vld [vmem:[%s4464_s19 + $0x34] sm:$0xf] }
  0x99   : > { %v2569_v3 = vrot.slane %v2567_v58, 4  ;;  %v2580_v6 = vshrl.u32 %v4068_v53, 16  ;;  %2385 = vrot.lane.b32.xlu0 %v4348_v40, %s4417_s25  ;;  %v2565_v8 = vsel %vm4516_vm5, %v2560_v60, %v2564_v38  ;;  %v2775_v9 = vor.u32 %v2774_v61, %v2770_v44  ;;  %v4879_v23 = vpop.permute.xlu1 %831  ;;  %v360_v52 = vld [vmem:[%s4464_s19 + $0x38] sm:$0x1] }
  0x9a   : > { %2403 = vrot.lane.b32.xlu1 %v4349_v47, %s4417_s25  ;;  %v2572_v10 = vrot.slane %v2570_v63, 5  ;;  %v2586_v11 = vshll.u32 %v4069_v57, 16  ;;  %v4108_v16 = vcombine.low %v2555_v55, %v2565_v8  ;;  %v2771_v17 = vsel %vm4516_vm5, %v2766_v2, %v2770_v44  ;;  %v4354_v8 = vld [vmem:[%s4464_s19 + $0x60] sm:$0xff]  }
  0x9b   : > { %v2578_v18 = vrot.slane %v2576_v4, 5  ;;  %v2582_v19 = vrot.slane %v2580_v6, 4  ;;  %v2776_v24 = vrot.slane %v2775_v9, 4  ;;  %v4180_v27 = vrot.slane %v4152_v1, 9  ;;  %v4351_v4 = vld [vmem:[%s4464_s19 + $0xc] sm:$0xff]   ;;  %v4352_v6 = vld [vmem:[%s4464_s19] sm:$0xff]  }
  0x9c   : > { %v2573_v25 = vor.u32 %v2572_v10, %v2569_v3  ;;  %v2588_v26 = vrot.slane %v2586_v11, 5  ;;  %v3159_v29 = vrot.slane %v4153_v7, 5  ;;  %v3162_v30 = vrot.slane %v4154_v12, 5  ;;  %v4903_v57 = vpop.permute.xlu0 %829  ;;  %v4353_v7 = vld [vmem:[%s4464_s19 + $0x6c] sm:$0xff]   ;;  %v4365_v9 = vld [vmem:[%s4464_s19 + $0x78] sm:$0xff]   ;;  %v4369_v11 = vld [vmem:[%s4464_s19 + $0x84] sm:$0xff]  }
  0x9d   : > { %v2583_v28 = vor.u32 %v2582_v19, %v2578_v18  ;;  %v4172_v31 = vrot.slane %v4128_v14, 9  ;;  %2387 = vrot.lane.b32.xlu0 %v4350_v59, %s4417_s25  ;;  %v2781_v33 = vsel %vm4516_vm5, %v2776_v24, %v2780_v62  ;;  %v3103_v35 = vrot.slane %v4129_v20, 5  ;;  %v4366_v10 = vld [vmem:[%s4464_s19 + $0x18] sm:$0xff]   ;;  %331 = vst.msk [vmem:[#allocation2 + $0x8] sm:$0xff] %vm329_vm6, %v4351_v4  ;;  %330 = vst.msk [vmem:[#allocation2] sm:$0xff] %vm329_vm6, %v4352_v6 }
  0x9e   : > { %2946 = vrot.lane.b32.xlu1 %v4116_v54, %s4418_s26  ;;  %v2574_v34 = vrot.slane %v2573_v25, 4  ;;  %v3106_v36 = vrot.slane %v4130_v21, 5  ;;  %v4117_v38 = vcombine.low %v2771_v17, %v2781_v33  ;;  %v3160_v40 = vsel %vm4466_vm2, %v4180_v27, %v3159_v29  ;;  %v4156_v25 = vld [vmem:[%s4464_s19 + $0xa0] sm:$0xf]  ;;  %v4131_v27 = vld [vmem:[%s4464_s19 + $0x3c] sm:$0xe] }
  0x9f   : > { %v2584_v39 = vrot.slane %v2583_v28, 4  ;;  %v3161_v41 = vrot.slane %v3159_v29, 4  ;;  %v4895_v47 = vsel %vm4466_vm2, %v4172_v31, %v3103_v35  ;;  %v3105_v49 = vrot.slane %v3103_v35, 4  ;;  %v4370_v28 = vld [vmem:[%s4464_s19 + $0x24] sm:$0xff]   ;;  %339 = vst.msk [vmem:[#allocation2 + $0x48] sm:$0xff] %vm329_vm6, %v4353_v7  ;;  %338 = vst.msk [vmem:[#allocation2 + $0x40] sm:$0xff] %vm329_vm6, %v4354_v8 }
  0xa0   : > { %v2579_v44 = vsel %vm4516_vm5, %v2574_v34, %v2578_v18  ;;  %v686_v50 = vshrl.u32 %v382_v32, 16  ;;  %v689_v55 = vshll.u32 %v382_v32, 16  ;;  %v695_v56 = vshll.u32 %v383_v37, 16  ;;  %v4922_v18 = vld [vmem:[%s4464_s19 + $0x9c] sm:$0xe]  ;;  %340 = vst.msk [vmem:[#allocation2 + $0x50] sm:$0xff] %vm329_vm6, %v4365_v9 }
  0xa1   : > { %v2589_v53 = vsel %vm4516_vm5, %v2584_v39, %v2588_v26  ;;  %v3163_v54 = vsel %vm4466_vm2, %v3161_v41, %v3162_v30  ;;  %v4905_v58 = vpop.permute.xlu1 %847  ;;  %2930 = vrot.lane.b32.xlu0 %v4108_v16, %s4418_s26  ;;  %v3107_v61 = vsel %vm4466_vm2, %v3105_v49, %v3106_v36  ;;  %v699_v3 = vshrl.u32 %v383_v37, 16  ;;  %v4926_v26 = vld [vmem:[%s4464_s19 + $0xa4] sm:$0x1]  ;;  %v4132_v37 = vld [vmem:[%s4464_s19 + $0x40] sm:$0xf]  ;;  %332 = vst.msk [vmem:[#allocation2 + $0x10] sm:$0xff] %vm329_vm6, %v4366_v10 }
  0xa2   : > { %2948 = vrot.lane.b32.xlu1 %v4117_v38, %s4418_s26  ;;  %v4109_v59 = vcombine.low %v2579_v44, %v2589_v53  ;;  %v4196_v60 = vcombine.low %v3160_v40, %v3163_v54  ;;  %v688_v62 = vrot.slane %v686_v50, 4  ;;  %v4188_v63 = vcombine.low %v4895_v47, %v3107_v61  ;;  %v4133_v41 = vld [vmem:[%s4464_s19 + $0x44] sm:$0x1]  ;;  %341 = vst.msk [vmem:[#allocation2 + $0x58] sm:$0xff] %vm329_vm6, %v4369_v11  ;;  %v385_v53 = vld [vmem:[%s4464_s19 + $0x9c] sm:$0xf] }
  0xa3   : > { %v691_v1 = vrot.slane %v689_v55, 5  ;;  %v4912_v2 = vrot.slane %v695_v56, 5  ;;  %v705_v12 = vshll.u32 %v384_v42, 16  ;;  %v494_v14 = vshrl.u32 %v358_v43, 16  ;;  %333 = vst.msk [vmem:[#allocation2 + $0x18] sm:$0xff] %vm329_vm6, %v4370_v28 }
  0xa4   : > { %v497_v16 = vshll.u32 %v358_v43, 16  ;;  %v503_v17 = vshll.u32 %v359_v51, 16  ;;  %v701_v20 = vrot.slane %v699_v3, 4  ;;  %v507_v21 = vshrl.u32 %v359_v51, 16  ;;  %879 = vst.msk [vmem:[#allocation2 + $0x8] sm:$0xff] %vm877_vm7, %v4879_v23  ;;  %878 = vst.msk [vmem:[#allocation2] sm:$0xff] %vm877_vm7, %v4903_v57 }
  0xa5   : > { %v692_v19 = vor.u32 %v691_v1, %v688_v62  ;;  %v513_v24 = vshll.u32 %v360_v52, 16  ;;  %2932 = vrot.lane.b32.xlu0 %v4109_v59, %s4418_s26  ;;  %v707_v29 = vrot.slane %v705_v12, 5  ;;  %v496_v30 = vrot.slane %v494_v14, 4  ;;  %v4934_v39 = vpop.permute.xlu1 %1352  ;;  %887 = vst.msk [vmem:[#allocation2 + $0x48] sm:$0xff] %vm877_vm7, %v4905_v58  ;;  %v386_v57 = vld [vmem:[%s4464_s19 + $0xa0] sm:$0xf] }
  0xa6   : > { %3267 = vrot.lane.b32.xlu1 %v4196_v60, %s4419_s27  ;;  %v499_v31 = vrot.slane %v497_v16, 5  ;;  %v505_v32 = vrot.slane %v503_v17, 5  ;;  %v702_v34 = vor.u32 %v701_v20, %v4912_v2  ;;  %v509_v35 = vrot.slane %v507_v21, 4  ;;  %v846_v38 = vpop.permute.xlu0 %845  ;;  %1202 = vst.msk [vmem:[#allocation2] sm:$0xff] %vm1201_vm8, %v4851_v45  ;;  %1203 = vst.msk [vmem:[#allocation2 + $0x8] sm:$0xff] %vm1201_vm8, %v4877_v22 }
  0xa7   : > { %v693_v33 = vrot.slane %v692_v19, 4  ;;  %v515_v36 = vrot.slane %v513_v24, 5  ;;  %v4181_v47 = vrot.slane %v4922_v18, 9  ;;  %v3166_v50 = vrot.slane %v4156_v25, 5  ;;  %886 = vst.msk [vmem:[#allocation2 + $0x40] sm:$0xff] %vm877_vm7, %v846_v38 }
  0xa8   : > { %v500_v40 = vor.u32 %v499_v31, %v496_v30  ;;  %v703_v43 = vrot.slane %v702_v34, 4  ;;  %v510_v44 = vor.u32 %v509_v35, %v505_v32  ;;  %v3169_v51 = vrot.slane %v4926_v26, 5  ;;  %1211 = vst.msk [vmem:[#allocation2 + $0x48] sm:$0xff] %vm1201_vm8, %v4853_v46  ;;  %1210 = vst.msk [vmem:[#allocation2 + $0x40] sm:$0xff] %vm1201_vm8, %v4840_v15  ;;  %v387_v62 = vld [vmem:[%s4464_s19 + $0xa4] sm:$0x1] }
  0xa9   : > { %v698_v42 = vsel %vm4516_vm5, %v693_v33, %v4912_v2  ;;  %3251 = vrot.lane.b32.xlu0 %v4188_v63, %s4419_s27  ;;  %v4173_v52 = vrot.slane %v4131_v27, 9  ;;  %v3110_v23 = vrot.slane %v4132_v37, 5  ;;  %v3113_v56 = vrot.slane %v4133_v41, 5  ;;  %v361_v7 = vld [vmem:[%s4464_s19 + $0x3c] sm:$0xf]  ;;  %1392 = vst.msk [vmem:[#allocation2 + $0x48] sm:$0xff] %vm1382_vm9, %v4934_v39 }
  0xaa   : > { %v501_v49 = vrot.slane %v500_v40, 4  ;;  %v708_v54 = vsel %vm4516_vm5, %v703_v43, %v707_v29  ;;  %v511_v55 = vrot.slane %v510_v44, 4  ;;  %v1337_v58 = vpop.permute.xlu0 %1336  ;;  %v3167_v45 = vsel %vm4466_vm2, %v4181_v47, %v3166_v50  ;;  %v4979_v1 = vpop.permute.xlu1 %1895  ;;  %v362_v8 = vld [vmem:[%s4464_s19 + $0x40] sm:$0xf]  ;;  %v363_v14 = vld [vmem:[%s4464_s19 + $0x44] sm:$0x1] }
  0xab   : > { %v3782_v59 = vcombine.low %v698_v42, %v708_v54  ;;  %v3168_v22 = vrot.slane %v3166_v50, 4  ;;  %v3111_v46 = vsel %vm4466_vm2, %v4173_v52, %v3110_v23  ;;  %v3112_v15 = vrot.slane %v3110_v23, 4  ;;  %v930_v20 = vld [vmem:[%s4464_s19 + $0x90] sm:$0xe]  ;;  %v931_v21 = vld [vmem:[%s4464_s19 + $0x94] sm:$0xf] }
  0xac   : > { %v506_v60 = vsel %vm4516_vm5, %v501_v49, %v505_v32  ;;  %v516_v61 = vsel %vm4516_vm5, %v511_v55, %v515_v36  ;;  %v710_v63 = vshrl.u32 %v385_v53, 16  ;;  %v713_v4 = vshll.u32 %v385_v53, 16  ;;  %v932_v29 = vld [vmem:[%s4464_s19 + $0x98] sm:$0x1]  ;;  %v906_v34 = vld [vmem:[%s4464_s19 + $0x30] sm:$0xe] }
  0xad   : > { %853 = vrot.lane.b32.xlu1 %v3782_v59, %s4414_s22  ;;  %v3774_v2 = vcombine.low %v506_v60, %v516_v61  ;;  %v3170_v3 = vsel %vm4466_vm2, %v3168_v22, %v3169_v51  ;;  %v719_v6 = vshll.u32 %v386_v57, 16  ;;  %v3114_v10 = vsel %vm4466_vm2, %v3112_v15, %v3113_v56  ;;  %v907_v40 = vld [vmem:[%s4464_s19 + $0x34] sm:$0xf]  ;;  %v908_v49 = vld [vmem:[%s4464_s19 + $0x38] sm:$0x1]  ;;  %1383 = vst.msk [vmem:[#allocation2] sm:$0xff] %vm1382_vm9, %v4837_v13 }
  0xae   : > { %v4197_v9 = vcombine.low %v3167_v45, %v3170_v3  ;;  %v712_v11 = vrot.slane %v710_v63, 4  ;;  %v723_v12 = vshrl.u32 %v386_v57, 16  ;;  %v4189_v16 = vcombine.low %v3111_v46, %v3114_v10  ;;  %v4992_v24 = vpop.permute.xlu0 %1879  ;;  %v4380_v42 = vld [vmem:[%s4464_s19 + $0x90] sm:$0xff]   ;;  %1391 = vst.msk [vmem:[#allocation2 + $0x40] sm:$0xff] %vm1382_vm9, %v4818_v48  ;;  %1384 = vst.msk [vmem:[#allocation2 + $0x8] sm:$0xff] %vm1382_vm9, %v1337_v58 }
  0xaf   : > { %837 = vrot.lane.b32.xlu0 %v3774_v2, %s4414_s22  ;;  %v715_v17 = vrot.slane %v713_v4, 5  ;;  %v721_v18 = vrot.slane %v719_v6, 5  ;;  %v729_v19 = vshll.u32 %v387_v62, 16  ;;  %v518_v26 = vshrl.u32 %v361_v7, 16  ;;  %v933_v54 = vld [vmem:[%s4464_s19 + $0x9c] sm:$0xe] }
  0xb0   : > { %v725_v25 = vrot.slane %v723_v12, 4  ;;  %v521_v27 = vshll.u32 %v361_v7, 16  ;;  %v527_v28 = vshll.u32 %v362_v8, 16  ;;  %v531_v32 = vshrl.u32 %v362_v8, 16  ;;  %342 = vst.msk [vmem:[#allocation2 + $0x60] sm:$0xff] %vm329_vm6, %v4380_v42  ;;  %v4381_v55 = vld [vmem:[%s4464_s19 + $0x30] sm:$0xff]  }
  0xb1   : > { %3269 = vrot.lane.b32.xlu1 %v4197_v9, %s4419_s27  ;;  %v716_v30 = vor.u32 %v715_v17, %v712_v11  ;;  %v731_v31 = vrot.slane %v729_v19, 5  ;;  %v537_v33 = vshll.u32 %v363_v14, 16  ;;  %v520_v36 = vrot.slane %v518_v26, 4  ;;  %v934_v13 = vld [vmem:[%s4464_s19 + $0xa0] sm:$0xf]  ;;  %334 = vst.msk [vmem:[#allocation2 + $0x20] sm:$0xff] %vm329_vm6, %v4381_v55 }
  0xb2   : > { %v726_v35 = vor.u32 %v725_v25, %v721_v18  ;;  %v523_v37 = vrot.slane %v521_v27, 5  ;;  %v529_v38 = vrot.slane %v527_v28, 5  ;;  %v1898_v41 = vpop.permute.xlu1 %1897  ;;  %v533_v44 = vrot.slane %v531_v32, 4  ;;  %v5015_v59 = vld [vmem:[%s4464_s19 + $0xa4] sm:$0x1]  ;;  %1936 = vst.msk [vmem:[#allocation2 + $0x40] sm:$0xff] %vm1927_vm10, %v4979_v1 }
  0xb3   : > { %3253 = vrot.lane.b32.xlu0 %v4189_v16, %s4419_s27  ;;  %v717_v43 = vrot.slane %v716_v30, 4  ;;  %v539_v47 = vrot.slane %v537_v33, 5  ;;  %v3798_v52 = vrot.slane %v930_v20, 9  ;;  %v1079_v53 = vrot.slane %v931_v21, 5  ;;  %v909_v48 = vld [vmem:[%s4464_s19 + $0x3c] sm:$0xe] }
  0xb4   : > { %v727_v50 = vrot.slane %v726_v35, 4  ;;  %v524_v51 = vor.u32 %v523_v37, %v520_v36  ;;  %v534_v39 = vor.u32 %v533_v44, %v529_v38  ;;  %v1082_v56 = vrot.slane %v932_v29, 5  ;;  %v910_v46 = vld [vmem:[%s4464_s19 + $0x40] sm:$0xf]  ;;  %v911_v15 = vld [vmem:[%s4464_s19 + $0x44] sm:$0x1] }
  0xb5   : > { %v722_v23 = vsel %vm4516_vm5, %v717_v43, %v721_v18  ;;  %v3790_v57 = vrot.slane %v906_v34, 9  ;;  %v1080_v22 = vsel %vm4466_vm2, %v3798_v52, %v1079_v53  ;;  %v1081_v61 = vrot.slane %v1079_v53, 4  ;;  %v3902_v6 = vld [vmem:[%s4464_s19 + $0x9c] sm:$0xf]  ;;  %v3903_v10 = vld [vmem:[%s4464_s19 + $0xa0] sm:$0xf] }
  0xb6   : > { %v1882_v58 = vpop.permute.xlu0 %1881  ;;  %v732_v60 = vsel %vm4516_vm5, %v727_v50, %v731_v31  ;;  %v525_v45 = vrot.slane %v524_v51, 4  ;;  %v2217_v62 = vpop.permute.xlu1 %2216  ;;  %v535_v2 = vrot.slane %v534_v39, 4  ;;  %v1023_v3 = vrot.slane %v907_v40, 5  ;;  %1928 = vst.msk [vmem:[#allocation2] sm:$0xff] %vm1927_vm10, %v4992_v24  ;;  %1937 = vst.msk [vmem:[#allocation2 + $0x48] sm:$0xff] %vm1927_vm10, %v1898_v41  ;;  %v4382_v19 = vld [vmem:[%s4464_s19 + $0x9c] sm:$0xff]  }
  0xb7   : > { %v3783_v63 = vcombine.low %v722_v23, %v732_v60  ;;  %v1026_v4 = vrot.slane %v908_v49, 5  ;;  %v1083_v8 = vsel %vm4466_vm2, %v1081_v61, %v1082_v56  ;;  %v3799_v9 = vrot.slane %v933_v54, 9  ;;  %1929 = vst.msk [vmem:[#allocation2 + $0x8] sm:$0xff] %vm1927_vm10, %v1882_v58  ;;  %v3904_v18 = vld [vmem:[%s4464_s19 + $0xa4] sm:$0x1]  ;;  %v4383_v28 = vld [vmem:[%s4464_s19 + $0x3c] sm:$0xff]  }
  0xb8   : > { %v530_v7 = vsel %vm4516_vm5, %v525_v45, %v529_v38  ;;  %v540_v11 = vsel %vm4516_vm5, %v535_v2, %v539_v47  ;;  %v3814_v12 = vcombine.low %v1080_v22, %v1083_v8  ;;  %v1024_v14 = vsel %vm4466_vm2, %v3790_v57, %v1023_v3  ;;  %v3878_v30 = vld [vmem:[%s4464_s19 + $0x3c] sm:$0xf]  ;;  %343 = vst.msk [vmem:[#allocation2 + $0x68] sm:$0xff] %vm329_vm6, %v4382_v19  ;;  %v3879_v35 = vld [vmem:[%s4464_s19 + $0x40] sm:$0xf] }
  0xb9   : > { %855 = vrot.lane.b32.xlu1 %v3783_v63, %s4414_s22  ;;  %v1025_v16 = vrot.slane %v1023_v3, 4  ;;  %v3775_v20 = vcombine.low %v530_v7, %v540_v11  ;;  %v1086_v21 = vrot.slane %v934_v13, 5  ;;  %v1089_v25 = vrot.slane %v5015_v59, 5  ;;  %2257 = vst.msk [vmem:[#allocation2 + $0x40] sm:$0xff] %vm2248_vm11, %v2217_v62  ;;  %v3880_v54 = vld [vmem:[%s4464_s19 + $0x44] sm:$0x1] }
  0xba   : > { %v2201_v17 = vpop.permute.xlu0 %2200  ;;  %v3791_v26 = vrot.slane %v909_v48, 9  ;;  %v2219_v27 = vpop.permute.xlu1 %2218  ;;  %v1030_v24 = vrot.slane %v910_v46, 5  ;;  %v1033_v29 = vrot.slane %v911_v15, 5  ;;  %v1736_v34 = vshrl.u32 %v3902_v6, 16  ;;  %335 = vst.msk [vmem:[#allocation2 + $0x28] sm:$0xff] %vm329_vm6, %v4383_v28  ;;  %v4355_v57 = vld [vmem:[%s4464_s19 + $0x9c] sm:$0xff]  }
  0xbb   : > { %v1027_v1 = vsel %vm4466_vm2, %v1025_v16, %v1026_v4  ;;  %839 = vrot.lane.b32.xlu0 %v3775_v20, %s4414_s22  ;;  %v1087_v32 = vsel %vm4466_vm2, %v3799_v9, %v1086_v21  ;;  %v1088_v33 = vrot.slane %v1086_v21, 4  ;;  %2249 = vst.msk [vmem:[#allocation2] sm:$0xff] %vm2248_vm11, %v2201_v17  ;;  %2258 = vst.msk [vmem:[#allocation2 + $0x48] sm:$0xff] %vm2248_vm11, %v2219_v27  ;;  %v1739_v40 = vshll.u32 %v3902_v6, 16  ;;  %v3905_v45 = vld [vmem:[%s4464_s19 + $0xa8] sm:$0xf] }
  0xbc   : > { %v3806_v31 = vcombine.low %v1024_v14, %v1027_v1  ;;  %v1031_v36 = vsel %vm4466_vm2, %v3791_v26, %v1030_v24  ;;  %v1032_v37 = vrot.slane %v1030_v24, 4  ;;  %v1745_v41 = vshll.u32 %v3903_v10, 16  ;;  %v3906_v15 = vld [vmem:[%s4464_s19 + $0xac] sm:$0xf]  ;;  %v4356_v6 = vld [vmem:[%s4464_s19 + $0x3c] sm:$0xff]  }
  0xbd   : > { %1177 = vrot.lane.b32.xlu1 %v3814_v12, %s4413_s21  ;;  %v1090_v42 = vsel %vm4466_vm2, %v1088_v33, %v1089_v25  ;;  %v1738_v43 = vrot.slane %v1736_v34, 4  ;;  %v1749_v44 = vshrl.u32 %v3903_v10, 16  ;;  %v1755_v47 = vshll.u32 %v3904_v18, 16  ;;  %v4357_v11 = vld [vmem:[%s4464_s19 + $0xa8] sm:$0xff]   ;;  %v3907_v17 = vld [vmem:[%s4464_s19 + $0xb0] sm:$0x1] }
  0xbe   : > { %v2203_v38 = vpop.permute.xlu0 %2202  ;;  %v2398_v49 = vpop.permute.xlu1 %2397  ;;  %v3815_v50 = vcombine.low %v1087_v32, %v1090_v42  ;;  %v1034_v51 = vsel %vm4466_vm2, %v1032_v37, %v1033_v29  ;;  %v1741_v52 = vrot.slane %v1739_v40, 5  ;;  %v1747_v53 = vrot.slane %v1745_v41, 5  ;;  %v3881_v19 = vld [vmem:[%s4464_s19 + $0x48] sm:$0xf]  ;;  %v3882_v28 = vld [vmem:[%s4464_s19 + $0x4c] sm:$0xf] }
  0xbf   : > { %2250 = vst.msk [vmem:[#allocation2 + $0x8] sm:$0xff] %vm2248_vm11, %v2203_v38  ;;  %1161 = vrot.lane.b32.xlu0 %v3806_v31, %s4413_s21  ;;  %v3807_v55 = vcombine.low %v1031_v36, %v1034_v51  ;;  %v1751_v23 = vrot.slane %v1749_v44, 4  ;;  %v1757_v39 = vrot.slane %v1755_v47, 5  ;;  %v1544_v56 = vshrl.u32 %v3878_v30, 16  ;;  %v3883_v32 = vld [vmem:[%s4464_s19 + $0x50] sm:$0x1] }
  0xc0   : > { %v1742_v13 = vor.u32 %v1741_v52, %v1738_v43  ;;  %v1547_v59 = vshll.u32 %v3878_v30, 16  ;;  %v1553_v48 = vshll.u32 %v3879_v35, 16  ;;  %v1557_v58 = vshrl.u32 %v3879_v35, 16  ;;  %2438 = vst.msk [vmem:[#allocation2 + $0x40] sm:$0xff] %vm2429_vm12, %v2398_v49  ;;  %v3966_v33 = vld [vmem:[%s4464_s19 + $0x9c] sm:$0xe] }
  0xc1   : > { %1179 = vrot.lane.b32.xlu1 %v3815_v50, %s4413_s21  ;;  %v1752_v22 = vor.u32 %v1751_v23, %v1747_v53  ;;  %v1546_v61 = vrot.slane %v1544_v56, 4  ;;  %v1563_v46 = vshll.u32 %v3880_v54, 16  ;;  %v1760_v9 = vshrl.u32 %v3905_v45, 16  ;;  %v4358_v34 = vld [vmem:[%s4464_s19 + $0x48] sm:$0xff]   ;;  %v3967_v40 = vld [vmem:[%s4464_s19 + $0xa0] sm:$0xf] }
  0xc2   : > { %v2382_v60 = vpop.permute.xlu0 %2381  ;;  %v2400_v62 = vpop.permute.xlu1 %2399  ;;  %v1743_v63 = vrot.slane %v1742_v13, 4  ;;  %v1549_v2 = vrot.slane %v1547_v59, 5  ;;  %v1555_v3 = vrot.slane %v1553_v48, 5  ;;  %v1559_v4 = vrot.slane %v1557_v58, 4  ;;  %v3968_v41 = vld [vmem:[%s4464_s19 + $0xa4] sm:$0x1] }
  0xc3   : > { %2430 = vst.msk [vmem:[#allocation2] sm:$0xff] %vm2429_vm12, %v2382_v60  ;;  %2439 = vst.msk [vmem:[#allocation2 + $0x48] sm:$0xff] %vm2429_vm12, %v2400_v62  ;;  %1163 = vrot.lane.b32.xlu0 %v3807_v55, %s4413_s21  ;;  %v1753_v7 = vrot.slane %v1752_v22, 4  ;;  %v1565_v8 = vrot.slane %v1563_v46, 5  ;;  %v1763_v10 = vshll.u32 %v3905_v45, 16  ;;  %v1769_v18 = vshll.u32 %v3906_v15, 16 }
  0xc4   : > { %v1748_v12 = vsel %vm4516_vm5, %v1743_v63, %v1747_v53  ;;  %v1550_v14 = vor.u32 %v1549_v2, %v1546_v61  ;;  %v1560_v16 = vor.u32 %v1559_v4, %v1555_v3  ;;  %v1762_v25 = vrot.slane %v1760_v9, 4  ;;  %v3942_v49 = vld [vmem:[%s4464_s19 + $0x3c] sm:$0xe]  ;;  %v3943_v50 = vld [vmem:[%s4464_s19 + $0x40] sm:$0xf] }
  0xc5   : > { %1358 = vrot.lane.b32.xlu1 %v4355_v57, %s4412_s20  ;;  %v1758_v21 = vsel %vm4516_vm5, %v1753_v7, %v1757_v39  ;;  %v1765_v26 = vrot.slane %v1763_v10, 5  ;;  %v1773_v27 = vshrl.u32 %v3906_v15, 16  ;;  %v1771_v31 = vrot.slane %v1769_v18, 5  ;;  %v3944_v15 = vld [vmem:[%s4464_s19 + $0x44] sm:$0x1] }
  0xc6   : > { %v2384_v20 = vpop.permute.xlu0 %2383  ;;  %v5087_v1 = vpop.permute.xlu1 %2942  ;;  %v3926_v24 = vcombine.low %v1748_v12, %v1758_v21  ;;  %v1551_v29 = vrot.slane %v1550_v14, 4  ;;  %v1561_v30 = vrot.slane %v1560_v16, 4  ;;  %v1779_v37 = vshll.u32 %v3907_v17, 16  ;;  %v3969_v4 = vld [vmem:[%s4464_s19 + $0xa8] sm:$0xe] }
  0xc7   : > { %2431 = vst.msk [vmem:[#allocation2 + $0x8] sm:$0xff] %vm2429_vm12, %v2384_v20  ;;  %1342 = vrot.lane.b32.xlu0 %v4356_v6, %s4412_s20  ;;  %v1766_v35 = vor.u32 %v1765_v26, %v1762_v25  ;;  %v1775_v36 = vrot.slane %v1773_v27, 4  ;;  %v1568_v38 = vshrl.u32 %v3881_v19, 16  ;;  %v1571_v44 = vshll.u32 %v3881_v19, 16  ;;  %v3970_v10 = vld [vmem:[%s4464_s19 + $0xac] sm:$0xf] }
  0xc8   : > { %v1556_v42 = vsel %vm4516_vm5, %v1551_v29, %v1555_v3  ;;  %v1566_v43 = vsel %vm4516_vm5, %v1561_v30, %v1565_v8  ;;  %v1577_v47 = vshll.u32 %v3882_v28, 16  ;;  %v1781_v55 = vrot.slane %v1779_v37, 5  ;;  %v3945_v19 = vld [vmem:[%s4464_s19 + $0x48] sm:$0xe]  ;;  %v3946_v27 = vld [vmem:[%s4464_s19 + $0x4c] sm:$0xf] }
  0xc9   : > { %1360 = vrot.lane.b32.xlu1 %v4357_v11, %s4412_s20  ;;  %v3918_v52 = vcombine.low %v1556_v42, %v1566_v43  ;;  %v1767_v53 = vrot.slane %v1766_v35, 4  ;;  %v1776_v54 = vor.u32 %v1775_v36, %v1771_v31  ;;  %v1570_v39 = vrot.slane %v1568_v38, 4  ;;  %v3971_v11 = vld [vmem:[%s4464_s19 + $0xb0] sm:$0x1]  ;;  %2983 = vst.msk [vmem:[#allocation2 + $0x40] sm:$0xff] %vm2974_vm13, %v5087_v1 }
  0xca   : > { %v2927_v51 = vpop.permute.xlu0 %2926  ;;  %v1573_v56 = vrot.slane %v1571_v44, 5  ;;  %v1579_v57 = vrot.slane %v1577_v47, 5  ;;  %v1581_v13 = vshrl.u32 %v3882_v28, 16  ;;  %v1587_v58 = vshll.u32 %v3883_v32, 16  ;;  %v4094_v32 = vld [vmem:[%s4464_s19 + $0xa8] sm:$0xf] }
  0xcb   : > { %v2945_v23 = vpop.permute.xlu1 %2944  ;;  %1344 = vrot.lane.b32.xlu0 %v4358_v34, %s4412_s20  ;;  %v1772_v59 = vsel %vm4516_vm5, %v1767_v53, %v1771_v31  ;;  %v1777_v48 = vrot.slane %v1776_v54, 4  ;;  %v3990_v60 = vrot.slane %v3966_v33, 9  ;;  %v2126_v61 = vrot.slane %v3967_v40, 5  ;;  %2975 = vst.msk [vmem:[#allocation2] sm:$0xff] %vm2974_vm13, %v2927_v51  ;;  %v3947_v31 = vld [vmem:[%s4464_s19 + $0x50] sm:$0x1] }
  0xcc   : > { %v1574_v45 = vor.u32 %v1573_v56, %v1570_v39  ;;  %v1583_v22 = vrot.slane %v1581_v13, 4  ;;  %v2129_v46 = vrot.slane %v3968_v41, 5  ;;  %v1589_v63 = vrot.slane %v1587_v58, 5  ;;  %2984 = vst.msk [vmem:[#allocation2 + $0x48] sm:$0xff] %vm2974_vm13, %v2945_v23  ;;  %v4095_v37 = vld [vmem:[%s4464_s19 + $0xac] sm:$0xf] }
  0xcd   : > { %1903 = vrot.lane.b32.xlu1 %v3926_v24, %s4415_s23  ;;  %v1782_v62 = vsel %vm4516_vm5, %v1777_v48, %v1781_v55  ;;  %v3982_v2 = vrot.slane %v3942_v49, 9  ;;  %v2070_v3 = vrot.slane %v3943_v50, 5  ;;  %v2127_v9 = vsel %vm4466_vm2, %v3990_v60, %v2126_v61  ;;  %v4096_v43 = vld [vmem:[%s4464_s19 + $0xb0] sm:$0x1]  ;;  %v4070_v50 = vld [vmem:[%s4464_s19 + $0x48] sm:$0xf] }
  0xce   : > { %v3927_v6 = vcombine.low %v1772_v59, %v1782_v62  ;;  %v1575_v7 = vrot.slane %v1574_v45, 4  ;;  %v1584_v8 = vor.u32 %v1583_v22, %v1579_v57  ;;  %v2128_v14 = vrot.slane %v2126_v61, 4  ;;  %v4071_v13 = vld [vmem:[%s4464_s19 + $0x4c] sm:$0xf]  ;;  %v4072_v60 = vld [vmem:[%s4464_s19 + $0x50] sm:$0x1] }
  0xcf   : > { %v2929_v12 = vpop.permute.xlu0 %2928  ;;  %1887 = vrot.lane.b32.xlu0 %v3918_v52, %s4415_s23  ;;  %v5117_v16 = vsel %vm4466_vm2, %v3982_v2, %v2070_v3  ;;  %v2072_v17 = vrot.slane %v2070_v3, 4  ;;  %v2073_v18 = vrot.slane %v3944_v15, 5  ;;  %v3264_v20 = vpop.permute.xlu1 %3263  ;;  %v3991_v26 = vrot.slane %v3969_v4, 9  ;;  %v4360_v61 = vld [vmem:[%s4464_s19 + $0xa8] sm:$0xff]   ;;  %v4097_v2 = vld [vmem:[%s4464_s19 + $0xb4] sm:$0xf] }
  0xd0   : > { %v1580_v21 = vsel %vm4516_vm5, %v1575_v7, %v1579_v57  ;;  %v1585_v25 = vrot.slane %v1584_v8, 4  ;;  %v2130_v28 = vsel %vm4466_vm2, %v2128_v14, %v2129_v46  ;;  %v2133_v29 = vrot.slane %v3970_v10, 5  ;;  %2976 = vst.msk [vmem:[#allocation2 + $0x8] sm:$0xff] %vm2974_vm13, %v2929_v12  ;;  %v4098_v14 = vld [vmem:[%s4464_s19 + $0xb8] sm:$0xf] }
  0xd1   : > { %1905 = vrot.lane.b32.xlu1 %v3927_v6, %s4415_s23  ;;  %v2074_v24 = vsel %vm4466_vm2, %v2072_v17, %v2073_v18  ;;  %v2136_v30 = vrot.slane %v3971_v11, 5  ;;  %v4006_v34 = vcombine.low %v2127_v9, %v2130_v28  ;;  %v3983_v36 = vrot.slane %v3945_v19, 9  ;;  %3304 = vst.msk [vmem:[#allocation2 + $0x40] sm:$0xff] %vm3295_vm14, %v3264_v20  ;;  %v4099_v18 = vld [vmem:[%s4464_s19 + $0xbc] sm:$0x1]  ;;  %v4363_v20 = vld [vmem:[%s4464_s19 + $0xb4] sm:$0xff]  }
  0xd2   : > { %v1590_v33 = vsel %vm4516_vm5, %v1585_v25, %v1589_v63  ;;  %v3998_v35 = vcombine.low %v5117_v16, %v2074_v24  ;;  %v2134_v40 = vsel %vm4466_vm2, %v3991_v26, %v2133_v29  ;;  %v2135_v41 = vrot.slane %v2133_v29, 4 }
  0xd3   : > { %v3248_v1 = vpop.permute.xlu0 %3247  ;;  %v3919_v38 = vcombine.low %v1580_v21, %v1590_v33  ;;  %v2077_v42 = vrot.slane %v3946_v27, 5  ;;  %v2080_v44 = vrot.slane %v3947_v31, 5  ;;  %v2783_v47 = vshrl.u32 %v4094_v32, 16 }
  0xd4   : > { %v2786_v49 = vshll.u32 %v4094_v32, 16  ;;  %v2137_v51 = vsel %vm4466_vm2, %v2135_v41, %v2136_v30  ;;  %3296 = vst.msk [vmem:[#allocation2] sm:$0xff] %vm3295_vm14, %v3248_v1  ;;  %v2792_v55 = vshll.u32 %v4095_v37, 16  ;;  %v2796_v57 = vshrl.u32 %v4095_v37, 16  ;;  %v4361_v30 = vld [vmem:[%s4464_s19 + $0x48] sm:$0xff]  }
  0xd5   : > { %2224 = vrot.lane.b32.xlu1 %v4006_v34, %s4416_s24  ;;  %1889 = vrot.lane.b32.xlu0 %v3919_v38, %s4415_s23  ;;  %v2078_v52 = vsel %vm4466_vm2, %v3983_v36, %v2077_v42  ;;  %v2079_v53 = vrot.slane %v2077_v42, 4  ;;  %v4007_v23 = vcombine.low %v2134_v40, %v2137_v51  ;;  %v2785_v39 = vrot.slane %v2783_v47, 4  ;;  %v4074_v40 = vld [vmem:[%s4464_s19 + $0x58] sm:$0xf] }
  0xd6   : > { %v850_v54 = vpop.permute.xlu1 %849  ;;  %v2788_v56 = vrot.slane %v2786_v49, 5  ;;  %v2794_v48 = vrot.slane %v2792_v55, 5  ;;  %v2802_v58 = vshll.u32 %v4096_v43, 16  ;;  %v2591_v45 = vshrl.u32 %v4070_v50, 16  ;;  %v4364_v47 = vld [vmem:[%s4464_s19 + $0x54] sm:$0xff]  }
  0xd7   : > { %888 = vst.msk [vmem:[#allocation2 + $0x50] sm:$0xff] %vm877_vm7, %v850_v54  ;;  %v2081_v59 = vsel %vm4466_vm2, %v2079_v53, %v2080_v44  ;;  %v2798_v62 = vrot.slane %v2796_v57, 4  ;;  %v2594_v63 = vshll.u32 %v4070_v50, 16  ;;  %v2600_v6 = vshll.u32 %v4071_v13, 16  ;;  %v4158_v57 = vld [vmem:[%s4464_s19 + $0xa8] sm:$0xe] }
  0xd8   : > { %v3999_v22 = vcombine.low %v2078_v52, %v2081_v59  ;;  %v2789_v15 = vor.u32 %v2788_v56, %v2785_v39  ;;  %v2804_v3 = vrot.slane %v2802_v58, 5  ;;  %v2593_v4 = vrot.slane %v2591_v45, 4  ;;  %v3320_v29 = vld [vmem:[#allocation2 + $0x40] sm:$0xff]  ;;  %v4075_v52 = vld [vmem:[%s4464_s19 + $0x5c] sm:$0x1] }
  0xd9   : > { %2226 = vrot.lane.b32.xlu1 %v4007_v23, %s4416_s24  ;;  %2208 = vrot.lane.b32.xlu0 %v3998_v35, %s4416_s24  ;;  %v2604_v7 = vshrl.u32 %v4071_v13, 16  ;;  %v2799_v10 = vor.u32 %v2798_v62, %v2794_v48  ;;  %v2596_v11 = vrot.slane %v2594_v63, 5  ;;  %v2610_v12 = vshll.u32 %v4072_v60, 16  ;;  %v4073_v35 = vld [vmem:[%s4464_s19 + $0x54] sm:$0xf] }
  0xda   : > { %v834_v46 = vpop.permute.xlu0 %833  ;;  %v3266_v8 = vpop.permute.xlu1 %3265  ;;  %v2790_v9 = vrot.slane %v2789_v15, 4  ;;  %v2602_v16 = vrot.slane %v2600_v6, 5  ;;  %v2807_v19 = vshrl.u32 %v4097_v2, 16  ;;  %v2810_v33 = vshll.u32 %v4097_v2, 16  ;;  %4274 = vmatprep.mubr.msk.bf16.mxu1 %vm3371_vm15, %v3320_v29  ;;  %v4371_v56 = vld [vmem:[%s5654_s1 + $0x20] ss:$0 sps:$4 sm:$0xff]  }
  0xdb   : > { %880 = vst.msk [vmem:[#allocation2 + $0x10] sm:$0xff] %vm877_vm7, %v834_v46  ;;  %v2606_v17 = vrot.slane %v2604_v7, 4  ;;  %v2800_v25 = vrot.slane %v2799_v10, 4  ;;  %v2597_v26 = vor.u32 %v2596_v11, %v2593_v4  ;;  %v2612_v27 = vrot.slane %v2610_v12, 5  ;;  %v3312_v24 = vld [vmem:[#allocation2] sm:$0xff]  ;;  %4300 = vmatprep.subr.msk.bf16.mxu0 %vm3420_vm0, %v4371_v56  ;;  %4301 = vmatprep.subr.msk.bf16.mxu1 %vm3420_vm0, %v4371_v56 }
  0xdc   : > { %3305 = vst.msk [vmem:[#allocation2 + $0x48] sm:$0xff] %vm3295_vm14, %v3266_v8  ;;  %v2795_v21 = vsel %vm4516_vm5, %v2790_v9, %v2794_v48  ;;  %4258 = vmatprep.mubr.msk.bf16.mxu0 %vm3371_vm15, %v3312_v24  ;;  %v2809_v32 = vrot.slane %v2807_v19, 4  ;;  %v2816_v34 = vshll.u32 %v4098_v14, 16  ;;  %v2820_v37 = vshrl.u32 %v4098_v14, 16  ;;  %v4159_v45 = vld [vmem:[%s4464_s19 + $0xac] sm:$0xf] }
  0xdd   : > { %2405 = vrot.lane.b32.xlu1 %v4360_v61, %s4417_s25  ;;  %2210 = vrot.lane.b32.xlu0 %v3999_v22, %s4416_s24  ;;  %v2607_v31 = vor.u32 %v2606_v17, %v2602_v16  ;;  %v2805_v36 = vsel %vm4516_vm5, %v2800_v25, %v2804_v3  ;;  %v2598_v1 = vrot.slane %v2597_v26, 4  ;;  %v2826_v38 = vshll.u32 %v4099_v18, 16  ;;  %v4160_v22 = vld [vmem:[%s4464_s19 + $0xb0] sm:$0x1]  ;;  %v4134_v63 = vld [vmem:[%s4464_s19 + $0x48] sm:$0xe] }
  0xde   : > { %v3250_v28 = vpop.permute.xlu0 %3249  ;;  %v4118_v41 = vcombine.low %v2795_v21, %v2805_v36  ;;  %v2812_v43 = vrot.slane %v2810_v33, 5  ;;  %v2818_v44 = vrot.slane %v2816_v34, 5  ;;  %v2822_v50 = vrot.slane %v2820_v37, 4  ;;  %v4135_v7 = vld [vmem:[%s4464_s19 + $0x4c] sm:$0xf] }
  0xdf   : > { %3297 = vst.msk [vmem:[#allocation2 + $0x8] sm:$0xff] %vm3295_vm14, %v3250_v28  ;;  %v2608_v42 = vrot.slane %v2607_v31, 4  ;;  %v2603_v49 = vsel %vm4516_vm5, %v2598_v1, %v2602_v16  ;;  %v2828_v51 = vrot.slane %v2826_v38, 5  ;;  %v2615_v53 = vshrl.u32 %v4073_v35, 16  ;;  %v4136_v12 = vld [vmem:[%s4464_s19 + $0x50] sm:$0x1] }
  0xe0   : > { %v2813_v55 = vor.u32 %v2812_v43, %v2809_v32  ;;  %v2618_v23 = vshll.u32 %v4073_v35, 16  ;;  %v2624_v39 = vshll.u32 %v4074_v40, 16  ;;  %v2823_v59 = vor.u32 %v2822_v50, %v2818_v44  ;;  %v389_v21 = vld [vmem:[%s4464_s19 + $0xac] sm:$0xf]  ;;  %v390_v35 = vld [vmem:[%s4464_s19 + $0xb0] sm:$0x1] }
  0xe1   : > { %2407 = vrot.lane.b32.xlu1 %v4363_v20, %s4417_s25  ;;  %2389 = vrot.lane.b32.xlu0 %v4361_v30, %s4417_s25  ;;  %v2613_v54 = vsel %vm4516_vm5, %v2608_v42, %v2612_v27  ;;  %v2617_v48 = vrot.slane %v2615_v53, 4  ;;  %v2628_v58 = vshrl.u32 %v4074_v40, 16  ;;  %v2634_v62 = vshll.u32 %v4075_v52, 16  ;;  %v388_v20 = vld [vmem:[%s4464_s19 + $0xa8] sm:$0xf] }
  0xe2   : > { %v4110_v13 = vcombine.low %v2603_v49, %v2613_v54  ;;  %v2814_v61 = vrot.slane %v2813_v55, 4  ;;  %v2620_v46 = vrot.slane %v2618_v23, 5  ;;  %v2626_v15 = vrot.slane %v2624_v39, 5  ;;  %v364_v36 = vld [vmem:[%s4464_s19 + $0x48] sm:$0xf] }
  0xe3   : > { %v2824_v2 = vrot.slane %v2823_v59, 4  ;;  %v2630_v3 = vrot.slane %v2628_v58, 4  ;;  %v4182_v6 = vrot.slane %v4158_v57, 9  ;;  %v2636_v10 = vrot.slane %v2634_v62, 5  ;;  %v3321_v29 = vld [vmem:[#allocation2 + $0x48] sm:$0xff] }
  0xe4   : > { %v852_v60 = vpop.permute.xlu1 %851  ;;  %v2819_v8 = vsel %vm4516_vm5, %v2814_v61, %v2818_v44  ;;  %v2621_v9 = vor.u32 %v2620_v46, %v2617_v48  ;;  %v3422_v11 = vsel %vm3420_vm0, %v4371_v56, 0  ;;  %v3173_v17 = vrot.slane %v4159_v45, 5  ;;  %v365_v1 = vld [vmem:[%s4464_s19 + $0x4c] sm:$0xf]  ;;  %v366_v42 = vld [vmem:[%s4464_s19 + $0x50] sm:$0x1] }
  0xe5   : > { %889 = vst.msk [vmem:[#allocation2 + $0x58] sm:$0xff] %vm877_vm7, %v852_v60  ;;  %2950 = vrot.lane.b32.xlu1 %v4118_v41, %s4418_s26  ;;  %v836_v4 = vpop.permute.xlu0 %835  ;;  %2391 = vrot.lane.b32.xlu0 %v4364_v47, %s4417_s25  ;;  %v2829_v14 = vsel %vm4516_vm5, %v2824_v2, %v2828_v51  ;;  %v2631_v16 = vor.u32 %v2630_v3, %v2626_v15  ;;  %v3176_v18 = vrot.slane %v4160_v22, 5  ;;  %v4174_v27 = vrot.slane %v4134_v63, 9  ;;  %v4384_v55 = vld [vmem:[%s4464_s19 + $0xa8] sm:$0xff]   ;;  %v4161_v59 = vld [vmem:[%s4464_s19 + $0xb4] sm:$0xe] }
  0xe6   : > { %881 = vst.msk [vmem:[#allocation2 + $0x18] sm:$0xff] %vm877_vm7, %v836_v4  ;;  %4257 = vmatpush3.bf16.msra.mxu0 %v3422_v11  ;;  %v4119_v25 = vcombine.low %v2819_v8, %v2829_v14  ;;  %v2622_v26 = vrot.slane %v2621_v9, 4  ;;  %4299 = vmatpush3.bf16.msra.mxu1 %v3422_v11  ;;  %v3117_v28 = vrot.slane %v4135_v7, 5  ;;  %v3313_v24 = vld [vmem:[#allocation2 + $0x8] sm:$0xff]  ;;  %v3174_v31 = vsel %vm4466_vm2, %v4182_v6, %v3173_v17  ;;  %v4162_v48 = vld [vmem:[%s4464_s19 + $0xb8] sm:$0xf] }
  0xe7   : > { %v2632_v30 = vrot.slane %v2631_v16, 4  ;;  %v3175_v32 = vrot.slane %v3173_v17, 4  ;;  %v3120_v33 = vrot.slane %v4136_v12, 5  ;;  %v734_v41 = vshrl.u32 %v388_v20, 16  ;;  %v4385_v58 = vld [vmem:[%s4464_s19 + $0x48] sm:$0xff]   ;;  %344 = vst.msk [vmem:[#allocation2 + $0x70] sm:$0xff] %vm329_vm6, %v4384_v55 }
  0xe8   : > { %v1174_v19 = vpop.permute.xlu1 %1173  ;;  %v2627_v37 = vsel %vm4516_vm5, %v2622_v26, %v2626_v15  ;;  %v3118_v38 = vsel %vm4466_vm2, %v4174_v27, %v3117_v28  ;;  %v3119_v40 = vrot.slane %v3117_v28, 4  ;;  %v737_v47 = vshll.u32 %v388_v20, 16  ;;  %v4163_v46 = vld [vmem:[%s4464_s19 + $0xbc] sm:$0x1]  ;;  %v4137_v3 = vld [vmem:[%s4464_s19 + $0x54] sm:$0xe] }
  0xe9   : > { %1212 = vst.msk [vmem:[#allocation2 + $0x50] sm:$0xff] %vm1201_vm8, %v1174_v19  ;;  %v1158_v34 = vpop.permute.xlu0 %1157  ;;  %2934 = vrot.lane.b32.xlu0 %v4110_v13, %s4418_s26  ;;  %2952 = vrot.lane.b32.xlu1 %v4119_v25, %s4418_s26  ;;  %v2637_v43 = vsel %vm4516_vm5, %v2632_v30, %v2636_v10  ;;  %v3177_v44 = vsel %vm4466_vm2, %v3175_v32, %v3176_v18  ;;  %v743_v49 = vshll.u32 %v389_v21, 16  ;;  %v736_v54 = vrot.slane %v734_v41, 4  ;;  %v4138_v10 = vld [vmem:[%s4464_s19 + $0x58] sm:$0xf] }
  0xea   : > { %1204 = vst.msk [vmem:[#allocation2 + $0x10] sm:$0xff] %vm1201_vm8, %v1158_v34  ;;  %4259 = vmatmul.mubr.msk.bf16.vlgmr.msra.gmra.mrb[0].mxu0 %vm3371_vm15, %v3313_v24  ;;  %4275 = vmatmul.mubr.msk.bf16.vlgmr.msra.gmra.mrb[0].mxu1 %vm3371_vm15, %v3321_v29  ;;  %v4111_v51 = vcombine.low %v2627_v37, %v2637_v43  ;;  %v4198_v52 = vcombine.low %v3174_v31, %v3177_v44  ;;  %v739_v39 = vrot.slane %v737_v47, 5  ;;  %v747_v57 = vshrl.u32 %v389_v21, 16  ;;  %v4139_v17 = vld [vmem:[%s4464_s19 + $0x5c] sm:$0x1]  ;;  %v4386_v41 = vld [vmem:[%s4464_s19 + $0xb4] sm:$0xff]  }
  0xeb   : > { %v3121_v53 = vsel %vm4466_vm2, %v3119_v40, %v3120_v33  ;;  %v745_v56 = vrot.slane %v743_v49, 5  ;;  %v753_v60 = vshll.u32 %v390_v35, 16  ;;  %v542_v45 = vshrl.u32 %v364_v36, 16  ;;  %336 = vst.msk [vmem:[#allocation2 + $0x30] sm:$0xff] %vm329_vm6, %v4385_v58  ;;  %v391_v26 = vld [vmem:[%s4464_s19 + $0xb4] sm:$0xf] }
  0xec   : > { %v1176_v50 = vpop.permute.xlu1 %1175  ;;  %v4190_v23 = vcombine.low %v3118_v38, %v3121_v53  ;;  %v545_v22 = vshll.u32 %v364_v36, 16  ;;  %v551_v61 = vshll.u32 %v365_v1, 16  ;;  %v740_v15 = vor.u32 %v739_v39, %v736_v54  ;;  %v392_v37 = vld [vmem:[%s4464_s19 + $0xb8] sm:$0xf]  ;;  %v393_v49 = vld [vmem:[%s4464_s19 + $0xbc] sm:$0x1] }
  0xed   : > { %1213 = vst.msk [vmem:[#allocation2 + $0x58] sm:$0xff] %vm1201_vm8, %v1176_v50  ;;  %v1160_v13 = vpop.permute.xlu0 %1159  ;;  %2936 = vrot.lane.b32.xlu0 %v4111_v51, %s4418_s26  ;;  %3271 = vrot.lane.b32.xlu1 %v4198_v52, %s4419_s27  ;;  %v749_v62 = vrot.slane %v747_v57, 4  ;;  %v555_v63 = vshrl.u32 %v365_v1, 16  ;;  %v561_v2 = vshll.u32 %v366_v42, 16  ;;  %v755_v6 = vrot.slane %v753_v60, 5 }
  0xee   : > { %1205 = vst.msk [vmem:[#allocation2 + $0x18] sm:$0xff] %vm1201_vm8, %v1160_v13  ;;  %v544_v7 = vrot.slane %v542_v45, 4  ;;  %v547_v8 = vrot.slane %v545_v22, 5  ;;  %v553_v9 = vrot.slane %v551_v61, 5  ;;  %v741_v11 = vrot.slane %v740_v15, 4 }
  0xef   : > { %v750_v12 = vor.u32 %v749_v62, %v745_v56  ;;  %v557_v14 = vrot.slane %v555_v63, 4  ;;  %v563_v16 = vrot.slane %v561_v2, 5  ;;  %v4183_v20 = vrot.slane %v4161_v59, 9  ;;  %v367_v50 = vld [vmem:[%s4464_s19 + $0x54] sm:$0xf]  ;;  %345 = vst.msk [vmem:[#allocation2 + $0x78] sm:$0xff] %vm329_vm6, %v4386_v41 }
  0xf0   : > { %v1355_v4 = vpop.permute.xlu1 %1354  ;;  %v548_v19 = vor.u32 %v547_v8, %v544_v7  ;;  %v3180_v21 = vrot.slane %v4162_v48, 5  ;;  %v3183_v25 = vrot.slane %v4163_v46, 5  ;;  %v746_v27 = vsel %vm4516_vm5, %v741_v11, %v745_v56  ;;  %v368_v55 = vld [vmem:[%s4464_s19 + $0x58] sm:$0xf]  ;;  %v369_v59 = vld [vmem:[%s4464_s19 + $0x5c] sm:$0x1] }
  0xf1   : > { %1393 = vst.msk [vmem:[#allocation2 + $0x50] sm:$0xff] %vm1382_vm9, %v1355_v4  ;;  %v1339_v18 = vpop.permute.xlu0 %1338  ;;  %3255 = vrot.lane.b32.xlu0 %v4190_v23, %s4419_s27  ;;  %v751_v28 = vrot.slane %v750_v12, 4  ;;  %v558_v24 = vor.u32 %v557_v14, %v553_v9  ;;  %v4175_v29 = vrot.slane %v4137_v3, 9  ;;  %v3124_v34 = vrot.slane %v4138_v10, 5  ;;  %v4387_v48 = vld [vmem:[%s4464_s19 + $0x54] sm:$0xff]  }
  0xf2   : > { %1385 = vst.msk [vmem:[#allocation2 + $0x10] sm:$0xff] %vm1382_vm9, %v1339_v18  ;;  %v549_v31 = vrot.slane %v548_v19, 4  ;;  %v3181_v32 = vsel %vm4466_vm2, %v4183_v20, %v3180_v21  ;;  %v3182_v33 = vrot.slane %v3180_v21, 4  ;;  %v3127_v1 = vrot.slane %v4139_v17, 5  ;;  %v936_v61 = vld [vmem:[%s4464_s19 + $0xa8] sm:$0xe] }
  0xf3   : > { %v756_v35 = vsel %vm4516_vm5, %v751_v28, %v755_v6  ;;  %v559_v36 = vrot.slane %v558_v24, 4  ;;  %v758_v38 = vshrl.u32 %v391_v26, 16  ;;  %v3125_v47 = vsel %vm4466_vm2, %v4175_v29, %v3124_v34  ;;  %v937_v3 = vld [vmem:[%s4464_s19 + $0xac] sm:$0xf]  ;;  %337 = vst.msk [vmem:[#allocation2 + $0x38] sm:$0xff] %vm329_vm6, %v4387_v48 }
  0xf4   : > { %v1357_v30 = vpop.permute.xlu1 %1356  ;;  %v3784_v42 = vcombine.low %v746_v27, %v756_v35  ;;  %v554_v43 = vsel %vm4516_vm5, %v549_v31, %v553_v9  ;;  %v3184_v44 = vsel %vm4466_vm2, %v3182_v33, %v3183_v25  ;;  %v3126_v53 = vrot.slane %v3124_v34, 4  ;;  %v938_v9 = vld [vmem:[%s4464_s19 + $0xb0] sm:$0x1]  ;;  %v912_v17 = vld [vmem:[%s4464_s19 + $0x48] sm:$0xe] }
  0xf5   : > { %1394 = vst.msk [vmem:[#allocation2 + $0x58] sm:$0xff] %vm1382_vm9, %v1357_v30  ;;  %v1341_v40 = vpop.permute.xlu0 %1340  ;;  %v564_v51 = vsel %vm4516_vm5, %v559_v36, %v563_v16  ;;  %v4199_v52 = vcombine.low %v3181_v32, %v3184_v44  ;;  %v760_v54 = vrot.slane %v758_v38, 4  ;;  %v761_v56 = vshll.u32 %v391_v26, 16  ;;  %v913_v18 = vld [vmem:[%s4464_s19 + $0x4c] sm:$0xf] }
  0xf6   : > { %1386 = vst.msk [vmem:[#allocation2 + $0x18] sm:$0xff] %vm1382_vm9, %v1341_v40  ;;  %857 = vrot.lane.b32.xlu1 %v3784_v42, %s4414_s22  ;;  %v3776_v39 = vcombine.low %v554_v43, %v564_v51  ;;  %v767_v57 = vshll.u32 %v392_v37, 16  ;;  %v771_v13 = vshrl.u32 %v392_v37, 16  ;;  %v3128_v58 = vsel %vm4466_vm2, %v3126_v53, %v3127_v1  ;;  %v914_v26 = vld [vmem:[%s4464_s19 + $0x50] sm:$0x1] }
  0xf7   : > { %v777_v60 = vshll.u32 %v393_v49, 16  ;;  %v566_v45 = vshrl.u32 %v367_v50, 16  ;;  %v569_v22 = vshll.u32 %v367_v50, 16  ;;  %v4191_v15 = vcombine.low %v3125_v47, %v3128_v58  ;;  %v939_v27 = vld [vmem:[%s4464_s19 + $0xb4] sm:$0xe] }
  0xf8   : > { %v1900_v23 = vpop.permute.xlu1 %1899  ;;  %841 = vrot.lane.b32.xlu0 %v3776_v39, %s4414_s22  ;;  %v763_v62 = vrot.slane %v761_v56, 5  ;;  %v769_v63 = vrot.slane %v767_v57, 5  ;;  %v773_v2 = vrot.slane %v771_v13, 4  ;;  %v575_v8 = vshll.u32 %v368_v55, 16  ;;  %v940_v31 = vld [vmem:[%s4464_s19 + $0xb8] sm:$0xf] }
  0xf9   : > { %1938 = vst.msk [vmem:[#allocation2 + $0x50] sm:$0xff] %vm1927_vm10, %v1900_v23  ;;  %v1884_v46 = vpop.permute.xlu0 %1883  ;;  %v779_v4 = vrot.slane %v777_v60, 5  ;;  %v568_v6 = vrot.slane %v566_v45, 4  ;;  %v571_v7 = vrot.slane %v569_v22, 5  ;;  %v579_v14 = vshrl.u32 %v368_v55, 16 }
  0xfa   : > { %1930 = vst.msk [vmem:[#allocation2 + $0x10] sm:$0xff] %vm1927_vm10, %v1884_v46  ;;  %3273 = vrot.lane.b32.xlu1 %v4199_v52, %s4419_s27  ;;  %v764_v11 = vor.u32 %v763_v62, %v760_v54  ;;  %v774_v12 = vor.u32 %v773_v2, %v769_v63  ;;  %v585_v16 = vshll.u32 %v369_v59, 16  ;;  %v577_v20 = vrot.slane %v575_v8, 5  ;;  %v941_v32 = vld [vmem:[%s4464_s19 + $0xbc] sm:$0x1] }
  0xfb   : > { %v572_v19 = vor.u32 %v571_v7, %v568_v6  ;;  %v3800_v21 = vrot.slane %v936_v61, 9  ;;  %v1093_v25 = vrot.slane %v937_v3, 5  ;;  %v581_v29 = vrot.slane %v579_v14, 4  ;;  %v915_v1 = vld [vmem:[%s4464_s19 + $0x54] sm:$0xe] }
  0xfc   : > { %v1902_v10 = vpop.permute.xlu1 %1901  ;;  %3257 = vrot.lane.b32.xlu0 %v4191_v15, %s4419_s27  ;;  %v765_v28 = vrot.slane %v764_v11, 4  ;;  %v775_v24 = vrot.slane %v774_v12, 4  ;;  %v587_v30 = vrot.slane %v585_v16, 5  ;;  %v1096_v36 = vrot.slane %v938_v9, 5  ;;  %v916_v37 = vld [vmem:[%s4464_s19 + $0x58] sm:$0xf] }
  0xfd   : > { %1939 = vst.msk [vmem:[#allocation2 + $0x58] sm:$0xff] %vm1927_vm10, %v1902_v10  ;;  %v573_v33 = vrot.slane %v572_v19, 4  ;;  %v1094_v34 = vsel %vm4466_vm2, %v3800_v21, %v1093_v25  ;;  %v1095_v35 = vrot.slane %v1093_v25, 4  ;;  %v582_v43 = vor.u32 %v581_v29, %v577_v20  ;;  %v917_v47 = vld [vmem:[%s4464_s19 + $0x5c] sm:$0x1] }
  0xfe   : > { %v770_v41 = vsel %vm4516_vm5, %v765_v28, %v769_v63  ;;  %v780_v42 = vsel %vm4516_vm5, %v775_v24, %v779_v4  ;;  %v3792_v44 = vrot.slane %v912_v17, 9  ;;  %v1037_v52 = vrot.slane %v913_v18, 5  ;;  %v3908_v53 = vld [vmem:[%s4464_s19 + $0xb4] sm:$0xf]  ;;  %v3909_v56 = vld [vmem:[%s4464_s19 + $0xb8] sm:$0xf] }
  0xff   : > { %v1886_v38 = vpop.permute.xlu0 %1885  ;;  %v3785_v49 = vcombine.low %v770_v41, %v780_v42  ;;  %v578_v50 = vsel %vm4516_vm5, %v573_v33, %v577_v20  ;;  %v1097_v51 = vsel %vm4466_vm2, %v1095_v35, %v1096_v36  ;;  %v583_v54 = vrot.slane %v582_v43, 4  ;;  %v3910_v45 = vld [vmem:[%s4464_s19 + $0xbc] sm:$0x1]  ;;  %v3884_v4 = vld [vmem:[%s4464_s19 + $0x54] sm:$0xf] }
 0x100   : > { %v2221_v40 = vpop.permute.xlu1 %2220  ;;  %1931 = vst.msk [vmem:[#allocation2 + $0x18] sm:$0xff] %vm1927_vm10, %v1886_v38  ;;  %v3816_v55 = vcombine.low %v1094_v34, %v1097_v51  ;;  %v1040_v23 = vrot.slane %v914_v26, 5  ;;  %v3801_v39 = vrot.slane %v939_v27, 9  ;;  %v1038_v57 = vsel %vm4466_vm2, %v3792_v44, %v1037_v52  ;;  %v3885_v6 = vld [vmem:[%s4464_s19 + $0x58] sm:$0xf] }
 0x101   : > { %2259 = vst.msk [vmem:[#allocation2 + $0x50] sm:$0xff] %vm2248_vm11, %v2221_v40  ;;  %859 = vrot.lane.b32.xlu1 %v3785_v49, %s4414_s22  ;;  %v1039_v13 = vrot.slane %v1037_v52, 4  ;;  %v1100_v59 = vrot.slane %v940_v31, 5  ;;  %v1103_v48 = vrot.slane %v941_v32, 5  ;;  %v588_v22 = vsel %vm4516_vm5, %v583_v54, %v587_v30  ;;  %v3886_v26 = vld [vmem:[%s4464_s19 + $0x5c] sm:$0x1] }
 0x102   : > { %v3793_v61 = vrot.slane %v915_v1, 9  ;;  %v1044_v46 = vrot.slane %v916_v37, 5  ;;  %v1047_v15 = vrot.slane %v917_v47, 5  ;;  %v3777_v62 = vcombine.low %v578_v50, %v588_v22  ;;  %v3911_v30 = vld [vmem:[%s4464_s19 + $0xc0] sm:$0xf]  ;;  %v4372_v35 = vld [vmem:[%s4464_s19 + $0xb4] sm:$0xff]  }
 0x103   : > { %v2205_v58 = vpop.permute.xlu0 %2204  ;;  %v1041_v63 = vsel %vm4466_vm2, %v1039_v13, %v1040_v23  ;;  %v1101_v2 = vsel %vm4466_vm2, %v3801_v39, %v1100_v59  ;;  %v1102_v3 = vrot.slane %v1100_v59, 4  ;;  %v1784_v10 = vshrl.u32 %v3908_v53, 16  ;;  %v3912_v41 = vld [vmem:[%s4464_s19 + $0xc4] sm:$0xf]  ;;  %v3913_v54 = vld [vmem:[%s4464_s19 + $0xc8] sm:$0x1] }
 0x104   : > { %v2223_v60 = vpop.permute.xlu1 %2222  ;;  %2251 = vst.msk [vmem:[#allocation2 + $0x10] sm:$0xff] %vm2248_vm11, %v2205_v58  ;;  %v3808_v7 = vcombine.low %v1038_v57, %v1041_v63  ;;  %v1045_v8 = vsel %vm4466_vm2, %v3793_v61, %v1044_v46  ;;  %v1046_v9 = vrot.slane %v1044_v46, 4  ;;  %843 = vrot.lane.b32.xlu0 %v3777_v62, %s4414_s22  ;;  %v1787_v14 = vshll.u32 %v3908_v53, 16  ;;  %v3887_v13 = vld [vmem:[%s4464_s19 + $0x60] sm:$0xf] }
 0x105   : > { %2260 = vst.msk [vmem:[#allocation2 + $0x58] sm:$0xff] %vm2248_vm11, %v2223_v60  ;;  %1181 = vrot.lane.b32.xlu1 %v3816_v55, %s4413_s21  ;;  %v1104_v11 = vsel %vm4466_vm2, %v1102_v3, %v1103_v48  ;;  %v1793_v16 = vshll.u32 %v3909_v56, 16  ;;  %v1797_v17 = vshrl.u32 %v3909_v56, 16  ;;  %v1786_v21 = vrot.slane %v1784_v10, 4  ;;  %v4373_v55 = vld [vmem:[%s4464_s19 + $0x54] sm:$0xff]   ;;  %v4374_v59 = vld [vmem:[%s4464_s19 + $0xc0] sm:$0xff]  }
 0x106   : > { %v3817_v19 = vcombine.low %v1101_v2, %v1104_v11  ;;  %v1048_v20 = vsel %vm4466_vm2, %v1046_v9, %v1047_v15  ;;  %v1803_v25 = vshll.u32 %v3910_v45, 16  ;;  %v1789_v28 = vrot.slane %v1787_v14, 5  ;;  %v3888_v22 = vld [vmem:[%s4464_s19 + $0x64] sm:$0xf]  ;;  %v3889_v3 = vld [vmem:[%s4464_s19 + $0x68] sm:$0x1] }
 0x107   : > { %v2207_v12 = vpop.permute.xlu0 %2206  ;;  %v3809_v27 = vcombine.low %v1045_v8, %v1048_v20  ;;  %v1795_v24 = vrot.slane %v1793_v16, 5  ;;  %v1799_v29 = vrot.slane %v1797_v17, 4  ;;  %v1592_v32 = vshrl.u32 %v3884_v4, 16  ;;  %v3973_v11 = vld [vmem:[%s4464_s19 + $0xb8] sm:$0xf] }
 0x108   : > { %v2402_v18 = vpop.permute.xlu1 %2401  ;;  %2252 = vst.msk [vmem:[#allocation2 + $0x18] sm:$0xff] %vm2248_vm11, %v2207_v12  ;;  %v1805_v31 = vrot.slane %v1803_v25, 5  ;;  %v1595_v33 = vshll.u32 %v3884_v4, 16  ;;  %v1601_v34 = vshll.u32 %v3885_v6, 16  ;;  %1165 = vrot.lane.b32.xlu0 %v3808_v7, %s4413_s21  ;;  %v1790_v36 = vor.u32 %v1789_v28, %v1786_v21  ;;  %v3972_v4 = vld [vmem:[%s4464_s19 + $0xb4] sm:$0xe] }
 0x109   : > { %2440 = vst.msk [vmem:[#allocation2 + $0x50] sm:$0xff] %vm2429_vm12, %v2402_v18  ;;  %1183 = vrot.lane.b32.xlu1 %v3817_v19, %s4413_s21  ;;  %v1800_v1 = vor.u32 %v1799_v29, %v1795_v24  ;;  %v1605_v37 = vshrl.u32 %v3885_v6, 16  ;;  %v1611_v38 = vshll.u32 %v3886_v26, 16  ;;  %v1594_v43 = vrot.slane %v1592_v32, 4  ;;  %v4375_v6 = vld [vmem:[%s4464_s19 + $0x60] sm:$0xff]  }
 0x10a   : > { %v1597_v44 = vrot.slane %v1595_v33, 5  ;;  %v1603_v47 = vrot.slane %v1601_v34, 5  ;;  %v1808_v49 = vshrl.u32 %v3911_v30, 16  ;;  %v1791_v50 = vrot.slane %v1790_v36, 4  ;;  %v3974_v12 = vld [vmem:[%s4464_s19 + $0xbc] sm:$0x1] }
 0x10b   : > { %v2386_v40 = vpop.permute.xlu0 %2385  ;;  %v1801_v51 = vrot.slane %v1800_v1, 4  ;;  %v1607_v52 = vrot.slane %v1605_v37, 4  ;;  %v1613_v53 = vrot.slane %v1611_v38, 5  ;;  %v1811_v56 = vshll.u32 %v3911_v30, 16  ;;  %v3948_v19 = vld [vmem:[%s4464_s19 + $0x54] sm:$0xe] }
 0x10c   : > { %v2404_v42 = vpop.permute.xlu1 %2403  ;;  %2432 = vst.msk [vmem:[#allocation2 + $0x10] sm:$0xff] %vm2429_vm12, %v2386_v40  ;;  %v1598_v23 = vor.u32 %v1597_v44, %v1594_v43  ;;  %v1810_v39 = vrot.slane %v1808_v49, 4  ;;  %v1817_v57 = vshll.u32 %v3912_v41, 16  ;;  %1167 = vrot.lane.b32.xlu0 %v3809_v27, %s4413_s21  ;;  %v1796_v48 = vsel %vm4516_vm5, %v1791_v50, %v1795_v24  ;;  %v3949_v32 = vld [vmem:[%s4464_s19 + $0x58] sm:$0xf] }
 0x10d   : > { %2441 = vst.msk [vmem:[#allocation2 + $0x58] sm:$0xff] %vm2429_vm12, %v2404_v42  ;;  %1362 = vrot.lane.b32.xlu1 %v4372_v35, %s4412_s20  ;;  %v1806_v58 = vsel %vm4516_vm5, %v1801_v51, %v1805_v31  ;;  %v1608_v60 = vor.u32 %v1607_v52, %v1603_v47  ;;  %v1821_v45 = vshrl.u32 %v3912_v41, 16  ;;  %v1813_v63 = vrot.slane %v1811_v56, 5  ;;  %v3950_v1 = vld [vmem:[%s4464_s19 + $0x5c] sm:$0x1] }
 0x10e   : > { %v3928_v15 = vcombine.low %v1796_v48, %v1806_v58  ;;  %v1599_v62 = vrot.slane %v1598_v23, 4  ;;  %v1819_v2 = vrot.slane %v1817_v57, 5  ;;  %v1827_v9 = vshll.u32 %v3913_v54, 16  ;;  %v3975_v42 = vld [vmem:[%s4464_s19 + $0xc0] sm:$0xe] }
 0x10f   : > { %v2388_v61 = vpop.permute.xlu0 %2387  ;;  %v1609_v7 = vrot.slane %v1608_v60, 4  ;;  %v1823_v8 = vrot.slane %v1821_v45, 4  ;;  %v1616_v10 = vshrl.u32 %v3887_v13, 16  ;;  %v1814_v16 = vor.u32 %v1813_v63, %v1810_v39  ;;  %v3976_v43 = vld [vmem:[%s4464_s19 + $0xc4] sm:$0xf] }
 0x110   : > { %v2947_v46 = vpop.permute.xlu1 %2946  ;;  %2433 = vst.msk [vmem:[#allocation2 + $0x18] sm:$0xff] %vm2429_vm12, %v2388_v61  ;;  %v1604_v14 = vsel %vm4516_vm5, %v1599_v62, %v1603_v47  ;;  %v1619_v17 = vshll.u32 %v3887_v13, 16  ;;  %v1625_v18 = vshll.u32 %v3888_v22, 16  ;;  %1346 = vrot.lane.b32.xlu0 %v4373_v55, %s4412_s20  ;;  %v1829_v25 = vrot.slane %v1827_v9, 5  ;;  %v3977_v51 = vld [vmem:[%s4464_s19 + $0xc8] sm:$0x1] }
 0x111   : > { %2985 = vst.msk [vmem:[#allocation2 + $0x50] sm:$0xff] %vm2974_vm13, %v2947_v46  ;;  %1364 = vrot.lane.b32.xlu1 %v4374_v59, %s4412_s20  ;;  %v1614_v20 = vsel %vm4516_vm5, %v1609_v7, %v1613_v53  ;;  %v1824_v21 = vor.u32 %v1823_v8, %v1819_v2  ;;  %v1618_v26 = vrot.slane %v1616_v10, 4  ;;  %v1815_v29 = vrot.slane %v1814_v16, 4  ;;  %v3951_v56 = vld [vmem:[%s4464_s19 + $0x60] sm:$0xe] }
 0x112   : > { %v3920_v24 = vcombine.low %v1604_v14, %v1614_v20  ;;  %v1621_v30 = vrot.slane %v1619_v17, 5  ;;  %v5361_v31 = vrot.slane %v1625_v18, 5  ;;  %v1629_v34 = vshrl.u32 %v3888_v22, 16  ;;  %v3952_v58 = vld [vmem:[%s4464_s19 + $0x64] sm:$0xf] }
 0x113   : > { %v2931_v27 = vpop.permute.xlu0 %2930  ;;  %v1825_v33 = vrot.slane %v1824_v21, 4  ;;  %v1635_v35 = vshll.u32 %v3889_v3, 16  ;;  %v3992_v36 = vrot.slane %v3972_v4, 9  ;;  %v1820_v37 = vsel %vm4516_vm5, %v1815_v29, %v1819_v2  ;;  %v3953_v46 = vld [vmem:[%s4464_s19 + $0x68] sm:$0x1] }
 0x114   : > { %v2949_v28 = vpop.permute.xlu1 %2948  ;;  %2977 = vst.msk [vmem:[#allocation2 + $0x10] sm:$0xff] %vm2974_vm13, %v2931_v27  ;;  %v1622_v38 = vor.u32 %v1621_v30, %v1618_v26  ;;  %v2140_v40 = vrot.slane %v3973_v11, 5  ;;  %v2143_v41 = vrot.slane %v3974_v12, 5  ;;  %1348 = vrot.lane.b32.xlu0 %v4375_v6, %s4412_s20  ;;  %v1631_v47 = vrot.slane %v1629_v34, 4  ;;  %v4101_v6 = vld [vmem:[%s4464_s19 + $0xc4] sm:$0xf]  ;;  %s5580_s20 = scalar_lea.vmem %s5656_s3, %s4226_s17 }
 0x115   : > { %2986 = vst.msk [vmem:[#allocation2 + $0x58] sm:$0xff] %vm2974_vm13, %v2949_v28  ;;  %1907 = vrot.lane.b32.xlu1 %v3928_v15, %s4415_s23  ;;  %v1830_v44 = vsel %vm4516_vm5, %v1825_v33, %v1829_v25  ;;  %v1637_v49 = vrot.slane %v1635_v35, 5  ;;  %v3984_v50 = vrot.slane %v3948_v19, 9  ;;  %v2084_v13 = vrot.slane %v3949_v32, 5  ;;  %v4100_v15 = vld [vmem:[%s4464_s19 + $0xc0] sm:$0xf] }
 0x116   : > { %v3929_v54 = vcombine.low %v1820_v37, %v1830_v44  ;;  %v1623_v55 = vrot.slane %v1622_v38, 4  ;;  %v2141_v23 = vsel %vm4466_vm2, %v3992_v36, %v2140_v40  ;;  %v2142_v39 = vrot.slane %v2140_v40, 4  ;;  %v4102_v7 = vld [vmem:[%s4464_s19 + $0xc8] sm:$0x1]  ;;  %v4076_v8 = vld [vmem:[%s4464_s19 + $0x60] sm:$0xf] }
 0x117   : > { %v2933_v52 = vpop.permute.xlu0 %2932  ;;  %v1632_v57 = vor.u32 %v1631_v47, %v5361_v31  ;;  %v2087_v59 = vrot.slane %v3950_v1, 5  ;;  %v3993_v48 = vrot.slane %v3975_v42, 9  ;;  %v2147_v22 = vrot.slane %v3976_v43, 5  ;;  %v4077_v14 = vld [vmem:[%s4464_s19 + $0x64] sm:$0xf] }
 0x118   : > { %v3268_v53 = vpop.permute.xlu1 %3267  ;;  %2978 = vst.msk [vmem:[#allocation2 + $0x18] sm:$0xff] %vm2974_vm13, %v2933_v52  ;;  %v1628_v60 = vsel %vm4516_vm5, %v1623_v55, %v5361_v31  ;;  %v2144_v45 = vsel %vm4466_vm2, %v2142_v39, %v2143_v41  ;;  %v2150_v61 = vrot.slane %v3977_v51, 5  ;;  %1891 = vrot.lane.b32.xlu0 %v3920_v24, %s4415_s23  ;;  %v2085_v2 = vsel %vm4466_vm2, %v3984_v50, %v2084_v13  ;;  %v4078_v31 = vld [vmem:[%s4464_s19 + $0x68] sm:$0x1]  ;;  %v4103_v42 = vld [vmem:[%s4464_s19 + $0xcc] sm:$0xf] }
 0x119   : > { %3306 = vst.msk [vmem:[#allocation2 + $0x50] sm:$0xff] %vm3295_vm14, %v3268_v53  ;;  %1909 = vrot.lane.b32.xlu1 %v3929_v54, %s4415_s23  ;;  %v1633_v62 = vrot.slane %v1632_v57, 4  ;;  %v4008_v63 = vcombine.low %v2141_v23, %v2144_v45  ;;  %v2086_v3 = vrot.slane %v2084_v13, 4  ;;  %v2148_v9 = vsel %vm4466_vm2, %v3993_v48, %v2147_v22  ;;  %v4104_v50 = vld [vmem:[%s4464_s19 + $0xd0] sm:$0xf]  ;;  %v4376_v51 = vld [vmem:[%s4464_s19 + $0xc0] sm:$0xff]  }
 0x11a   : > { %v2149_v10 = vrot.slane %v2147_v22, 4  ;;  %v3985_v11 = vrot.slane %v3951_v56, 9  ;;  %v2091_v12 = vrot.slane %v3952_v58, 5  ;;  %v2094_v18 = vrot.slane %v3953_v46, 5  ;;  %v4105_v45 = vld [vmem:[%s4464_s19 + $0xd4] sm:$0x1] }
 0x11b   : > { %v3252_v4 = vpop.permute.xlu0 %3251  ;;  %v1638_v16 = vsel %vm4516_vm5, %v1633_v62, %v1637_v49  ;;  %v2088_v17 = vsel %vm4466_vm2, %v2086_v3, %v2087_v59  ;;  %v2831_v19 = vshrl.u32 %v4100_v15, 16  ;;  %v2834_v30 = vshll.u32 %v4100_v15, 16  ;;  %v4378_v3 = vld [vmem:[%s4464_s19 + $0xcc] sm:$0xff]  }
 0x11c   : > { %3298 = vst.msk [vmem:[#allocation2 + $0x10] sm:$0xff] %vm3295_vm14, %v3252_v4  ;;  %v3921_v20 = vcombine.low %v1628_v60, %v1638_v16  ;;  %v4000_v21 = vcombine.low %v2085_v2, %v2088_v17  ;;  %v2151_v25 = vsel %vm4466_vm2, %v2149_v10, %v2150_v61  ;;  %v2092_v26 = vsel %vm4466_vm2, %v3985_v11, %v2091_v12  ;;  %v4079_v2 = vld [vmem:[%s4464_s19 + $0x6c] sm:$0xf]  ;;  %v4080_v16 = vld [vmem:[%s4464_s19 + $0x70] sm:$0xf] }
 0x11d   : > { %2228 = vrot.lane.b32.xlu1 %v4008_v63, %s4416_s24  ;;  %v4009_v27 = vcombine.low %v2148_v9, %v2151_v25  ;;  %v2093_v28 = vrot.slane %v2091_v12, 4  ;;  %v2833_v29 = vrot.slane %v2831_v19, 4  ;;  %v2840_v33 = vshll.u32 %v4101_v6, 16  ;;  %v4377_v9 = vld [vmem:[%s4464_s19 + $0x60] sm:$0xff]  }
 0x11e   : > { %1893 = vrot.lane.b32.xlu0 %v3921_v20, %s4415_s23  ;;  %v2844_v34 = vshrl.u32 %v4101_v6, 16  ;;  %v2850_v35 = vshll.u32 %v4102_v7, 16  ;;  %v2639_v36 = vshrl.u32 %v4076_v8, 16  ;;  %v2836_v38 = vrot.slane %v2834_v30, 5  ;;  %v4081_v20 = vld [vmem:[%s4464_s19 + $0x74] sm:$0x1] }
 0x11f   : > { %v854_v24 = vpop.permute.xlu1 %853  ;;  %v2095_v1 = vsel %vm4466_vm2, %v2093_v28, %v2094_v18  ;;  %v2642_v40 = vshll.u32 %v4076_v8, 16  ;;  %v2648_v41 = vshll.u32 %v4077_v14, 16  ;;  %v2842_v44 = vrot.slane %v2840_v33, 5  ;;  %v4164_v25 = vld [vmem:[%s4464_s19 + $0xc0] sm:$0xe] }
 0x120   : > { %v3322_v32 = vld [vmem:[#allocation2 + $0x50] sm:$0xff]  ;;  %890 = vst.msk [vmem:[#allocation2 + $0x60] sm:$0xff] %vm877_vm7, %v854_v24  ;;  %v4001_v43 = vcombine.low %v2092_v26, %v2095_v1  ;;  %v2846_v47 = vrot.slane %v2844_v34, 4  ;;  %v2852_v49 = vrot.slane %v2850_v35, 5  ;;  %v2837_v52 = vor.u32 %v2836_v38, %v2833_v29  ;;  %v4165_v29 = vld [vmem:[%s4464_s19 + $0xc4] sm:$0xf] }
 0x121   : > { %4278 = vmatprep.mubr.msk.bf16.mxu1 %vm3371_vm15, %v3322_v32  ;;  %v838_v37 = vpop.permute.xlu0 %837  ;;  %2230 = vrot.lane.b32.xlu1 %v4009_v27, %s4416_s24  ;;  %v2641_v53 = vrot.slane %v2639_v36, 4  ;;  %v2644_v54 = vrot.slane %v2642_v40, 5  ;;  %v5421_v55 = vrot.slane %v2648_v41, 5  ;;  %v2652_v57 = vshrl.u32 %v4077_v14, 16  ;;  %v4166_v30 = vld [vmem:[%s4464_s19 + $0xc8] sm:$0x1] }
 0x122   : > { %882 = vst.msk [vmem:[#allocation2 + $0x20] sm:$0xff] %vm877_vm7, %v838_v37  ;;  %2212 = vrot.lane.b32.xlu0 %v4000_v21, %s4416_s24  ;;  %v2847_v56 = vor.u32 %v2846_v47, %v2842_v44  ;;  %v2658_v13 = vshll.u32 %v4078_v31, 16  ;;  %v2855_v59 = vshrl.u32 %v4103_v42, 16  ;;  %v2838_v48 = vrot.slane %v2837_v52, 4  ;;  %v4379_v31 = vld [vmem:[%s4464_s19 + $0x6c] sm:$0xff]  }
 0x123   : > { %v3270_v23 = vpop.permute.xlu1 %3269  ;;  %v3314_v39 = vld [vmem:[#allocation2 + $0x10] sm:$0xff]  ;;  %v2645_v58 = vor.u32 %v2644_v54, %v2641_v53  ;;  %v2858_v22 = vshll.u32 %v4103_v42, 16  ;;  %v2864_v61 = vshll.u32 %v4104_v50, 16  ;;  %v2654_v15 = vrot.slane %v2652_v57, 4  ;;  %v4140_v42 = vld [vmem:[%s4464_s19 + $0x60] sm:$0xe] }
 0x124   : > { %3307 = vst.msk [vmem:[#allocation2 + $0x58] sm:$0xff] %vm3295_vm14, %v3270_v23  ;;  %4262 = vmatprep.mubr.msk.bf16.mxu0 %vm3371_vm15, %v3314_v39  ;;  %v2848_v46 = vrot.slane %v2847_v56, 4  ;;  %v2660_v62 = vrot.slane %v2658_v13, 5  ;;  %v2857_v63 = vrot.slane %v2855_v59, 4  ;;  %v2843_v4 = vsel %vm4516_vm5, %v2838_v48, %v2842_v44  ;;  %v4167_v56 = vld [vmem:[%s4464_s19 + $0xcc] sm:$0xe] }
 0x125   : > { %v3254_v60 = vpop.permute.xlu0 %3253  ;;  %2409 = vrot.lane.b32.xlu1 %v4376_v51, %s4417_s25  ;;  %v2646_v6 = vrot.slane %v2645_v58, 4  ;;  %v2860_v7 = vrot.slane %v2858_v22, 5  ;;  %v5433_v8 = vrot.slane %v2864_v61, 5  ;;  %v2655_v11 = vor.u32 %v2654_v15, %v5421_v55  ;;  %v4142_v51 = vld [vmem:[%s4464_s19 + $0x68] sm:$0x1] }
 0x126   : > { %3299 = vst.msk [vmem:[#allocation2 + $0x18] sm:$0xff] %vm3295_vm14, %v3254_v60  ;;  %2214 = vrot.lane.b32.xlu0 %v4001_v43, %s4416_s24  ;;  %v2853_v10 = vsel %vm4516_vm5, %v2848_v46, %v2852_v49  ;;  %v2868_v12 = vshrl.u32 %v4104_v50, 16  ;;  %v2874_v14 = vshll.u32 %v4105_v45, 16  ;;  %v2663_v21 = vshrl.u32 %v4079_v2, 16  ;;  %v4141_v43 = vld [vmem:[%s4464_s19 + $0x64] sm:$0xf] }
 0x127   : > { %v4120_v17 = vcombine.low %v2843_v4, %v2853_v10  ;;  %v2651_v18 = vsel %vm4516_vm5, %v2646_v6, %v5421_v55  ;;  %v2861_v19 = vor.u32 %v2860_v7, %v2857_v63  ;;  %v2656_v26 = vrot.slane %v2655_v11, 4  ;;  %v4168_v60 = vld [vmem:[%s4464_s19 + $0xd0] sm:$0xf]  ;;  %v4169_v15 = vld [vmem:[%s4464_s19 + $0xd4] sm:$0x1] }
 0x128   : > { %v2870_v27 = vrot.slane %v2868_v12, 4  ;;  %v2876_v28 = vrot.slane %v2874_v14, 5  ;;  %v2666_v24 = vshll.u32 %v4079_v2, 16  ;;  %v2665_v33 = vrot.slane %v2663_v21, 4  ;;  %v4144_v10 = vld [vmem:[%s4464_s19 + $0x70] sm:$0xf] }
 0x129   : > { %2411 = vrot.lane.b32.xlu1 %v4378_v3, %s4417_s25  ;;  %v2862_v32 = vrot.slane %v2861_v19, 4  ;;  %v2672_v34 = vshll.u32 %v4080_v16, 16  ;;  %v2676_v35 = vshrl.u32 %v4080_v16, 16  ;;  %v2661_v37 = vsel %vm4516_vm5, %v2656_v26, %v2660_v62 }
 0x12a   : > { %2393 = vrot.lane.b32.xlu0 %v4377_v9, %s4417_s25  ;;  %v2871_v38 = vor.u32 %v2870_v27, %v5433_v8  ;;  %v2668_v40 = vrot.slane %v2666_v24, 5  ;;  %v2682_v41 = vshll.u32 %v4081_v20, 16  ;;  %v4112_v44 = vcombine.low %v2651_v18, %v2661_v37  ;;  %v4143_v9 = vld [vmem:[%s4464_s19 + $0x6c] sm:$0xe] }
 0x12b   : > { %v856_v36 = vpop.permute.xlu1 %855  ;;  %v3323_v1 = vld [vmem:[#allocation2 + $0x58] sm:$0xff]  ;;  %v2867_v47 = vsel %vm4516_vm5, %v2862_v32, %v5433_v8  ;;  %v2674_v49 = vrot.slane %v2672_v34, 5  ;;  %v2678_v50 = vrot.slane %v2676_v35, 4  ;;  %v4184_v39 = vrot.slane %v4164_v25, 9 }
 0x12c   : > { %891 = vst.msk [vmem:[#allocation2 + $0x68] sm:$0xff] %vm877_vm7, %v856_v36  ;;  %4279 = vmatmul.mubr.msk.bf16.gmra.mrb[4].mxu1 %vm3371_vm15, %v3323_v1  ;;  %v2872_v53 = vrot.slane %v2871_v38, 4  ;;  %v2669_v54 = vor.u32 %v2668_v40, %v2665_v33  ;;  %v2684_v55 = vrot.slane %v2682_v41, 5  ;;  %v3187_v13 = vrot.slane %v4165_v29, 5 }
 0x12d   : > { %v3315_v52 = vld [vmem:[#allocation2 + $0x18] sm:$0xff]  ;;  %v840_v23 = vpop.permute.xlu0 %839  ;;  %2954 = vrot.lane.b32.xlu1 %v4120_v17, %s4418_s26  ;;  %v2679_v57 = vor.u32 %v2678_v50, %v2674_v49  ;;  %v3190_v59 = vrot.slane %v4166_v30, 5  ;;  %v4176_v48 = vrot.slane %v4140_v42, 9  ;;  %v3131_v61 = vrot.slane %v4141_v43, 5  ;;  %v4145_v17 = vld [vmem:[%s4464_s19 + $0x74] sm:$0x1] }
 0x12e   : > { %4263 = vmatmul.mubr.msk.bf16.gmra.mrb[4].mxu0 %vm3371_vm15, %v3315_v52  ;;  %883 = vst.msk [vmem:[#allocation2 + $0x28] sm:$0xff] %vm877_vm7, %v840_v23  ;;  %2395 = vrot.lane.b32.xlu0 %v4379_v31, %s4417_s25  ;;  %v2877_v45 = vsel %vm4516_vm5, %v2872_v53, %v2876_v28  ;;  %v2670_v22 = vrot.slane %v2669_v54, 4  ;;  %v3134_v46 = vrot.slane %v4142_v51, 5  ;;  %v3188_v2 = vsel %vm4466_vm2, %v4184_v39, %v3187_v13 }
 0x12f   : > { %v1178_v58 = vpop.permute.xlu1 %1177  ;;  %v4121_v62 = vcombine.low %v2867_v47, %v2877_v45  ;;  %v2680_v63 = vrot.slane %v2679_v57, 4  ;;  %v3189_v3 = vrot.slane %v3187_v13, 4  ;;  %v3133_v6 = vrot.slane %v3131_v61, 4 }
 0x130   : > { %1214 = vst.msk [vmem:[#allocation2 + $0x60] sm:$0xff] %vm1201_vm8, %v1178_v58  ;;  %v2675_v4 = vsel %vm4516_vm5, %v2670_v22, %v2674_v49  ;;  %v4185_v8 = vrot.slane %v4167_v56, 9  ;;  %v3194_v14 = vrot.slane %v4168_v60, 5  ;;  %v3197_v16 = vrot.slane %v4169_v15, 5 }
 0x131   : > { %v1162_v7 = vpop.permute.xlu0 %1161  ;;  %2956 = vrot.lane.b32.xlu1 %v4121_v62, %s4418_s26  ;;  %v2685_v11 = vsel %vm4516_vm5, %v2680_v63, %v2684_v55  ;;  %v3191_v12 = vsel %vm4466_vm2, %v3189_v3, %v3190_v59  ;;  %v3132_v21 = vsel %vm4466_vm2, %v4176_v48, %v3131_v61  ;;  %v3135_v5 = vsel %vm4466_vm2, %v3133_v6, %v3134_v46 }
 0x132   : > { %1206 = vst.msk [vmem:[#allocation2 + $0x20] sm:$0xff] %vm1201_vm8, %v1162_v7  ;;  %2938 = vrot.lane.b32.xlu0 %v4112_v44, %s4418_s26  ;;  %v4113_v19 = vcombine.low %v2675_v4, %v2685_v11  ;;  %v4200_v20 = vcombine.low %v3188_v2, %v3191_v12  ;;  %v3195_v25 = vsel %vm4466_vm2, %v4185_v8, %v3194_v14  ;;  %v3196_v26 = vrot.slane %v3194_v14, 4 }
 0x133   : > { %v1180_v18 = vpop.permute.xlu1 %1179  ;;  %v4177_v27 = vrot.slane %v4143_v9, 9  ;;  %v3138_v28 = vrot.slane %v4144_v10, 5  ;;  %v3141_v24 = vrot.slane %v4145_v17, 5  ;;  %v4192_v33 = vcombine.low %v3132_v21, %v3135_v5 }
 0x134   : > { %1215 = vst.msk [vmem:[#allocation2 + $0x68] sm:$0xff] %vm1201_vm8, %v1180_v18  ;;  %v3198_v30 = vsel %vm4466_vm2, %v3196_v26, %v3197_v16 }
 0x135   : > { %v1164_v29 = vpop.permute.xlu0 %1163  ;;  %3275 = vrot.lane.b32.xlu1 %v4200_v20, %s4419_s27  ;;  %v3140_v31 = vrot.slane %v3138_v28, 4  ;;  %v4201_v34 = vcombine.low %v3195_v25, %v3198_v30  ;;  %v3139_v35 = vsel %vm4466_vm2, %v4177_v27, %v3138_v28 }
 0x136   : > { %1207 = vst.msk [vmem:[#allocation2 + $0x28] sm:$0xff] %vm1201_vm8, %v1164_v29  ;;  %2940 = vrot.lane.b32.xlu0 %v4113_v19, %s4418_s26 }
 0x137   : > { %v1359_v32 = vpop.permute.xlu1 %1358  ;;  %v3142_v36 = vsel %vm4466_vm2, %v3140_v31, %v3141_v24 }
 0x138   : > { %1395 = vst.msk [vmem:[#allocation2 + $0x60] sm:$0xff] %vm1382_vm9, %v1359_v32  ;;  %v4193_v38 = vcombine.low %v3139_v35, %v3142_v36 }
 0x139   : > { %v1343_v1 = vpop.permute.xlu0 %1342  ;;  %3277 = vrot.lane.b32.xlu1 %v4201_v34, %s4419_s27 }
 0x13a   : > { %1387 = vst.msk [vmem:[#allocation2 + $0x20] sm:$0xff] %vm1382_vm9, %v1343_v1  ;;  %3259 = vrot.lane.b32.xlu0 %v4192_v33, %s4419_s27  ;;  %v5572_v1 = vld [vmem:[%s5655_s2] ss:$0 sm:$0xff] }
 0x13b   : > { %v1361_v37 = vpop.permute.xlu1 %1360 }
 0x13c   : > { %1396 = vst.msk [vmem:[#allocation2 + $0x68] sm:$0xff] %vm1382_vm9, %v1361_v37 }
 0x13d   : > { %v1345_v40 = vpop.permute.xlu0 %1344 }
 0x13e   : > { %1388 = vst.msk [vmem:[#allocation2 + $0x28] sm:$0xff] %vm1382_vm9, %v1345_v40  ;;  %3261 = vrot.lane.b32.xlu0 %v4193_v38, %s4419_s27 }
 0x13f   : > { %v1904_v41 = vpop.permute.xlu1 %1903 }
 0x140   : > { %1940 = vst.msk [vmem:[#allocation2 + $0x60] sm:$0xff] %vm1927_vm10, %v1904_v41 }
 0x141   : > { %v1888_v0 = vpop.permute.xlu0 %1887 }
 0x142   : > { %1932 = vst.msk [vmem:[#allocation2 + $0x20] sm:$0xff] %vm1927_vm10, %v1888_v0 }
 0x143   : > { %v1906_v42 = vpop.permute.xlu1 %1905 }
 0x144   : > { %1941 = vst.msk [vmem:[#allocation2 + $0x68] sm:$0xff] %vm1927_vm10, %v1906_v42 }
 0x147   : > { %v2225_v43 = vpop.permute.xlu1 %2224  ;;  %v1890_v44 = vpop.permute.xlu0 %1889 }
 0x148   : > { %2261 = vst.msk [vmem:[#allocation2 + $0x60] sm:$0xff] %vm2248_vm11, %v2225_v43 }
 0x149   : > { %1933 = vst.msk [vmem:[#allocation2 + $0x28] sm:$0xff] %vm1927_vm10, %v1890_v44 }
 0x14b   : > { %v2227_v47 = vpop.permute.xlu1 %2226  ;;  %v2209_v49 = vpop.permute.xlu0 %2208 }
 0x14c   : > { %2262 = vst.msk [vmem:[#allocation2 + $0x68] sm:$0xff] %vm2248_vm11, %v2227_v47  ;;  %2253 = vst.msk [vmem:[#allocation2 + $0x20] sm:$0xff] %vm2248_vm11, %v2209_v49 }
 0x14f   : > { %v2406_v50 = vpop.permute.xlu1 %2405  ;;  %v2211_v51 = vpop.permute.xlu0 %2210 }
 0x150   : > { %2442 = vst.msk [vmem:[#allocation2 + $0x60] sm:$0xff] %vm2429_vm12, %v2406_v50 }
 0x151   : > { %2254 = vst.msk [vmem:[#allocation2 + $0x28] sm:$0xff] %vm2248_vm11, %v2211_v51 }
 0x153   : > { %v2408_v52 = vpop.permute.xlu1 %2407  ;;  %v2390_v53 = vpop.permute.xlu0 %2389 }
 0x154   : > { %2443 = vst.msk [vmem:[#allocation2 + $0x68] sm:$0xff] %vm2429_vm12, %v2408_v52  ;;  %2434 = vst.msk [vmem:[#allocation2 + $0x20] sm:$0xff] %vm2429_vm12, %v2390_v53 }
 0x157   : > { %v2951_v54 = vpop.permute.xlu1 %2950  ;;  %v2392_v55 = vpop.permute.xlu0 %2391 }
 0x158   : > { %2987 = vst.msk [vmem:[#allocation2 + $0x60] sm:$0xff] %vm2974_vm13, %v2951_v54 }
 0x159   : > { %2435 = vst.msk [vmem:[#allocation2 + $0x28] sm:$0xff] %vm2429_vm12, %v2392_v55 }
 0x15b   : > { %v2935_v23 = vpop.permute.xlu0 %2934  ;;  %v2953_v39 = vpop.permute.xlu1 %2952 }
 0x15c   : > { %2979 = vst.msk [vmem:[#allocation2 + $0x20] sm:$0xff] %vm2974_vm13, %v2935_v23  ;;  %2988 = vst.msk [vmem:[#allocation2 + $0x68] sm:$0xff] %vm2974_vm13, %v2953_v39 }
 0x15f   : > { %v2937_v56 = vpop.permute.xlu0 %2936  ;;  %v3272_v57 = vpop.permute.xlu1 %3271 }
 0x160   : > { %2980 = vst.msk [vmem:[#allocation2 + $0x28] sm:$0xff] %vm2974_vm13, %v2937_v56 }
 0x161   : > { %3308 = vst.msk [vmem:[#allocation2 + $0x60] sm:$0xff] %vm3295_vm14, %v3272_v57 }
 0x163   : > { %v3256_v13 = vpop.permute.xlu0 %3255 }
 0x164   : > { %3300 = vst.msk [vmem:[#allocation2 + $0x20] sm:$0xff] %vm3295_vm14, %v3256_v13 }
 0x168   : > { %v3324_v59 = vld [vmem:[#allocation2 + $0x60] sm:$0xff]  ;;  %v858_v48 = vpop.permute.xlu1 %857 }
 0x169   : > { %4282 = vmatprep.mubr.msk.bf16.mxu1 %vm3371_vm15, %v3324_v59  ;;  %892 = vst.msk [vmem:[#allocation2 + $0x70] sm:$0xff] %vm877_vm7, %v858_v48 }
 0x16a   : > { %v842_v58 = vpop.permute.xlu0 %841 }
 0x16b   : > { %v3316_v60 = vld [vmem:[#allocation2 + $0x20] sm:$0xff]  ;;  %884 = vst.msk [vmem:[#allocation2 + $0x30] sm:$0xff] %vm877_vm7, %v842_v58 }
 0x16c   : > { %4266 = vmatprep.mubr.msk.bf16.mxu0 %vm3371_vm15, %v3316_v60  ;;  %v3274_v45 = vpop.permute.xlu1 %3273 }
 0x16d   : > { %3309 = vst.msk [vmem:[#allocation2 + $0x68] sm:$0xff] %vm3295_vm14, %v3274_v45 }
 0x16e   : > { %v3258_v22 = vpop.permute.xlu0 %3257 }
 0x16f   : > { %3301 = vst.msk [vmem:[#allocation2 + $0x28] sm:$0xff] %vm3295_vm14, %v3258_v22 }
 0x173   : > { %v860_v61 = vpop.permute.xlu1 %859 }
 0x174   : > { %893 = vst.msk [vmem:[#allocation2 + $0x78] sm:$0xff] %vm877_vm7, %v860_v61  ;;  %v3325_v46 = vld [vmem:[#allocation2 + $0x68] sm:$0xff] }
 0x175   : > { %4283 = vmatmul.mubr.msk.bf16.gmra.mrb[8].mxu1 %vm3371_vm15, %v3325_v46 }
 0x176   : > { %v3317_v15 = vld [vmem:[#allocation2 + $0x28] sm:$0xff]  ;;  %v844_v62 = vpop.permute.xlu0 %843 }
 0x177   : > { %v1182_v63 = vpop.permute.xlu1 %1181  ;;  %4267 = vmatmul.mubr.msk.bf16.gmra.mrb[8].mxu0 %vm3371_vm15, %v3317_v15  ;;  %885 = vst.msk [vmem:[#allocation2 + $0x38] sm:$0xff] %vm877_vm7, %v844_v62 }
 0x178   : > { %1216 = vst.msk [vmem:[#allocation2 + $0x70] sm:$0xff] %vm1201_vm8, %v1182_v63 }
 0x17a   : > { %v1166_v2 = vpop.permute.xlu0 %1165 }
 0x17b   : > { %v1184_v3 = vpop.permute.xlu1 %1183  ;;  %1208 = vst.msk [vmem:[#allocation2 + $0x30] sm:$0xff] %vm1201_vm8, %v1166_v2 }
 0x17c   : > { %1217 = vst.msk [vmem:[#allocation2 + $0x78] sm:$0xff] %vm1201_vm8, %v1184_v3 }
 0x17e   : > { %v1168_v4 = vpop.permute.xlu0 %1167 }
 0x17f   : > { %v1363_v6 = vpop.permute.xlu1 %1362  ;;  %1209 = vst.msk [vmem:[#allocation2 + $0x38] sm:$0xff] %vm1201_vm8, %v1168_v4 }
 0x180   : > { %1397 = vst.msk [vmem:[#allocation2 + $0x70] sm:$0xff] %vm1382_vm9, %v1363_v6 }
 0x182   : > { %v1347_v7 = vpop.permute.xlu0 %1346 }
 0x183   : > { %v1365_v8 = vpop.permute.xlu1 %1364  ;;  %1389 = vst.msk [vmem:[#allocation2 + $0x30] sm:$0xff] %vm1382_vm9, %v1347_v7 }
 0x184   : > { %1398 = vst.msk [vmem:[#allocation2 + $0x78] sm:$0xff] %vm1382_vm9, %v1365_v8 }
 0x186   : > { %v1349_v9 = vpop.permute.xlu0 %1348 }
 0x187   : > { %v1908_v10 = vpop.permute.xlu1 %1907  ;;  %1390 = vst.msk [vmem:[#allocation2 + $0x38] sm:$0xff] %vm1382_vm9, %v1349_v9 }
 0x188   : > { %1942 = vst.msk [vmem:[#allocation2 + $0x70] sm:$0xff] %vm1927_vm10, %v1908_v10 }
 0x18a   : > { %v1892_v11 = vpop.permute.xlu0 %1891 }
 0x18b   : > { %v1910_v12 = vpop.permute.xlu1 %1909  ;;  %1934 = vst.msk [vmem:[#allocation2 + $0x30] sm:$0xff] %vm1927_vm10, %v1892_v11 }
 0x18c   : > { %1943 = vst.msk [vmem:[#allocation2 + $0x78] sm:$0xff] %vm1927_vm10, %v1910_v12 }
 0x18f   : > { %v2229_v14 = vpop.permute.xlu1 %2228 }
 0x190   : > { %v1894_v16 = vpop.permute.xlu0 %1893  ;;  %2263 = vst.msk [vmem:[#allocation2 + $0x70] sm:$0xff] %vm2248_vm11, %v2229_v14 }
 0x191   : > { %1935 = vst.msk [vmem:[#allocation2 + $0x38] sm:$0xff] %vm1927_vm10, %v1894_v16 }
 0x193   : > { %v2231_v17 = vpop.permute.xlu1 %2230 }
 0x194   : > { %v2213_v18 = vpop.permute.xlu0 %2212  ;;  %2264 = vst.msk [vmem:[#allocation2 + $0x78] sm:$0xff] %vm2248_vm11, %v2231_v17 }
 0x195   : > { %2255 = vst.msk [vmem:[#allocation2 + $0x30] sm:$0xff] %vm2248_vm11, %v2213_v18 }
 0x197   : > { %v2410_v19 = vpop.permute.xlu1 %2409 }
 0x198   : > { %v2215_v20 = vpop.permute.xlu0 %2214  ;;  %2444 = vst.msk [vmem:[#allocation2 + $0x70] sm:$0xff] %vm2429_vm12, %v2410_v19 }
 0x199   : > { %2256 = vst.msk [vmem:[#allocation2 + $0x38] sm:$0xff] %vm2248_vm11, %v2215_v20 }
 0x19b   : > { %v2412_v21 = vpop.permute.xlu1 %2411 }
 0x19c   : > { %v2394_v5 = vpop.permute.xlu0 %2393  ;;  %2445 = vst.msk [vmem:[#allocation2 + $0x78] sm:$0xff] %vm2429_vm12, %v2412_v21 }
 0x19d   : > { %2436 = vst.msk [vmem:[#allocation2 + $0x30] sm:$0xff] %vm2429_vm12, %v2394_v5 }
 0x19f   : > { %v2955_v25 = vpop.permute.xlu1 %2954 }
 0x1a0   : > { %v2396_v26 = vpop.permute.xlu0 %2395  ;;  %2989 = vst.msk [vmem:[#allocation2 + $0x70] sm:$0xff] %vm2974_vm13, %v2955_v25 }
 0x1a1   : > { %2437 = vst.msk [vmem:[#allocation2 + $0x38] sm:$0xff] %vm2429_vm12, %v2396_v26 }
 0x1a3   : > { %v2957_v27 = vpop.permute.xlu1 %2956 }
 0x1a4   : > { %v2939_v28 = vpop.permute.xlu0 %2938  ;;  %2990 = vst.msk [vmem:[#allocation2 + $0x78] sm:$0xff] %vm2974_vm13, %v2957_v27 }
 0x1a5   : > { %2981 = vst.msk [vmem:[#allocation2 + $0x30] sm:$0xff] %vm2974_vm13, %v2939_v28 }
 0x1a7   : > { %v3276_v24 = vpop.permute.xlu1 %3275 }
 0x1a8   : > { %v2941_v29 = vpop.permute.xlu0 %2940  ;;  %3310 = vst.msk [vmem:[#allocation2 + $0x70] sm:$0xff] %vm3295_vm14, %v3276_v24 }
 0x1a9   : > { %2982 = vst.msk [vmem:[#allocation2 + $0x38] sm:$0xff] %vm2974_vm13, %v2941_v29 }
 0x1ab   : > { %v3278_v30 = vpop.permute.xlu1 %3277 }
 0x1ac   : > { %v3260_v31 = vpop.permute.xlu0 %3259  ;;  %3311 = vst.msk [vmem:[#allocation2 + $0x78] sm:$0xff] %vm3295_vm14, %v3278_v30 }
 0x1ad   : > { %3302 = vst.msk [vmem:[#allocation2 + $0x30] sm:$0xff] %vm3295_vm14, %v3260_v31 }
 0x1af   : > { %v3326_v32 = vld [vmem:[#allocation2 + $0x70] sm:$0xff] }
 0x1b0   : > { %v3262_v33 = vpop.permute.xlu0 %3261  ;;  %4286 = vmatprep.mubr.msk.bf16.mxu1 %vm3371_vm15, %v3326_v32 }
 0x1b1   : > { %3303 = vst.msk [vmem:[#allocation2 + $0x38] sm:$0xff] %vm3295_vm14, %v3262_v33 }
 0x1b3   : > { %v3327_v34 = vld [vmem:[#allocation2 + $0x78] sm:$0xff] }
 0x1b4   : > { %v3318_v35 = vld [vmem:[#allocation2 + $0x30] sm:$0xff]  ;;  %4287 = vmatmul.mubr.msk.bf16.gmra.mrb[12].mxu1 %vm3371_vm15, %v3327_v34 }
 0x1b5   : > { %4270 = vmatprep.mubr.msk.bf16.mxu0 %vm3371_vm15, %v3318_v35 }
 0x1b8   : > { %v3319_v36 = vld [vmem:[#allocation2 + $0x38] sm:$0xff] }
 0x1b9   : > { %4271 = vmatmul.mubr.msk.bf16.gmra.mrb[12].mxu0 %vm3371_vm15, %v3319_v36 }
 0x1bd   : > { %v4260_v37 = vpop.f32.mrb[0].mxu0  ;;  %v4276_v38 = vpop.f32.mrb[0].mxu1 }
 0x1be   : > { %v3467_v40 = vadd.f32 %v4260_v37, %v5572_v1  ;;  %v3531_v41 = vadd.f32 %v4276_v38, %v5572_v1  ;;  %v3458_v0 = vpop.f32.mrb[1].mxu0  ;;  %v3522_v42 = vpop.f32.mrb[1].mxu1 }
 0x1bf   : > { %v3459_v43 = vadd.f32 %v5572_v1, %v3458_v0  ;;  %v3523_v44 = vadd.f32 %v5572_v1, %v3522_v42  ;;  %v4261_v47 = vpop.f32.mrb[2].mxu0  ;;  %v4277_v49 = vpop.f32.mrb[2].mxu1 }
 0x1c0   : > { %v3587_v50 = vmax.f32 %v3467_v40, 0.0  ;;  %v3603_v51 = vmax.f32 %v3531_v41, 0.0  ;;  %v3470_v52 = vadd.f32 %v4261_v47, %v5572_v1  ;;  %v3534_v53 = vadd.f32 %v4277_v49, %v5572_v1  ;;  %v3461_v54 = vpop.f32.mrb[3].mxu0  ;;  %v3525_v55 = vpop.f32.mrb[3].mxu1 }
 0x1c1   : > { %v3585_v23 = vmax.f32 %v3459_v43, 0.0  ;;  %v3601_v39 = vmax.f32 %v3523_v44, 0.0  ;;  %v3462_v56 = vadd.f32 %v5572_v1, %v3461_v54  ;;  %v3526_v57 = vadd.f32 %v5572_v1, %v3525_v55 }
 0x1c2   : > { %3619 = vst [vmem:[%s5580_s20 + $0x10] sm:$0xff] %v3587_v50  ;;  %3635 = vst [vmem:[%s5580_s20 + $0x90] sm:$0xff] %v3603_v51  ;;  %v3588_v13 = vmax.f32 %v3470_v52, 0.0  ;;  %v3604_v59 = vmax.f32 %v3534_v53, 0.0 }
 0x1c3   : > { %3617 = vst [vmem:[%s5580_s20] sm:$0xff] %v3585_v23  ;;  %3633 = vst [vmem:[%s5580_s20 + $0x80] sm:$0xff] %v3601_v39  ;;  %v3586_v48 = vmax.f32 %v3462_v56, 0.0  ;;  %v3602_v58 = vmax.f32 %v3526_v57, 0.0 }
 0x1c4   : > { %3620 = vst [vmem:[%s5580_s20 + $0x18] sm:$0xff] %v3588_v13  ;;  %3636 = vst [vmem:[%s5580_s20 + $0x98] sm:$0xff] %v3604_v59 }
 0x1c5   : > { %3618 = vst [vmem:[%s5580_s20 + $0x8] sm:$0xff] %v3586_v48  ;;  %3634 = vst [vmem:[%s5580_s20 + $0x88] sm:$0xff] %v3602_v58 }
 0x1ff   : > { %v4280_v60 = vpop.f32.mrb[4].mxu1 }
 0x200   : > { %v3547_v45 = vadd.f32 %v4280_v60, %v5572_v1  ;;  %v3538_v22 = vpop.f32.mrb[5].mxu1 }
 0x201   : > { %v4264_v61 = vpop.f32.mrb[4].mxu0  ;;  %v3539_v46 = vadd.f32 %v5572_v1, %v3538_v22  ;;  %v4281_v15 = vpop.f32.mrb[6].mxu1 }
 0x202   : > { %v3483_v62 = vadd.f32 %v4264_v61, %v5572_v1  ;;  %v3607_v63 = vmax.f32 %v3547_v45, 0.0  ;;  %v3474_v2 = vpop.f32.mrb[5].mxu0  ;;  %v3550_v3 = vadd.f32 %v4281_v15, %v5572_v1  ;;  %v3541_v4 = vpop.f32.mrb[7].mxu1 }
 0x203   : > { %v3475_v6 = vadd.f32 %v5572_v1, %v3474_v2  ;;  %v3605_v7 = vmax.f32 %v3539_v46, 0.0  ;;  %v4265_v8 = vpop.f32.mrb[6].mxu0  ;;  %v3542_v9 = vadd.f32 %v5572_v1, %v3541_v4 }
 0x204   : > { %v3591_v10 = vmax.f32 %v3483_v62, 0.0  ;;  %3639 = vst [vmem:[%s5580_s20 + $0xb0] sm:$0xff] %v3607_v63  ;;  %v3486_v11 = vadd.f32 %v4265_v8, %v5572_v1  ;;  %v3608_v12 = vmax.f32 %v3550_v3, 0.0  ;;  %v3477_v14 = vpop.f32.mrb[7].mxu0 }
 0x205   : > { %v3589_v16 = vmax.f32 %v3475_v6, 0.0  ;;  %3637 = vst [vmem:[%s5580_s20 + $0xa0] sm:$0xff] %v3605_v7  ;;  %v3478_v17 = vadd.f32 %v5572_v1, %v3477_v14  ;;  %v3606_v18 = vmax.f32 %v3542_v9, 0.0 }
 0x206   : > { %3623 = vst [vmem:[%s5580_s20 + $0x30] sm:$0xff] %v3591_v10  ;;  %v3592_v19 = vmax.f32 %v3486_v11, 0.0  ;;  %3640 = vst [vmem:[%s5580_s20 + $0xb8] sm:$0xff] %v3608_v12 }
 0x207   : > { %3621 = vst [vmem:[%s5580_s20 + $0x20] sm:$0xff] %v3589_v16  ;;  %v3590_v20 = vmax.f32 %v3478_v17, 0.0  ;;  %3638 = vst [vmem:[%s5580_s20 + $0xa8] sm:$0xff] %v3606_v18 }
 0x208   : > { %3624 = vst [vmem:[%s5580_s20 + $0x38] sm:$0xff] %v3592_v19 }
 0x209   : > { %3622 = vst [vmem:[%s5580_s20 + $0x28] sm:$0xff] %v3590_v20 }
 0x248   : > { %v4284_v21 = vpop.f32.mrb[8].mxu1 }
 0x249   : > { %v3563_v5 = vadd.f32 %v4284_v21, %v5572_v1  ;;  %v3554_v25 = vpop.f32.mrb[9].mxu1 }
 0x24a   : > { %v4268_v26 = vpop.f32.mrb[8].mxu0  ;;  %v3555_v27 = vadd.f32 %v5572_v1, %v3554_v25  ;;  %v4285_v28 = vpop.f32.mrb[10].mxu1 }
 0x24b   : > { %v3499_v24 = vadd.f32 %v4268_v26, %v5572_v1  ;;  %v3611_v29 = vmax.f32 %v3563_v5, 0.0  ;;  %v3490_v30 = vpop.f32.mrb[9].mxu0  ;;  %v3566_v31 = vadd.f32 %v4285_v28, %v5572_v1  ;;  %v3557_v32 = vpop.f32.mrb[11].mxu1 }
 0x24c   : > { %v3491_v33 = vadd.f32 %v5572_v1, %v3490_v30  ;;  %v3609_v34 = vmax.f32 %v3555_v27, 0.0  ;;  %v4269_v35 = vpop.f32.mrb[10].mxu0  ;;  %v3558_v36 = vadd.f32 %v5572_v1, %v3557_v32 }
 0x24d   : > { %v3595_v37 = vmax.f32 %v3499_v24, 0.0  ;;  %3643 = vst [vmem:[%s5580_s20 + $0xd0] sm:$0xff] %v3611_v29  ;;  %v3502_v38 = vadd.f32 %v4269_v35, %v5572_v1  ;;  %v3612_v40 = vmax.f32 %v3566_v31, 0.0  ;;  %v3493_v41 = vpop.f32.mrb[11].mxu0 }
 0x24e   : > { %v3593_v0 = vmax.f32 %v3491_v33, 0.0  ;;  %3641 = vst [vmem:[%s5580_s20 + $0xc0] sm:$0xff] %v3609_v34  ;;  %v3494_v42 = vadd.f32 %v5572_v1, %v3493_v41  ;;  %v3610_v43 = vmax.f32 %v3558_v36, 0.0 }
 0x24f   : > { %3627 = vst [vmem:[%s5580_s20 + $0x50] sm:$0xff] %v3595_v37  ;;  %v3596_v44 = vmax.f32 %v3502_v38, 0.0  ;;  %3644 = vst [vmem:[%s5580_s20 + $0xd8] sm:$0xff] %v3612_v40 }
 0x250   : > { %3625 = vst [vmem:[%s5580_s20 + $0x40] sm:$0xff] %v3593_v0  ;;  %v3594_v47 = vmax.f32 %v3494_v42, 0.0  ;;  %3642 = vst [vmem:[%s5580_s20 + $0xc8] sm:$0xff] %v3610_v43 }
 0x251   : > { %3628 = vst [vmem:[%s5580_s20 + $0x58] sm:$0xff] %v3596_v44 }
 0x252   : > { %3626 = vst [vmem:[%s5580_s20 + $0x48] sm:$0xff] %v3594_v47 }
 0x287   : > { %v4288_v49 = vpop.f32.mrb[12].mxu1 }
 0x288   : > { %v3579_v50 = vadd.f32 %v4288_v49, %v5572_v1  ;;  %v3570_v51 = vpop.f32.mrb[13].mxu1 }
 0x289   : > { %v3571_v52 = vadd.f32 %v5572_v1, %v3570_v51  ;;  %v4289_v53 = vpop.f32.mrb[14].mxu1 }
 0x28a   : > { %v3615_v54 = vmax.f32 %v3579_v50, 0.0  ;;  %v3582_v55 = vadd.f32 %v4289_v53, %v5572_v1  ;;  %v3573_v23 = vpop.f32.mrb[15].mxu1 }
 0x28b   : > { %v3613_v39 = vmax.f32 %v3571_v52, 0.0  ;;  %v3574_v56 = vadd.f32 %v5572_v1, %v3573_v23 }
 0x28c   : > { %v4272_v57 = vpop.f32.mrb[12].mxu0  ;;  %3647 = vst [vmem:[%s5580_s20 + $0xf0] sm:$0xff] %v3615_v54  ;;  %v3616_v13 = vmax.f32 %v3582_v55, 0.0 }
 0x28d   : > { %v3515_v59 = vadd.f32 %v4272_v57, %v5572_v1  ;;  %v3506_v48 = vpop.f32.mrb[13].mxu0  ;;  %3645 = vst [vmem:[%s5580_s20 + $0xe0] sm:$0xff] %v3613_v39  ;;  %v3614_v58 = vmax.f32 %v3574_v56, 0.0 }
 0x28e   : > { %v3507_v60 = vadd.f32 %v5572_v1, %v3506_v48  ;;  %v4273_v45 = vpop.f32.mrb[14].mxu0  ;;  %3648 = vst [vmem:[%s5580_s20 + $0xf8] sm:$0xff] %v3616_v13 }
 0x28f   : > { %v3599_v22 = vmax.f32 %v3515_v59, 0.0  ;;  %v3518_v61 = vadd.f32 %v4273_v45, %v5572_v1  ;;  %v3509_v46 = vpop.f32.mrb[15].mxu0  ;;  %3646 = vst [vmem:[%s5580_s20 + $0xe8] sm:$0xff] %v3614_v58 }
 0x290   : > { %v3597_v15 = vmax.f32 %v3507_v60, 0.0  ;;  %v3510_v62 = vadd.f32 %v5572_v1, %v3509_v46 }
 0x291   : > { %3631 = vst [vmem:[%s5580_s20 + $0x70] sm:$0xff] %v3599_v22  ;;  %v3600_v63 = vmax.f32 %v3518_v61, 0.0 }
 0x292   : > { %3629 = vst [vmem:[%s5580_s20 + $0x60] sm:$0xff] %v3597_v15  ;;  %v3598_v2 = vmax.f32 %v3510_v62, 0.0 }
 0x293   : > { %3632 = vst [vmem:[%s5580_s20 + $0x78] sm:$0xff] %v3600_v63 }
 0x294   : > { %3630 = vst [vmem:[%s5580_s20 + $0x68] sm:$0xff] %v3598_v2 }
 0x295 PF: > { %s13_s14 = sadd.s32 1, %s4410_s14   ;;  %s5661_s12 = smov %s4406_s13 }
 0x296   : > { %p10_p5 = scmp.ge.s32.totalorder %s13_s14, 4   ;;  %s5662_s13 = smov %s5664_s15 }
 0x298   :  { %12 = sbr.rel (!%p10_p5) target bundleno = 2 (0x2), region = 65 }

</bundles_post_ra>
